<compile_context>
chip_gen: v7x
topology: tpu7x:2x2x1
jax: 0.10.0
libtpu: 0.0.40
codegen_flags: <defaults>
</compile_context>

<pallas_src>
import functools

import jax
import jax.numpy as jnp
from jax.experimental import pallas as pl
from jax.experimental.pallas import tpu as pltpu


def _sigmoid(v):
    # exp + divide only (EUP exp, VPU divide); matches torch.sigmoid within fp tolerance.
    return 1.0 / (1.0 + jnp.exp(-v))


def _action_kernel(
    # ---- inputs --------------------------------------------------------------
    x_ref,      # (T, C, HW)   one clip, NCHW-native, spatial flattened onto lanes
    shift_ref,  # (C, 3)       temporal depthwise taps (col k multiplies x[t+k-1])
    w3_ref,     # (27,) SMEM   3x3x3 conv taps, flat index dt*9 + di*3 + dj
    mask_ref,   # (2, HW)      p1 w-wraparound masks: row0 for dj=0, row1 for dj=2
    stat_ref,   # (HW, 9)      pooling matrix: [all, row0, rowH-1, col0, colW-1, 4 corners]
    sq2_ref,    # (Cr, C)      p2 squeeze
    p2t_ref,    # (3, Cr, Cr)  p2 temporal conv taps
    ex2_ref,    # (C, Cr)      p2 expand
    sq3_ref,    # (Cr, C)      p3 squeeze (eval-BN folded)
    tapc_ref,   # (Cr, 9)      p3 depthwise taps recombined for the pooled output
    p3b_ref,    # (Cr, 2)      col0: folded BN bias, col1: bias term of pooled dw-conv
    ex3_ref,    # (C, Cr)      p3 expand
    netw_ref,   # (Co, C)      fused self.net (1x1 conv)
    netb_ref,   # (Co, 1)
    # ---- output --------------------------------------------------------------
    o_ref,      # (T, Co, HW)
    # ---- scratch --------------------------------------------------------------
    xs_ref,     # VMEM (T, C, HW)            x_shift
    mpad_ref,   # VMEM (T+2, HW + 2*(W+1))   zero-padded channel-mean map for p1
    # ---- static ---------------------------------------------------------------
    *, W, mxu_dtype,
):
    T, C, HW = x_ref.shape
    Cr = sq2_ref.shape[0]
    f32 = jnp.float32
    inv_hw = 1.0 / HW
    pad = W + 1
    Wp = HW + 2 * pad

    # -------- temporal shift (per-channel taps, zero-padded per clip) -----------
    w0 = shift_ref[:, 0:1]
    w1 = shift_ref[:, 1:2]
    w2 = shift_ref[:, 2:3]
    xs_ref[0:1] = w1 * x_ref[0:1] + w2 * x_ref[1:2]
    xs_ref[1:T - 1] = w0 * x_ref[0:T - 2] + w1 * x_ref[1:T - 1] + w2 * x_ref[2:T]
    xs_ref[T - 1:T] = w0 * x_ref[T - 2:T - 1] + w1 * x_ref[T - 1:T]

    # -------- pooled statistics (full / edge rows / edge cols / corners) --------
    # One MXU matmul does every spatial reduction needed by p2 and the collapsed p3.
    xs_flat = xs_ref[...].reshape(T * C, HW)
    E_all = jnp.dot(xs_flat.astype(mxu_dtype), stat_ref[...].astype(mxu_dtype),
                    preferred_element_type=f32)                       # (T*C, 9)
    E_t = [E_all[t * C:(t + 1) * C, :] for t in range(T)]             # each (C, 9)

    # -------- p2: channel excitation --------------------------------------------
    s_cols = [E_t[t][:, 0:1] for t in range(T)]
    S_mat = jnp.concatenate(s_cols, axis=1) * inv_hw                  # (C, T) channel means
    Z = jnp.dot(sq2_ref[...], S_mat, preferred_element_type=f32)      # (Cr, T)
    zero_col = jnp.zeros((Cr, 1), f32)
    Zpad = jnp.concatenate([zero_col, Z, zero_col], axis=1)           # (Cr, T+2)
    Zt = (jnp.dot(p2t_ref[0], Zpad[:, 0:T], preferred_element_type=f32)
          + jnp.dot(p2t_ref[1], Zpad[:, 1:T + 1], preferred_element_type=f32)
          + jnp.dot(p2t_ref[2], Zpad[:, 2:T + 2], preferred_element_type=f32))
    Zt = jnp.maximum(Zt, 0.0)                                         # ReLU
    A2 = _sigmoid(jnp.dot(ex2_ref[...], Zt, preferred_element_type=f32))   # (C, T)

    # -------- p3: motion excitation (pool-collapsed, no spatial map) -------------
    b3 = p3b_ref[:, 0:1]
    bdw = p3b_ref[:, 1:2]
    tapc = tapc_ref[...]
    mean_y3 = []
    mean_dwc = []
    for t in range(T):
        Ep = jnp.dot(sq3_ref[...], E_t[t], preferred_element_type=f32)      # (Cr, 9)
        mean_y3.append(Ep[:, 0:1] * inv_hw + b3)
        mean_dwc.append((jnp.sum(tapc * Ep, axis=1, keepdims=True) + bdw) * inv_hw)
    pool_cols = [mean_dwc[t + 1] - mean_y3[t] for t in range(T - 1)]
    pool_cols.append(jnp.zeros((Cr, 1), f32))                         # last frame zero-padded
    pooled = jnp.concatenate(pool_cols, axis=1)                       # (Cr, T)
    A3 = _sigmoid(jnp.dot(ex3_ref[...], pooled, preferred_element_type=f32))  # (C, T)

    # -------- p1: spatio-temporal excitation (channel mean -> 3x3x3 conv) --------
    # Mean map kept flattened (HW on lanes); halo of W+1 zero columns per side handles
    # the h-direction padding, two lane masks handle w-wraparound, zero frames at rows
    # 0 and T+1 handle the temporal padding.
    mpad_ref[0:1, :] = jnp.zeros((1, Wp), f32)
    mpad_ref[T + 1:T + 2, :] = jnp.zeros((1, Wp), f32)
    mpad_ref[1:T + 1, 0:pad] = jnp.zeros((T, pad), f32)
    mpad_ref[1:T + 1, pad + HW:Wp] = jnp.zeros((T, pad), f32)
    cmean = jnp.full((1, C), 1.0 / C, f32)
    for t in range(T):
        m_t = jnp.dot(cmean, xs_ref[t], preferred_element_type=f32)   # (1, HW)
        mpad_ref[t + 1:t + 2, pad:pad + HW] = m_t

    acc = jnp.zeros((T, HW), f32)
    for dj in range(3):
        part = jnp.zeros((T, HW), f32)
        for dt in range(3):
            for di in range(3):
                tap = w3_ref[dt * 9 + di * 3 + dj]                    # SMEM scalar
                off = pad + (di - 1) * W + (dj - 1)
                part = part + tap * mpad_ref[dt:dt + T, off:off + HW]
        if dj == 0:
            part = part * mask_ref[0:1, :]
        elif dj == 2:
            part = part * mask_ref[1:2, :]
        acc = acc + part
    A1 = _sigmoid(acc)                                                # (T, HW)

    # -------- combine gates + fused self.net (1x1 conv) MXU epilogue --------------
    #   x_p1 + x_p2 + x_p3 == x_shift * (3 + a1 + a2 + a3)
    netw = netw_ref[...].astype(mxu_dtype)
    netb = netb_ref[...]
    gate_tc = 3.0 + A2 + A3                                           # (C, T)
    for t in range(T):
        g_full = gate_tc[:, t:t + 1] + A1[t:t + 1, :]                 # (C,1)+(1,HW) -> (C,HW)
        y_t = xs_ref[t] * g_full                                      # (C, HW)
        o_t = jnp.dot(netw, y_t.astype(mxu_dtype),
                      preferred_element_type=f32) + netb              # (Co, HW)
        o_ref[t] = o_t.astype(o_ref.dtype)                            # lane-dense store


@functools.partial(jax.jit, static_argnums=(2, 3))
def action_forward(x, params, n_segment, mxu_dtype=jnp.bfloat16):
    """Pallas implementation of Action.forward (shift + 3 excitation gates + fused net)."""
    nt, C, H, W = x.shape
    assert nt % n_segment == 0
    T = n_segment
    assert T >= 3, "kernel assumes at least 3 frames per clip"
    nb = nt // T
    HW = H * W
    Cr = params["p2_squeeze_w"].shape[0]
    Co, Ci, kh, kw = params["net_w"].shape
    assert Ci == C and kh == 1 and kw == 1, "fused net epilogue assumes a 1x1 stride-1 conv"
    f32 = jnp.float32

    # NCHW-native layout, spatial flattened: free reshape, no HBM transpose.
    x_k = x.reshape(nb, T, C, HW)

    # ---- repack weights / constant tables (layout plumbing only) -----------------
    shift_w = params["shift_w"][:, 0, :].astype(f32)                       # (C, 3)
    w3 = params["p1_conv3d_w"].reshape(27).astype(f32)                     # (27,)

    pidx = jnp.arange(HW)
    hcoord = pidx // W
    wcoord = pidx % W
    masks = jnp.stack([(wcoord != 0), (wcoord != W - 1)], axis=0).astype(f32)   # (2, HW)
    stat_cols = [
        jnp.ones((HW,), f32),
        (hcoord == 0), (hcoord == H - 1),
        (wcoord == 0), (wcoord == W - 1),
        (hcoord == 0) & (wcoord == 0), (hcoord == 0) & (wcoord == W - 1),
        (hcoord == H - 1) & (wcoord == 0), (hcoord == H - 1) & (wcoord == W - 1),
    ]
    stat_m = jnp.stack([c.astype(f32) for c in stat_cols], axis=1)         # (HW, 9)

    sq2 = params["p2_squeeze_w"][:, :, 0, 0].astype(f32)                   # (Cr, C)
    p2t = jnp.transpose(params["p2_conv1_w"], (2, 0, 1)).astype(f32)       # (3, Cr, Cr)
    ex2 = params["p2_expand_w"][:, :, 0, 0].astype(f32)                    # (C, Cr)

    # eval-mode BatchNorm folded into the p3 1x1 squeeze conv
    scale = params["p3_bn_gamma"] / jnp.sqrt(params["p3_bn_var"] + 1e-5)
    sq3 = (params["p3_squeeze_w"][:, :, 0, 0] * scale[:, None]).astype(f32)     # (Cr, C)
    b3 = (params["p3_bn_beta"] - params["p3_bn_mean"] * scale).astype(f32)       # (Cr,)
    dw = params["p3_conv1_w"][:, 0].astype(f32)                            # (Cr, 3, 3)
    wsum = dw.sum((1, 2))
    wr0 = dw[:, 0, :].sum(1)
    wr2 = dw[:, 2, :].sum(1)
    wc0 = dw[:, :, 0].sum(1)
    wc2 = dw[:, :, 2].sum(1)
    # coefficients matching stat columns [S, Rfirst, Rlast, Cfirst, Clast, K00, K0W, KH0, KHW]
    tapc = jnp.stack([wsum, -wr2, -wr0, -wc2, -wc0,
                      dw[:, 2, 2], dw[:, 2, 0], dw[:, 0, 2], dw[:, 0, 0]], axis=1)   # (Cr, 9)
    bdw = b3 * (HW * wsum - W * (wr0 + wr2) - H * (wc0 + wc2)
                + dw[:, 0, 0] + dw[:, 0, 2] + dw[:, 2, 0] + dw[:, 2, 2])
    p3b = jnp.stack([b3, bdw], axis=1)                                     # (Cr, 2)
    ex3 = params["p3_expand_w"][:, :, 0, 0].astype(f32)                    # (C, Cr)

    netw = params["net_w"][:, :, 0, 0].astype(f32)                         # (Co, C)
    netb = params["net_b"].reshape(Co, 1).astype(f32)                      # (Co, 1)

    kernel = functools.partial(_action_kernel, W=W, mxu_dtype=mxu_dtype)

    grid_spec = pltpu.PrefetchScalarGridSpec(
        num_scalar_prefetch=0,
        grid=(nb,),
        in_specs=[
            pl.BlockSpec((None, T, C, HW), lambda b: (b, 0, 0, 0)),
            pl.BlockSpec((C, 3), lambda b: (0, 0)),
            pl.BlockSpec(memory_space=pltpu.MemorySpace.SMEM),   # 27 scalar taps
            pl.BlockSpec((2, HW), lambda b: (0, 0)),
            pl.BlockSpec((HW, 9), lambda b: (0, 0)),
            pl.BlockSpec((Cr, C), lambda b: (0, 0)),
            pl.BlockSpec((3, Cr, Cr), lambda b: (0, 0, 0)),
            pl.BlockSpec((C, Cr), lambda b: (0, 0)),
            pl.BlockSpec((Cr, C), lambda b: (0, 0)),
            pl.BlockSpec((Cr, 9), lambda b: (0, 0)),
            pl.BlockSpec((Cr, 2), lambda b: (0, 0)),
            pl.BlockSpec((C, Cr), lambda b: (0, 0)),
            pl.BlockSpec((Co, C), lambda b: (0, 0)),
            pl.BlockSpec((Co, 1), lambda b: (0, 0)),
        ],
        out_specs=pl.BlockSpec((None, T, Co, HW), lambda b: (b, 0, 0, 0)),
        scratch_shapes=[
            pltpu.VMEM((T, C, HW), f32),
            pltpu.VMEM((T + 2, HW + 2 * (W + 1)), f32),
        ],
    )

    weight_bytes = 4 * (C * 3 + 27 + 2 * HW + HW * 9 + 2 * Cr * C + 3 * Cr * Cr
                        + 2 * C * Cr + Cr * 9 + Cr * 2 + Co * C + Co)
    flops = nb * T * (5 * C * HW            # shift
                      + 2 * 9 * C * HW      # pooled stats matmul
                      + 2 * 27 * HW         # p1 conv
                      + 2 * C * HW          # channel mean + gate apply (approx)
                      + 2 * Co * C * HW)    # net epilogue
    transcendentals = nb * T * (HW + 2 * C)
    bytes_accessed = 4 * (x.size + nb * T * Co * HW) + weight_bytes

    out = pl.pallas_call(
        kernel,
        out_shape=jax.ShapeDtypeStruct((nb, T, Co, HW), x.dtype),
        grid_spec=grid_spec,
        compiler_params=pltpu.CompilerParams(
            dimension_semantics=("parallel",)),
        cost_estimate=pl.CostEstimate(
            flops=flops, transcendentals=transcendentals, bytes_accessed=bytes_accessed),
    )(x_k, shift_w, w3, masks, stat_m, sq2, p2t, ex2, sq3, tapc, p3b, ex3, netw, netb)

    # free reshape back to NCHW
    return out.reshape(nt, Co, H, W)


def _action_ref(x, params, n_segment):
    """Pure-JAX/XLA reference mirroring PyTorch Action.forward (eval-mode BN)."""
    nt, C, H, W = x.shape
    nb = nt // n_segment
    T = n_segment
    Cr = params["p2_squeeze_w"].shape[0]

    # temporal shift (depthwise conv1d over time)
    xs = x.reshape(nb, T, C, H, W).transpose(0, 3, 4, 2, 1).reshape(nb * H * W, C, T)
    xs = jax.lax.conv_general_dilated(
        xs, params["shift_w"], window_strides=(1,), padding=((1, 1),),
        dimension_numbers=("NCH", "OIH", "NCH"), feature_group_count=C)
    x_shift = xs.reshape(nb, H, W, C, T).transpose(0, 4, 3, 1, 2).reshape(nt, C, H, W)

    # p1: spatio-temporal excitation
    xp1 = x_shift.reshape(nb, T, C, H, W).transpose(0, 2, 1, 3, 4).mean(axis=1, keepdims=True)
    xp1 = jax.lax.conv_general_dilated(
        xp1, params["p1_conv3d_w"], window_strides=(1, 1, 1),
        padding=((1, 1), (1, 1), (1, 1)),
        dimension_numbers=("NCDHW", "OIDHW", "NCDHW"))
    a1 = jax.nn.sigmoid(xp1.transpose(0, 2, 1, 3, 4).reshape(nt, 1, H, W))
    x_p1 = x_shift * a1 + x_shift

    # p2: channel excitation
    s = x_shift.mean(axis=(2, 3))                                           # (nt, C)
    z = jnp.dot(s, params["p2_squeeze_w"][:, :, 0, 0].T)                    # (nt, Cr)
    z = z.reshape(nb, T, Cr).transpose(0, 2, 1)
    z = jax.lax.conv_general_dilated(
        z, params["p2_conv1_w"], window_strides=(1,), padding=((1, 1),),
        dimension_numbers=("NCH", "OIH", "NCH"))
    z = jax.nn.relu(z).transpose(0, 2, 1).reshape(nt, Cr)
    a2 = jax.nn.sigmoid(jnp.dot(z, params["p2_expand_w"][:, :, 0, 0].T))    # (nt, C)
    x_p2 = x_shift * a2[:, :, None, None] + x_shift

    # p3: motion excitation (eval-mode BN)
    x3 = jnp.einsum("rc,nchw->nrhw", params["p3_squeeze_w"][:, :, 0, 0], x_shift)
    scale = params["p3_bn_gamma"] / jnp.sqrt(params["p3_bn_var"] + 1e-5)
    x3 = x3 * scale[None, :, None, None] + (
        params["p3_bn_beta"] - params["p3_bn_mean"] * scale)[None, :, None, None]
    x3c = jax.lax.conv_general_dilated(
        x3, params["p3_conv1_w"], window_strides=(1, 1), padding=((1, 1), (1, 1)),
        dimension_numbers=("NCHW", "OIHW", "NCHW"), feature_group_count=Cr)
    d = x3c.reshape(nb, T, Cr, H, W)[:, 1:] - x3.reshape(nb, T, Cr, H, W)[:, :T - 1]
    d = jnp.pad(d, ((0, 0), (0, 1), (0, 0), (0, 0), (0, 0)))
    pooled = d.reshape(nt, Cr, H, W).mean(axis=(2, 3))                      # (nt, Cr)
    a3 = jax.nn.sigmoid(jnp.dot(pooled, params["p3_expand_w"][:, :, 0, 0].T))
    x_p3 = x_shift * a3[:, :, None, None] + x_shift

    y = x_p1 + x_p2 + x_p3
    out = jnp.einsum("oc,nchw->nohw", params["net_w"][:, :, 0, 0], y) + \
        params["net_b"][None, :, None, None]
    return out


if __name__ == "__main__":
    n_segment = 4
    n_batch = 2
    C = 32             # in_channels (divisible by shift_div=8 and by 16)
    Co = 32            # net out_channels
    H = W = 16
    shift_div = 8
    fold = C // shift_div
    Cr = C // 16       # reduced_channels
    nt = n_batch * n_segment

    key = jax.random.PRNGKey(0)
    ks = jax.random.split(key, 14)
    x = jax.random.normal(ks[0], (nt, C, H, W), dtype=jnp.float32)

    # action_shift initialised exactly like the PyTorch module (temporal shift taps)
    shift_w = jnp.zeros((C, 1, 3), jnp.float32)
    shift_w = shift_w.at[:fold, 0, 2].set(1.0)
    shift_w = shift_w.at[fold:2 * fold, 0, 0].set(1.0)
    shift_w = shift_w.at[2 * fold:, 0, 1].set(1.0)

    params = {
        "shift_w": shift_w,                                                        # (C, 1, 3)
        "p1_conv3d_w": 0.2 * jax.random.normal(ks[1], (1, 1, 3, 3, 3), jnp.float32),
        "p2_squeeze_w": 0.2 * jax.random.normal(ks[2], (Cr, C, 1, 1), jnp.float32),
        "p2_conv1_w": 0.2 * jax.random.normal(ks[3], (Cr, Cr, 3), jnp.float32),
        "p2_expand_w": 0.2 * jax.random.normal(ks[4], (C, Cr, 1, 1), jnp.float32),
        "p3_squeeze_w": 0.2 * jax.random.normal(ks[5], (Cr, C, 1, 1), jnp.float32),
        "p3_bn_gamma": 1.0 + 0.1 * jax.random.normal(ks[6], (Cr,), jnp.float32),
        "p3_bn_beta": 0.1 * jax.random.normal(ks[7], (Cr,), jnp.float32),
        "p3_bn_mean": 0.1 * jax.random.normal(ks[8], (Cr,), jnp.float32),
        "p3_bn_var": jnp.abs(1.0 + 0.1 * jax.random.normal(ks[9], (Cr,), jnp.float32)),
        "p3_conv1_w": 0.2 * jax.random.normal(ks[10], (Cr, 1, 3, 3), jnp.float32),
        "p3_expand_w": 0.2 * jax.random.normal(ks[11], (C, Cr, 1, 1), jnp.float32),
        "net_w": 0.1 * jax.random.normal(ks[12], (Co, C, 1, 1), jnp.float32),
        "net_b": 0.05 * jax.random.normal(ks[13], (Co,), jnp.float32),
    }

    with jax.default_matmul_precision("float32"):
        ref = _action_ref(x, params, n_segment)

    # strict check: f32 MXU path
    out32 = jax.block_until_ready(action_forward(x, params, n_segment, jnp.float32))
    assert out32.shape == (nt, Co, H, W), out32.shape
    assert jnp.allclose(out32, ref, atol=2e-2, rtol=2e-2), \
        float(jnp.max(jnp.abs(out32 - ref)))

    # fast path for v6e/v7x: bf16 inputs to the two big matmuls (f32 accumulate)
    outbf = jax.block_until_ready(action_forward(x, params, n_segment, jnp.bfloat16))
    assert outbf.shape == (nt, Co, H, W), outbf.shape
    assert jnp.allclose(outbf, ref, atol=1e-1, rtol=5e-2), \
        float(jnp.max(jnp.abs(outbf - ref)))

    print("KERNEL_OK")
</pallas_src>

<mosaic_0001>
module attributes {stable_mosaic.version = 11 : i64} {
  func.func @_action_kernel(%arg0: i32, %arg1: memref<1x4x32x256xf32, #tpu.memory_space<vmem>>, %arg2: memref<32x3xf32, #tpu.memory_space<vmem>>, %arg3: memref<27xf32, #tpu.memory_space<smem>>, %arg4: memref<2x256xf32, #tpu.memory_space<vmem>>, %arg5: memref<256x9xf32, #tpu.memory_space<vmem>>, %arg6: memref<2x32xf32, #tpu.memory_space<vmem>>, %arg7: memref<3x2x2xf32, #tpu.memory_space<vmem>>, %arg8: memref<32x2xf32, #tpu.memory_space<vmem>>, %arg9: memref<2x32xf32, #tpu.memory_space<vmem>>, %arg10: memref<2x9xf32, #tpu.memory_space<vmem>>, %arg11: memref<2x2xf32, #tpu.memory_space<vmem>>, %arg12: memref<32x2xf32, #tpu.memory_space<vmem>>, %arg13: memref<32x32xf32, #tpu.memory_space<vmem>>, %arg14: memref<32x1xf32, #tpu.memory_space<vmem>>, %arg15: memref<1x4x32x256xf32, #tpu.memory_space<vmem>>, %arg16: memref<4x32x256xf32, #tpu.memory_space<vmem>>, %arg17: memref<6x290xf32, #tpu.memory_space<vmem>>) attributes {dimension_semantics = [#tpu.dimension_semantics<parallel>], iteration_bounds = array<i64: 2>, scalar_prefetch = 0 : i64, scratch_operands = 2 : i64, tpu.core_type = #tpu.core_type<tc>, window_params = [{transform_indices = @transform_0, window_bounds = array<i64: 1, 4, 32, 256>}, {pipeline_mode = #tpu.pipeline_mode<synchronous>, transform_indices = @transform_1, window_bounds = array<i64: 32, 3>}, {transform_indices = @transform_2, window_bounds = array<i64: 27>}, {pipeline_mode = #tpu.pipeline_mode<synchronous>, transform_indices = @transform_3, window_bounds = array<i64: 2, 256>}, {pipeline_mode = #tpu.pipeline_mode<synchronous>, transform_indices = @transform_4, window_bounds = array<i64: 256, 9>}, {pipeline_mode = #tpu.pipeline_mode<synchronous>, transform_indices = @transform_5, window_bounds = array<i64: 2, 32>}, {pipeline_mode = #tpu.pipeline_mode<synchronous>, transform_indices = @transform_6, window_bounds = array<i64: 3, 2, 2>}, {pipeline_mode = #tpu.pipeline_mode<synchronous>, transform_indices = @transform_7, window_bounds = array<i64: 32, 2>}, {pipeline_mode = #tpu.pipeline_mode<synchronous>, transform_indices = @transform_8, window_bounds = array<i64: 2, 32>}, {pipeline_mode = #tpu.pipeline_mode<synchronous>, transform_indices = @transform_9, window_bounds = array<i64: 2, 9>}, {pipeline_mode = #tpu.pipeline_mode<synchronous>, transform_indices = @transform_10, window_bounds = array<i64: 2, 2>}, {pipeline_mode = #tpu.pipeline_mode<synchronous>, transform_indices = @transform_11, window_bounds = array<i64: 32, 2>}, {pipeline_mode = #tpu.pipeline_mode<synchronous>, transform_indices = @transform_12, window_bounds = array<i64: 32, 32>}, {pipeline_mode = #tpu.pipeline_mode<synchronous>, transform_indices = @transform_13, window_bounds = array<i64: 32, 1>}, {transform_indices = @transform_14, window_bounds = array<i64: 1, 4, 32, 256>}]} {
    %c0 = arith.constant 0 : index
    %c0_0 = arith.constant 0 : index
    %0 = vector.load %arg2[%c0, %c0_0] : memref<32x3xf32, #tpu.memory_space<vmem>>, vector<32x1xf32>
    %c0_1 = arith.constant 0 : index
    %c1 = arith.constant 1 : index
    %1 = vector.load %arg2[%c0_1, %c1] : memref<32x3xf32, #tpu.memory_space<vmem>>, vector<32x1xf32>
    %c0_2 = arith.constant 0 : index
    %c2 = arith.constant 2 : index
    %2 = vector.load %arg2[%c0_2, %c2] : memref<32x3xf32, #tpu.memory_space<vmem>>, vector<32x1xf32>
    %c0_3 = arith.constant 0 : index
    %c0_4 = arith.constant 0 : index
    %c0_5 = arith.constant 0 : index
    %c0_6 = arith.constant 0 : index
    %3 = vector.load %arg1[%c0_3, %c0_4, %c0_5, %c0_6] : memref<1x4x32x256xf32, #tpu.memory_space<vmem>>, vector<1x1x32x256xf32>
    %4 = vector.shape_cast %3 : vector<1x1x32x256xf32> to vector<1x32x256xf32>
    %5 = vector.shape_cast %1 : vector<32x1xf32> to vector<1x32x1xf32>
    %6 = vector.broadcast %5 : vector<1x32x1xf32> to vector<1x32x256xf32>
    %7 = arith.mulf %6, %4 : vector<1x32x256xf32>
    %c0_7 = arith.constant 0 : index
    %c1_8 = arith.constant 1 : index
    %c0_9 = arith.constant 0 : index
    %c0_10 = arith.constant 0 : index
    %8 = vector.load %arg1[%c0_7, %c1_8, %c0_9, %c0_10] : memref<1x4x32x256xf32, #tpu.memory_space<vmem>>, vector<1x1x32x256xf32>
    %9 = vector.shape_cast %8 : vector<1x1x32x256xf32> to vector<1x32x256xf32>
    %10 = vector.shape_cast %2 : vector<32x1xf32> to vector<1x32x1xf32>
    %11 = vector.broadcast %10 : vector<1x32x1xf32> to vector<1x32x256xf32>
    %12 = arith.mulf %11, %9 : vector<1x32x256xf32>
    %13 = arith.addf %7, %12 : vector<1x32x256xf32>
    %c0_11 = arith.constant 0 : index
    %c0_12 = arith.constant 0 : index
    %c0_13 = arith.constant 0 : index
    %14 = vector.load %arg16[%c0_11, %c0_12, %c0_13] : memref<4x32x256xf32, #tpu.memory_space<vmem>>, vector<1x32x256xf32>
    tpu.vector_store %arg16[%c0_11, %c0_12, %c0_13], %13 {strides = array<i32>} : memref<4x32x256xf32, #tpu.memory_space<vmem>>, vector<1x32x256xf32>,
    %c0_14 = arith.constant 0 : index
    %c0_15 = arith.constant 0 : index
    %c0_16 = arith.constant 0 : index
    %c0_17 = arith.constant 0 : index
    %15 = vector.load %arg1[%c0_14, %c0_15, %c0_16, %c0_17] : memref<1x4x32x256xf32, #tpu.memory_space<vmem>>, vector<1x2x32x256xf32>
    %16 = vector.shape_cast %15 : vector<1x2x32x256xf32> to vector<2x32x256xf32>
    %17 = vector.shape_cast %0 : vector<32x1xf32> to vector<1x32x1xf32>
    %18 = vector.broadcast %17 : vector<1x32x1xf32> to vector<2x32x256xf32>
    %19 = arith.mulf %18, %16 : vector<2x32x256xf32>
    %c0_18 = arith.constant 0 : index
    %c1_19 = arith.constant 1 : index
    %c0_20 = arith.constant 0 : index
    %c0_21 = arith.constant 0 : index
    %20 = vector.load %arg1[%c0_18, %c1_19, %c0_20, %c0_21] : memref<1x4x32x256xf32, #tpu.memory_space<vmem>>, vector<1x2x32x256xf32>
    %21 = vector.shape_cast %20 : vector<1x2x32x256xf32> to vector<2x32x256xf32>
    %22 = vector.shape_cast %1 : vector<32x1xf32> to vector<1x32x1xf32>
    %23 = vector.broadcast %22 : vector<1x32x1xf32> to vector<2x32x256xf32>
    %24 = arith.mulf %23, %21 : vector<2x32x256xf32>
    %25 = arith.addf %19, %24 : vector<2x32x256xf32>
    %c0_22 = arith.constant 0 : index
    %c2_23 = arith.constant 2 : index
    %c0_24 = arith.constant 0 : index
    %c0_25 = arith.constant 0 : index
    %26 = vector.load %arg1[%c0_22, %c2_23, %c0_24, %c0_25] : memref<1x4x32x256xf32, #tpu.memory_space<vmem>>, vector<1x2x32x256xf32>
    %27 = vector.shape_cast %26 : vector<1x2x32x256xf32> to vector<2x32x256xf32>
    %28 = vector.shape_cast %2 : vector<32x1xf32> to vector<1x32x1xf32>
    %29 = vector.broadcast %28 : vector<1x32x1xf32> to vector<2x32x256xf32>
    %30 = arith.mulf %29, %27 : vector<2x32x256xf32>
    %31 = arith.addf %25, %30 : vector<2x32x256xf32>
    %c1_26 = arith.constant 1 : index
    %c0_27 = arith.constant 0 : index
    %c0_28 = arith.constant 0 : index
    %32 = vector.load %arg16[%c1_26, %c0_27, %c0_28] : memref<4x32x256xf32, #tpu.memory_space<vmem>>, vector<2x32x256xf32>
    tpu.vector_store %arg16[%c1_26, %c0_27, %c0_28], %31 {strides = array<i32>} : memref<4x32x256xf32, #tpu.memory_space<vmem>>, vector<2x32x256xf32>,
    %c0_29 = arith.constant 0 : index
    %c2_30 = arith.constant 2 : index
    %c0_31 = arith.constant 0 : index
    %c0_32 = arith.constant 0 : index
    %33 = vector.load %arg1[%c0_29, %c2_30, %c0_31, %c0_32] : memref<1x4x32x256xf32, #tpu.memory_space<vmem>>, vector<1x1x32x256xf32>
    %34 = vector.shape_cast %33 : vector<1x1x32x256xf32> to vector<1x32x256xf32>
    %35 = vector.shape_cast %0 : vector<32x1xf32> to vector<1x32x1xf32>
    %36 = vector.broadcast %35 : vector<1x32x1xf32> to vector<1x32x256xf32>
    %37 = arith.mulf %36, %34 : vector<1x32x256xf32>
    %c0_33 = arith.constant 0 : index
    %c3 = arith.constant 3 : index
    %c0_34 = arith.constant 0 : index
    %c0_35 = arith.constant 0 : index
    %38 = vector.load %arg1[%c0_33, %c3, %c0_34, %c0_35] : memref<1x4x32x256xf32, #tpu.memory_space<vmem>>, vector<1x1x32x256xf32>
    %39 = vector.shape_cast %38 : vector<1x1x32x256xf32> to vector<1x32x256xf32>
    %40 = vector.shape_cast %1 : vector<32x1xf32> to vector<1x32x1xf32>
    %41 = vector.broadcast %40 : vector<1x32x1xf32> to vector<1x32x256xf32>
    %42 = arith.mulf %41, %39 : vector<1x32x256xf32>
    %43 = arith.addf %37, %42 : vector<1x32x256xf32>
    %c3_36 = arith.constant 3 : index
    %c0_37 = arith.constant 0 : index
    %c0_38 = arith.constant 0 : index
    %44 = vector.load %arg16[%c3_36, %c0_37, %c0_38] : memref<4x32x256xf32, #tpu.memory_space<vmem>>, vector<1x32x256xf32>
    tpu.vector_store %arg16[%c3_36, %c0_37, %c0_38], %43 {strides = array<i32>} : memref<4x32x256xf32, #tpu.memory_space<vmem>>, vector<1x32x256xf32>,
    %c0_39 = arith.constant 0 : index
    %c0_40 = arith.constant 0 : index
    %c0_41 = arith.constant 0 : index
    %45 = vector.load %arg16[%c0_39, %c0_40, %c0_41] : memref<4x32x256xf32, #tpu.memory_space<vmem>>, vector<4x32x256xf32>
    %46 = vector.shape_cast %45 : vector<4x32x256xf32> to vector<128x256xf32>
    %c0_42 = arith.constant 0 : index
    %c0_43 = arith.constant 0 : index
    %47 = vector.load %arg5[%c0_42, %c0_43] : memref<256x9xf32, #tpu.memory_space<vmem>>, vector<256x9xf32>
    %cst = arith.constant dense<0.000000e+00> : vector<128x9xf32>
    %48 = tpu.matmul %46, %47, %cst {dimension_numbers = #tpu.dot_dimension_numbers<[1], [0], [0], [1], [0, 0, 1, 1], [], []>} : vector<128x256xf32>, vector<256x9xf32>, vector<128x9xf32> -> vector<128x9xf32>
    %49 = vector.extract_strided_slice %48 {offsets = [0, 0], sizes = [32, 9], strides = [1, 1]} : vector<128x9xf32> to vector<32x9xf32>
    %50 = vector.extract_strided_slice %48 {offsets = [32, 0], sizes = [32, 9], strides = [1, 1]} : vector<128x9xf32> to vector<32x9xf32>
    %51 = vector.extract_strided_slice %48 {offsets = [64, 0], sizes = [32, 9], strides = [1, 1]} : vector<128x9xf32> to vector<32x9xf32>
    %52 = vector.extract_strided_slice %48 {offsets = [96, 0], sizes = [32, 9], strides = [1, 1]} : vector<128x9xf32> to vector<32x9xf32>
    %53 = vector.extract_strided_slice %49 {offsets = [0, 0], sizes = [32, 1], strides = [1, 1]} : vector<32x9xf32> to vector<32x1xf32>
    %54 = vector.extract_strided_slice %50 {offsets = [0, 0], sizes = [32, 1], strides = [1, 1]} : vector<32x9xf32> to vector<32x1xf32>
    %55 = vector.extract_strided_slice %51 {offsets = [0, 0], sizes = [32, 1], strides = [1, 1]} : vector<32x9xf32> to vector<32x1xf32>
    %56 = vector.extract_strided_slice %52 {offsets = [0, 0], sizes = [32, 1], strides = [1, 1]} : vector<32x9xf32> to vector<32x1xf32>
    %57 = tpu.concatenate %53, %54, %55, %56 in 1 : vector<32x1xf32>, vector<32x1xf32>, vector<32x1xf32>, vector<32x1xf32> -> vector<32x4xf32>
    %cst_44 = arith.constant 3.906250e-03 : f32
    %58 = vector.broadcast %cst_44 : f32 to vector<32x4xf32>
    %59 = arith.mulf %57, %58 : vector<32x4xf32>
    %c0_45 = arith.constant 0 : index
    %c0_46 = arith.constant 0 : index
    %60 = vector.load %arg6[%c0_45, %c0_46] : memref<2x32xf32, #tpu.memory_space<vmem>>, vector<2x32xf32>
    %cst_47 = arith.constant dense<0.000000e+00> : vector<2x4xf32>
    %61 = tpu.matmul %60, %59, %cst_47 {dimension_numbers = #tpu.dot_dimension_numbers<[1], [0], [0], [1], [0, 0, 1, 1], [], []>} : vector<2x32xf32>, vector<32x4xf32>, vector<2x4xf32> -> vector<2x4xf32>
    %cst_48 = arith.constant 0.000000e+00 : f32
    %62 = vector.broadcast %cst_48 : f32 to vector<2x1xf32>
    %63 = tpu.concatenate %62, %61, %62 in 1 : vector<2x1xf32>, vector<2x4xf32>, vector<2x1xf32> -> vector<2x6xf32>
    %c0_49 = arith.constant 0 : index
    %c0_50 = arith.constant 0 : index
    %c0_51 = arith.constant 0 : index
    %64 = vector.load %arg7[%c0_49, %c0_50, %c0_51] : memref<3x2x2xf32, #tpu.memory_space<vmem>>, vector<1x2x2xf32>
    %65 = vector.shape_cast %64 : vector<1x2x2xf32> to vector<2x2xf32>
    %66 = vector.extract_strided_slice %63 {offsets = [0, 0], sizes = [2, 4], strides = [1, 1]} : vector<2x6xf32> to vector<2x4xf32>
    %cst_52 = arith.constant dense<0.000000e+00> : vector<2x4xf32>
    %67 = tpu.matmul %65, %66, %cst_52 {dimension_numbers = #tpu.dot_dimension_numbers<[1], [0], [0], [1], [0, 0, 1, 1], [], []>} : vector<2x2xf32>, vector<2x4xf32>, vector<2x4xf32> -> vector<2x4xf32>
    %c1_53 = arith.constant 1 : index
    %c0_54 = arith.constant 0 : index
    %c0_55 = arith.constant 0 : index
    %68 = vector.load %arg7[%c1_53, %c0_54, %c0_55] : memref<3x2x2xf32, #tpu.memory_space<vmem>>, vector<1x2x2xf32>
    %69 = vector.shape_cast %68 : vector<1x2x2xf32> to vector<2x2xf32>
    %70 = vector.extract_strided_slice %63 {offsets = [0, 1], sizes = [2, 4], strides = [1, 1]} : vector<2x6xf32> to vector<2x4xf32>
    %cst_56 = arith.constant dense<0.000000e+00> : vector<2x4xf32>
    %71 = tpu.matmul %69, %70, %cst_56 {dimension_numbers = #tpu.dot_dimension_numbers<[1], [0], [0], [1], [0, 0, 1, 1], [], []>} : vector<2x2xf32>, vector<2x4xf32>, vector<2x4xf32> -> vector<2x4xf32>
    %72 = arith.addf %67, %71 : vector<2x4xf32>
    %c2_57 = arith.constant 2 : index
    %c0_58 = arith.constant 0 : index
    %c0_59 = arith.constant 0 : index
    %73 = vector.load %arg7[%c2_57, %c0_58, %c0_59] : memref<3x2x2xf32, #tpu.memory_space<vmem>>, vector<1x2x2xf32>
    %74 = vector.shape_cast %73 : vector<1x2x2xf32> to vector<2x2xf32>
    %75 = vector.extract_strided_slice %63 {offsets = [0, 2], sizes = [2, 4], strides = [1, 1]} : vector<2x6xf32> to vector<2x4xf32>
    %cst_60 = arith.constant dense<0.000000e+00> : vector<2x4xf32>
    %76 = tpu.matmul %74, %75, %cst_60 {dimension_numbers = #tpu.dot_dimension_numbers<[1], [0], [0], [1], [0, 0, 1, 1], [], []>} : vector<2x2xf32>, vector<2x4xf32>, vector<2x4xf32> -> vector<2x4xf32>
    %77 = arith.addf %72, %76 : vector<2x4xf32>
    %cst_61 = arith.constant 0.000000e+00 : f32
    %78 = vector.broadcast %cst_61 : f32 to vector<2x4xf32>
    %79 = arith.maximumf %77, %78 : vector<2x4xf32>
    %c0_62 = arith.constant 0 : index
    %c0_63 = arith.constant 0 : index
    %80 = vector.load %arg8[%c0_62, %c0_63] : memref<32x2xf32, #tpu.memory_space<vmem>>, vector<32x2xf32>
    %cst_64 = arith.constant dense<0.000000e+00> : vector<32x4xf32>
    %81 = tpu.matmul %80, %79, %cst_64 {dimension_numbers = #tpu.dot_dimension_numbers<[1], [0], [0], [1], [0, 0, 1, 1], [], []>} : vector<32x2xf32>, vector<2x4xf32>, vector<32x4xf32> -> vector<32x4xf32>
    %cst_65 = arith.constant 0.000000e+00 : f32
    %82 = vector.broadcast %cst_65 : f32 to vector<32x4xf32>
    %83 = arith.subf %82, %81 : vector<32x4xf32>
    %84 = math.exp %83 : vector<32x4xf32>
    %cst_66 = arith.constant 1.000000e+00 : f32
    %85 = vector.broadcast %cst_66 : f32 to vector<32x4xf32>
    %86 = arith.addf %85, %84 : vector<32x4xf32>
    %cst_67 = arith.constant 1.000000e+00 : f32
    %87 = vector.broadcast %cst_67 : f32 to vector<32x4xf32>
    %88 = arith.divf %87, %86 : vector<32x4xf32>
    %c0_68 = arith.constant 0 : index
    %c0_69 = arith.constant 0 : index
    %89 = vector.load %arg11[%c0_68, %c0_69] : memref<2x2xf32, #tpu.memory_space<vmem>>, vector<2x1xf32>
    %c0_70 = arith.constant 0 : index
    %c1_71 = arith.constant 1 : index
    %90 = vector.load %arg11[%c0_70, %c1_71] : memref<2x2xf32, #tpu.memory_space<vmem>>, vector<2x1xf32>
    %c0_72 = arith.constant 0 : index
    %c0_73 = arith.constant 0 : index
    %91 = vector.load %arg10[%c0_72, %c0_73] : memref<2x9xf32, #tpu.memory_space<vmem>>, vector<2x9xf32>
    %c0_74 = arith.constant 0 : index
    %c0_75 = arith.constant 0 : index
    %92 = vector.load %arg9[%c0_74, %c0_75] : memref<2x32xf32, #tpu.memory_space<vmem>>, vector<2x32xf32>
    %cst_76 = arith.constant dense<0.000000e+00> : vector<2x9xf32>
    %93 = tpu.matmul %92, %49, %cst_76 {dimension_numbers = #tpu.dot_dimension_numbers<[1], [0], [0], [1], [0, 0, 1, 1], [], []>} : vector<2x32xf32>, vector<32x9xf32>, vector<2x9xf32> -> vector<2x9xf32>
    %94 = vector.extract_strided_slice %93 {offsets = [0, 0], sizes = [2, 1], strides = [1, 1]} : vector<2x9xf32> to vector<2x1xf32>
    %cst_77 = arith.constant 3.906250e-03 : f32
    %95 = vector.broadcast %cst_77 : f32 to vector<2x1xf32>
    %96 = arith.mulf %94, %95 : vector<2x1xf32>
    %97 = arith.addf %96, %89 : vector<2x1xf32>
    %c0_78 = arith.constant 0 : index
    %c0_79 = arith.constant 0 : index
    %98 = vector.load %arg9[%c0_78, %c0_79] : memref<2x32xf32, #tpu.memory_space<vmem>>, vector<2x32xf32>
    %cst_80 = arith.constant dense<0.000000e+00> : vector<2x9xf32>
    %99 = tpu.matmul %98, %50, %cst_80 {dimension_numbers = #tpu.dot_dimension_numbers<[1], [0], [0], [1], [0, 0, 1, 1], [], []>} : vector<2x32xf32>, vector<32x9xf32>, vector<2x9xf32> -> vector<2x9xf32>
    %100 = vector.extract_strided_slice %99 {offsets = [0, 0], sizes = [2, 1], strides = [1, 1]} : vector<2x9xf32> to vector<2x1xf32>
    %cst_81 = arith.constant 3.906250e-03 : f32
    %101 = vector.broadcast %cst_81 : f32 to vector<2x1xf32>
    %102 = arith.mulf %100, %101 : vector<2x1xf32>
    %103 = arith.addf %102, %89 : vector<2x1xf32>
    %104 = arith.mulf %91, %99 : vector<2x9xf32>
    %cst_82 = arith.constant dense<0.000000e+00> : vector<2xf32>
    %105 = vector.multi_reduction <add>, %104, %cst_82 [1] : vector<2x9xf32> to vector<2xf32>
    %106 = vector.shape_cast %105 : vector<2xf32> to vector<2x1xf32>
    %107 = arith.addf %106, %90 : vector<2x1xf32>
    %cst_83 = arith.constant 3.906250e-03 : f32
    %108 = vector.broadcast %cst_83 : f32 to vector<2x1xf32>
    %109 = arith.mulf %107, %108 : vector<2x1xf32>
    %c0_84 = arith.constant 0 : index
    %c0_85 = arith.constant 0 : index
    %110 = vector.load %arg9[%c0_84, %c0_85] : memref<2x32xf32, #tpu.memory_space<vmem>>, vector<2x32xf32>
    %cst_86 = arith.constant dense<0.000000e+00> : vector<2x9xf32>
    %111 = tpu.matmul %110, %51, %cst_86 {dimension_numbers = #tpu.dot_dimension_numbers<[1], [0], [0], [1], [0, 0, 1, 1], [], []>} : vector<2x32xf32>, vector<32x9xf32>, vector<2x9xf32> -> vector<2x9xf32>
    %112 = vector.extract_strided_slice %111 {offsets = [0, 0], sizes = [2, 1], strides = [1, 1]} : vector<2x9xf32> to vector<2x1xf32>
    %cst_87 = arith.constant 3.906250e-03 : f32
    %113 = vector.broadcast %cst_87 : f32 to vector<2x1xf32>
    %114 = arith.mulf %112, %113 : vector<2x1xf32>
    %115 = arith.addf %114, %89 : vector<2x1xf32>
    %116 = arith.mulf %91, %111 : vector<2x9xf32>
    %cst_88 = arith.constant dense<0.000000e+00> : vector<2xf32>
    %117 = vector.multi_reduction <add>, %116, %cst_88 [1] : vector<2x9xf32> to vector<2xf32>
    %118 = vector.shape_cast %117 : vector<2xf32> to vector<2x1xf32>
    %119 = arith.addf %118, %90 : vector<2x1xf32>
    %cst_89 = arith.constant 3.906250e-03 : f32
    %120 = vector.broadcast %cst_89 : f32 to vector<2x1xf32>
    %121 = arith.mulf %119, %120 : vector<2x1xf32>
    %c0_90 = arith.constant 0 : index
    %c0_91 = arith.constant 0 : index
    %122 = vector.load %arg9[%c0_90, %c0_91] : memref<2x32xf32, #tpu.memory_space<vmem>>, vector<2x32xf32>
    %cst_92 = arith.constant dense<0.000000e+00> : vector<2x9xf32>
    %123 = tpu.matmul %122, %52, %cst_92 {dimension_numbers = #tpu.dot_dimension_numbers<[1], [0], [0], [1], [0, 0, 1, 1], [], []>} : vector<2x32xf32>, vector<32x9xf32>, vector<2x9xf32> -> vector<2x9xf32>
    %124 = arith.mulf %91, %123 : vector<2x9xf32>
    %cst_93 = arith.constant dense<0.000000e+00> : vector<2xf32>
    %125 = vector.multi_reduction <add>, %124, %cst_93 [1] : vector<2x9xf32> to vector<2xf32>
    %126 = vector.shape_cast %125 : vector<2xf32> to vector<2x1xf32>
    %127 = arith.addf %126, %90 : vector<2x1xf32>
    %cst_94 = arith.constant 3.906250e-03 : f32
    %128 = vector.broadcast %cst_94 : f32 to vector<2x1xf32>
    %129 = arith.mulf %127, %128 : vector<2x1xf32>
    %130 = arith.subf %109, %97 : vector<2x1xf32>
    %131 = arith.subf %121, %103 : vector<2x1xf32>
    %132 = arith.subf %129, %115 : vector<2x1xf32>
    %cst_95 = arith.constant 0.000000e+00 : f32
    %133 = vector.broadcast %cst_95 : f32 to vector<2x1xf32>
    %134 = tpu.concatenate %130, %131, %132, %133 in 1 : vector<2x1xf32>, vector<2x1xf32>, vector<2x1xf32>, vector<2x1xf32> -> vector<2x4xf32>
    %c0_96 = arith.constant 0 : index
    %c0_97 = arith.constant 0 : index
    %135 = vector.load %arg12[%c0_96, %c0_97] : memref<32x2xf32, #tpu.memory_space<vmem>>, vector<32x2xf32>
    %cst_98 = arith.constant dense<0.000000e+00> : vector<32x4xf32>
    %136 = tpu.matmul %135, %134, %cst_98 {dimension_numbers = #tpu.dot_dimension_numbers<[1], [0], [0], [1], [0, 0, 1, 1], [], []>} : vector<32x2xf32>, vector<2x4xf32>, vector<32x4xf32> -> vector<32x4xf32>
    %cst_99 = arith.constant 0.000000e+00 : f32
    %137 = vector.broadcast %cst_99 : f32 to vector<32x4xf32>
    %138 = arith.subf %137, %136 : vector<32x4xf32>
    %139 = math.exp %138 : vector<32x4xf32>
    %cst_100 = arith.constant 1.000000e+00 : f32
    %140 = vector.broadcast %cst_100 : f32 to vector<32x4xf32>
    %141 = arith.addf %140, %139 : vector<32x4xf32>
    %cst_101 = arith.constant 1.000000e+00 : f32
    %142 = vector.broadcast %cst_101 : f32 to vector<32x4xf32>
    %143 = arith.divf %142, %141 : vector<32x4xf32>
    %cst_102 = arith.constant 0.000000e+00 : f32
    %144 = vector.broadcast %cst_102 : f32 to vector<1x290xf32>
    %c0_103 = arith.constant 0 : index
    %c0_104 = arith.constant 0 : index
    %145 = vector.load %arg17[%c0_103, %c0_104] : memref<6x290xf32, #tpu.memory_space<vmem>>, vector<1x290xf32>
    tpu.vector_store %arg17[%c0_103, %c0_104], %144 {strides = array<i32>} : memref<6x290xf32, #tpu.memory_space<vmem>>, vector<1x290xf32>,
    %cst_105 = arith.constant 0.000000e+00 : f32
    %146 = vector.broadcast %cst_105 : f32 to vector<1x290xf32>
    %c5 = arith.constant 5 : index
    %c0_106 = arith.constant 0 : index
    %147 = vector.load %arg17[%c5, %c0_106] : memref<6x290xf32, #tpu.memory_space<vmem>>, vector<1x290xf32>
    tpu.vector_store %arg17[%c5, %c0_106], %146 {strides = array<i32>} : memref<6x290xf32, #tpu.memory_space<vmem>>, vector<1x290xf32>,
    %cst_107 = arith.constant 0.000000e+00 : f32
    %148 = vector.broadcast %cst_107 : f32 to vector<4x17xf32>
    %c1_108 = arith.constant 1 : index
    %c0_109 = arith.constant 0 : index
    %149 = vector.load %arg17[%c1_108, %c0_109] : memref<6x290xf32, #tpu.memory_space<vmem>>, vector<4x17xf32>
    tpu.vector_store %arg17[%c1_108, %c0_109], %148 {strides = array<i32>} : memref<6x290xf32, #tpu.memory_space<vmem>>, vector<4x17xf32>,
    %cst_110 = arith.constant 0.000000e+00 : f32
    %150 = vector.broadcast %cst_110 : f32 to vector<4x17xf32>
    %c1_111 = arith.constant 1 : index
    %c273 = arith.constant 273 : index
    %151 = vector.load %arg17[%c1_111, %c273] : memref<6x290xf32, #tpu.memory_space<vmem>>, vector<4x17xf32>
    tpu.vector_store %arg17[%c1_111, %c273], %150 {strides = array<i32>} : memref<6x290xf32, #tpu.memory_space<vmem>>, vector<4x17xf32>,
    %cst_112 = arith.constant 3.125000e-02 : f32
    %152 = vector.broadcast %cst_112 : f32 to vector<1x32xf32>
    %c0_113 = arith.constant 0 : index
    %c0_114 = arith.constant 0 : index
    %c0_115 = arith.constant 0 : index
    %153 = vector.load %arg16[%c0_113, %c0_114, %c0_115] : memref<4x32x256xf32, #tpu.memory_space<vmem>>, vector<1x32x256xf32>
    %154 = vector.shape_cast %153 : vector<1x32x256xf32> to vector<32x256xf32>
    %cst_116 = arith.constant dense<0.000000e+00> : vector<1x256xf32>
    %155 = tpu.matmul %152, %154, %cst_116 {dimension_numbers = #tpu.dot_dimension_numbers<[1], [0], [0], [1], [0, 0, 1, 1], [], []>} : vector<1x32xf32>, vector<32x256xf32>, vector<1x256xf32> -> vector<1x256xf32>
    %c1_117 = arith.constant 1 : index
    %c17 = arith.constant 17 : index
    %156 = vector.load %arg17[%c1_117, %c17] : memref<6x290xf32, #tpu.memory_space<vmem>>, vector<1x256xf32>
    tpu.vector_store %arg17[%c1_117, %c17], %155 {strides = array<i32>} : memref<6x290xf32, #tpu.memory_space<vmem>>, vector<1x256xf32>,
    %c1_118 = arith.constant 1 : index
    %c0_119 = arith.constant 0 : index
    %c0_120 = arith.constant 0 : index
    %157 = vector.load %arg16[%c1_118, %c0_119, %c0_120] : memref<4x32x256xf32, #tpu.memory_space<vmem>>, vector<1x32x256xf32>
    %158 = vector.shape_cast %157 : vector<1x32x256xf32> to vector<32x256xf32>
    %cst_121 = arith.constant dense<0.000000e+00> : vector<1x256xf32>
    %159 = tpu.matmul %152, %158, %cst_121 {dimension_numbers = #tpu.dot_dimension_numbers<[1], [0], [0], [1], [0, 0, 1, 1], [], []>} : vector<1x32xf32>, vector<32x256xf32>, vector<1x256xf32> -> vector<1x256xf32>
    %c2_122 = arith.constant 2 : index
    %c17_123 = arith.constant 17 : index
    %160 = vector.load %arg17[%c2_122, %c17_123] : memref<6x290xf32, #tpu.memory_space<vmem>>, vector<1x256xf32>
    tpu.vector_store %arg17[%c2_122, %c17_123], %159 {strides = array<i32>} : memref<6x290xf32, #tpu.memory_space<vmem>>, vector<1x256xf32>,
    %c2_124 = arith.constant 2 : index
    %c0_125 = arith.constant 0 : index
    %c0_126 = arith.constant 0 : index
    %161 = vector.load %arg16[%c2_124, %c0_125, %c0_126] : memref<4x32x256xf32, #tpu.memory_space<vmem>>, vector<1x32x256xf32>
    %162 = vector.shape_cast %161 : vector<1x32x256xf32> to vector<32x256xf32>
    %cst_127 = arith.constant dense<0.000000e+00> : vector<1x256xf32>
    %163 = tpu.matmul %152, %162, %cst_127 {dimension_numbers = #tpu.dot_dimension_numbers<[1], [0], [0], [1], [0, 0, 1, 1], [], []>} : vector<1x32xf32>, vector<32x256xf32>, vector<1x256xf32> -> vector<1x256xf32>
    %c3_128 = arith.constant 3 : index
    %c17_129 = arith.constant 17 : index
    %164 = vector.load %arg17[%c3_128, %c17_129] : memref<6x290xf32, #tpu.memory_space<vmem>>, vector<1x256xf32>
    tpu.vector_store %arg17[%c3_128, %c17_129], %163 {strides = array<i32>} : memref<6x290xf32, #tpu.memory_space<vmem>>, vector<1x256xf32>,
    %c3_130 = arith.constant 3 : index
    %c0_131 = arith.constant 0 : index
    %c0_132 = arith.constant 0 : index
    %165 = vector.load %arg16[%c3_130, %c0_131, %c0_132] : memref<4x32x256xf32, #tpu.memory_space<vmem>>, vector<1x32x256xf32>
    %166 = vector.shape_cast %165 : vector<1x32x256xf32> to vector<32x256xf32>
    %cst_133 = arith.constant dense<0.000000e+00> : vector<1x256xf32>
    %167 = tpu.matmul %152, %166, %cst_133 {dimension_numbers = #tpu.dot_dimension_numbers<[1], [0], [0], [1], [0, 0, 1, 1], [], []>} : vector<1x32xf32>, vector<32x256xf32>, vector<1x256xf32> -> vector<1x256xf32>
    %c4 = arith.constant 4 : index
    %c17_134 = arith.constant 17 : index
    %168 = vector.load %arg17[%c4, %c17_134] : memref<6x290xf32, #tpu.memory_space<vmem>>, vector<1x256xf32>
    tpu.vector_store %arg17[%c4, %c17_134], %167 {strides = array<i32>} : memref<6x290xf32, #tpu.memory_space<vmem>>, vector<1x256xf32>,
    %cst_135 = arith.constant 0.000000e+00 : f32
    %169 = vector.broadcast %cst_135 : f32 to vector<4x256xf32>
    %cst_136 = arith.constant 0.000000e+00 : f32
    %170 = vector.broadcast %cst_136 : f32 to vector<4x256xf32>
    %c0_137 = arith.constant 0 : index
    %171 = memref.load %arg3[%c0_137] : memref<27xf32, #tpu.memory_space<smem>>
    %c0_138 = arith.constant 0 : index
    %c0_139 = arith.constant 0 : index
    %172 = vector.load %arg17[%c0_138, %c0_139] : memref<6x290xf32, #tpu.memory_space<vmem>>, vector<4x256xf32>
    %173 = vector.broadcast %171 : f32 to vector<4x256xf32>
    %174 = arith.mulf %173, %172 : vector<4x256xf32>
    %175 = arith.addf %170, %174 : vector<4x256xf32>
    %c3_140 = arith.constant 3 : index
    %176 = memref.load %arg3[%c3_140] : memref<27xf32, #tpu.memory_space<smem>>
    %c0_141 = arith.constant 0 : index
    %c16 = arith.constant 16 : index
    %177 = vector.load %arg17[%c0_141, %c16] : memref<6x290xf32, #tpu.memory_space<vmem>>, vector<4x256xf32>
    %178 = vector.broadcast %176 : f32 to vector<4x256xf32>
    %179 = arith.mulf %178, %177 : vector<4x256xf32>
    %180 = arith.addf %175, %179 : vector<4x256xf32>
    %c6 = arith.constant 6 : index
    %181 = memref.load %arg3[%c6] : memref<27xf32, #tpu.memory_space<smem>>
    %c0_142 = arith.constant 0 : index
    %c32 = arith.constant 32 : index
    %182 = vector.load %arg17[%c0_142, %c32] : memref<6x290xf32, #tpu.memory_space<vmem>>, vector<4x256xf32>
    %183 = vector.broadcast %181 : f32 to vector<4x256xf32>
    %184 = arith.mulf %183, %182 : vector<4x256xf32>
    %185 = arith.addf %180, %184 : vector<4x256xf32>
    %c9 = arith.constant 9 : index
    %186 = memref.load %arg3[%c9] : memref<27xf32, #tpu.memory_space<smem>>
    %c1_143 = arith.constant 1 : index
    %c0_144 = arith.constant 0 : index
    %187 = vector.load %arg17[%c1_143, %c0_144] : memref<6x290xf32, #tpu.memory_space<vmem>>, vector<4x256xf32>
    %188 = vector.broadcast %186 : f32 to vector<4x256xf32>
    %189 = arith.mulf %188, %187 : vector<4x256xf32>
    %190 = arith.addf %185, %189 : vector<4x256xf32>
    %c12 = arith.constant 12 : index
    %191 = memref.load %arg3[%c12] : memref<27xf32, #tpu.memory_space<smem>>
    %c1_145 = arith.constant 1 : index
    %c16_146 = arith.constant 16 : index
    %192 = vector.load %arg17[%c1_145, %c16_146] : memref<6x290xf32, #tpu.memory_space<vmem>>, vector<4x256xf32>
    %193 = vector.broadcast %191 : f32 to vector<4x256xf32>
    %194 = arith.mulf %193, %192 : vector<4x256xf32>
    %195 = arith.addf %190, %194 : vector<4x256xf32>
    %c15 = arith.constant 15 : index
    %196 = memref.load %arg3[%c15] : memref<27xf32, #tpu.memory_space<smem>>
    %c1_147 = arith.constant 1 : index
    %c32_148 = arith.constant 32 : index
    %197 = vector.load %arg17[%c1_147, %c32_148] : memref<6x290xf32, #tpu.memory_space<vmem>>, vector<4x256xf32>
    %198 = vector.broadcast %196 : f32 to vector<4x256xf32>
    %199 = arith.mulf %198, %197 : vector<4x256xf32>
    %200 = arith.addf %195, %199 : vector<4x256xf32>
    %c18 = arith.constant 18 : index
    %201 = memref.load %arg3[%c18] : memref<27xf32, #tpu.memory_space<smem>>
    %c2_149 = arith.constant 2 : index
    %c0_150 = arith.constant 0 : index
    %202 = vector.load %arg17[%c2_149, %c0_150] : memref<6x290xf32, #tpu.memory_space<vmem>>, vector<4x256xf32>
    %203 = vector.broadcast %201 : f32 to vector<4x256xf32>
    %204 = arith.mulf %203, %202 : vector<4x256xf32>
    %205 = arith.addf %200, %204 : vector<4x256xf32>
    %c21 = arith.constant 21 : index
    %206 = memref.load %arg3[%c21] : memref<27xf32, #tpu.memory_space<smem>>
    %c2_151 = arith.constant 2 : index
    %c16_152 = arith.constant 16 : index
    %207 = vector.load %arg17[%c2_151, %c16_152] : memref<6x290xf32, #tpu.memory_space<vmem>>, vector<4x256xf32>
    %208 = vector.broadcast %206 : f32 to vector<4x256xf32>
    %209 = arith.mulf %208, %207 : vector<4x256xf32>
    %210 = arith.addf %205, %209 : vector<4x256xf32>
    %c24 = arith.constant 24 : index
    %211 = memref.load %arg3[%c24] : memref<27xf32, #tpu.memory_space<smem>>
    %c2_153 = arith.constant 2 : index
    %c32_154 = arith.constant 32 : index
    %212 = vector.load %arg17[%c2_153, %c32_154] : memref<6x290xf32, #tpu.memory_space<vmem>>, vector<4x256xf32>
    %213 = vector.broadcast %211 : f32 to vector<4x256xf32>
    %214 = arith.mulf %213, %212 : vector<4x256xf32>
    %215 = arith.addf %210, %214 : vector<4x256xf32>
    %c0_155 = arith.constant 0 : index
    %c0_156 = arith.constant 0 : index
    %216 = vector.load %arg4[%c0_155, %c0_156] : memref<2x256xf32, #tpu.memory_space<vmem>>, vector<1x256xf32>
    %217 = vector.broadcast %216 : vector<1x256xf32> to vector<4x256xf32>
    %218 = arith.mulf %215, %217 : vector<4x256xf32>
    %219 = arith.addf %169, %218 : vector<4x256xf32>
    %cst_157 = arith.constant 0.000000e+00 : f32
    %220 = vector.broadcast %cst_157 : f32 to vector<4x256xf32>
    %c1_158 = arith.constant 1 : index
    %221 = memref.load %arg3[%c1_158] : memref<27xf32, #tpu.memory_space<smem>>
    %c0_159 = arith.constant 0 : index
    %c1_160 = arith.constant 1 : index
    %222 = vector.load %arg17[%c0_159, %c1_160] : memref<6x290xf32, #tpu.memory_space<vmem>>, vector<4x256xf32>
    %223 = vector.broadcast %221 : f32 to vector<4x256xf32>
    %224 = arith.mulf %223, %222 : vector<4x256xf32>
    %225 = arith.addf %220, %224 : vector<4x256xf32>
    %c4_161 = arith.constant 4 : index
    %226 = memref.load %arg3[%c4_161] : memref<27xf32, #tpu.memory_space<smem>>
    %c0_162 = arith.constant 0 : index
    %c17_163 = arith.constant 17 : index
    %227 = vector.load %arg17[%c0_162, %c17_163] : memref<6x290xf32, #tpu.memory_space<vmem>>, vector<4x256xf32>
    %228 = vector.broadcast %226 : f32 to vector<4x256xf32>
    %229 = arith.mulf %228, %227 : vector<4x256xf32>
    %230 = arith.addf %225, %229 : vector<4x256xf32>
    %c7 = arith.constant 7 : index
    %231 = memref.load %arg3[%c7] : memref<27xf32, #tpu.memory_space<smem>>
    %c0_164 = arith.constant 0 : index
    %c33 = arith.constant 33 : index
    %232 = vector.load %arg17[%c0_164, %c33] : memref<6x290xf32, #tpu.memory_space<vmem>>, vector<4x256xf32>
    %233 = vector.broadcast %231 : f32 to vector<4x256xf32>
    %234 = arith.mulf %233, %232 : vector<4x256xf32>
    %235 = arith.addf %230, %234 : vector<4x256xf32>
    %c10 = arith.constant 10 : index
    %236 = memref.load %arg3[%c10] : memref<27xf32, #tpu.memory_space<smem>>
    %c1_165 = arith.constant 1 : index
    %c1_166 = arith.constant 1 : index
    %237 = vector.load %arg17[%c1_165, %c1_166] : memref<6x290xf32, #tpu.memory_space<vmem>>, vector<4x256xf32>
    %238 = vector.broadcast %236 : f32 to vector<4x256xf32>
    %239 = arith.mulf %238, %237 : vector<4x256xf32>
    %240 = arith.addf %235, %239 : vector<4x256xf32>
    %c13 = arith.constant 13 : index
    %241 = memref.load %arg3[%c13] : memref<27xf32, #tpu.memory_space<smem>>
    %c1_167 = arith.constant 1 : index
    %c17_168 = arith.constant 17 : index
    %242 = vector.load %arg17[%c1_167, %c17_168] : memref<6x290xf32, #tpu.memory_space<vmem>>, vector<4x256xf32>
    %243 = vector.broadcast %241 : f32 to vector<4x256xf32>
    %244 = arith.mulf %243, %242 : vector<4x256xf32>
    %245 = arith.addf %240, %244 : vector<4x256xf32>
    %c16_169 = arith.constant 16 : index
    %246 = memref.load %arg3[%c16_169] : memref<27xf32, #tpu.memory_space<smem>>
    %c1_170 = arith.constant 1 : index
    %c33_171 = arith.constant 33 : index
    %247 = vector.load %arg17[%c1_170, %c33_171] : memref<6x290xf32, #tpu.memory_space<vmem>>, vector<4x256xf32>
    %248 = vector.broadcast %246 : f32 to vector<4x256xf32>
    %249 = arith.mulf %248, %247 : vector<4x256xf32>
    %250 = arith.addf %245, %249 : vector<4x256xf32>
    %c19 = arith.constant 19 : index
    %251 = memref.load %arg3[%c19] : memref<27xf32, #tpu.memory_space<smem>>
    %c2_172 = arith.constant 2 : index
    %c1_173 = arith.constant 1 : index
    %252 = vector.load %arg17[%c2_172, %c1_173] : memref<6x290xf32, #tpu.memory_space<vmem>>, vector<4x256xf32>
    %253 = vector.broadcast %251 : f32 to vector<4x256xf32>
    %254 = arith.mulf %253, %252 : vector<4x256xf32>
    %255 = arith.addf %250, %254 : vector<4x256xf32>
    %c22 = arith.constant 22 : index
    %256 = memref.load %arg3[%c22] : memref<27xf32, #tpu.memory_space<smem>>
    %c2_174 = arith.constant 2 : index
    %c17_175 = arith.constant 17 : index
    %257 = vector.load %arg17[%c2_174, %c17_175] : memref<6x290xf32, #tpu.memory_space<vmem>>, vector<4x256xf32>
    %258 = vector.broadcast %256 : f32 to vector<4x256xf32>
    %259 = arith.mulf %258, %257 : vector<4x256xf32>
    %260 = arith.addf %255, %259 : vector<4x256xf32>
    %c25 = arith.constant 25 : index
    %261 = memref.load %arg3[%c25] : memref<27xf32, #tpu.memory_space<smem>>
    %c2_176 = arith.constant 2 : index
    %c33_177 = arith.constant 33 : index
    %262 = vector.load %arg17[%c2_176, %c33_177] : memref<6x290xf32, #tpu.memory_space<vmem>>, vector<4x256xf32>
    %263 = vector.broadcast %261 : f32 to vector<4x256xf32>
    %264 = arith.mulf %263, %262 : vector<4x256xf32>
    %265 = arith.addf %260, %264 : vector<4x256xf32>
    %266 = arith.addf %219, %265 : vector<4x256xf32>
    %cst_178 = arith.constant 0.000000e+00 : f32
    %267 = vector.broadcast %cst_178 : f32 to vector<4x256xf32>
    %c2_179 = arith.constant 2 : index
    %268 = memref.load %arg3[%c2_179] : memref<27xf32, #tpu.memory_space<smem>>
    %c0_180 = arith.constant 0 : index
    %c2_181 = arith.constant 2 : index
    %269 = vector.load %arg17[%c0_180, %c2_181] : memref<6x290xf32, #tpu.memory_space<vmem>>, vector<4x256xf32>
    %270 = vector.broadcast %268 : f32 to vector<4x256xf32>
    %271 = arith.mulf %270, %269 : vector<4x256xf32>
    %272 = arith.addf %267, %271 : vector<4x256xf32>
    %c5_182 = arith.constant 5 : index
    %273 = memref.load %arg3[%c5_182] : memref<27xf32, #tpu.memory_space<smem>>
    %c0_183 = arith.constant 0 : index
    %c18_184 = arith.constant 18 : index
    %274 = vector.load %arg17[%c0_183, %c18_184] : memref<6x290xf32, #tpu.memory_space<vmem>>, vector<4x256xf32>
    %275 = vector.broadcast %273 : f32 to vector<4x256xf32>
    %276 = arith.mulf %275, %274 : vector<4x256xf32>
    %277 = arith.addf %272, %276 : vector<4x256xf32>
    %c8 = arith.constant 8 : index
    %278 = memref.load %arg3[%c8] : memref<27xf32, #tpu.memory_space<smem>>
    %c0_185 = arith.constant 0 : index
    %c34 = arith.constant 34 : index
    %279 = vector.load %arg17[%c0_185, %c34] : memref<6x290xf32, #tpu.memory_space<vmem>>, vector<4x256xf32>
    %280 = vector.broadcast %278 : f32 to vector<4x256xf32>
    %281 = arith.mulf %280, %279 : vector<4x256xf32>
    %282 = arith.addf %277, %281 : vector<4x256xf32>
    %c11 = arith.constant 11 : index
    %283 = memref.load %arg3[%c11] : memref<27xf32, #tpu.memory_space<smem>>
    %c1_186 = arith.constant 1 : index
    %c2_187 = arith.constant 2 : index
    %284 = vector.load %arg17[%c1_186, %c2_187] : memref<6x290xf32, #tpu.memory_space<vmem>>, vector<4x256xf32>
    %285 = vector.broadcast %283 : f32 to vector<4x256xf32>
    %286 = arith.mulf %285, %284 : vector<4x256xf32>
    %287 = arith.addf %282, %286 : vector<4x256xf32>
    %c14 = arith.constant 14 : index
    %288 = memref.load %arg3[%c14] : memref<27xf32, #tpu.memory_space<smem>>
    %c1_188 = arith.constant 1 : index
    %c18_189 = arith.constant 18 : index
    %289 = vector.load %arg17[%c1_188, %c18_189] : memref<6x290xf32, #tpu.memory_space<vmem>>, vector<4x256xf32>
    %290 = vector.broadcast %288 : f32 to vector<4x256xf32>
    %291 = arith.mulf %290, %289 : vector<4x256xf32>
    %292 = arith.addf %287, %291 : vector<4x256xf32>
    %c17_190 = arith.constant 17 : index
    %293 = memref.load %arg3[%c17_190] : memref<27xf32, #tpu.memory_space<smem>>
    %c1_191 = arith.constant 1 : index
    %c34_192 = arith.constant 34 : index
    %294 = vector.load %arg17[%c1_191, %c34_192] : memref<6x290xf32, #tpu.memory_space<vmem>>, vector<4x256xf32>
    %295 = vector.broadcast %293 : f32 to vector<4x256xf32>
    %296 = arith.mulf %295, %294 : vector<4x256xf32>
    %297 = arith.addf %292, %296 : vector<4x256xf32>
    %c20 = arith.constant 20 : index
    %298 = memref.load %arg3[%c20] : memref<27xf32, #tpu.memory_space<smem>>
    %c2_193 = arith.constant 2 : index
    %c2_194 = arith.constant 2 : index
    %299 = vector.load %arg17[%c2_193, %c2_194] : memref<6x290xf32, #tpu.memory_space<vmem>>, vector<4x256xf32>
    %300 = vector.broadcast %298 : f32 to vector<4x256xf32>
    %301 = arith.mulf %300, %299 : vector<4x256xf32>
    %302 = arith.addf %297, %301 : vector<4x256xf32>
    %c23 = arith.constant 23 : index
    %303 = memref.load %arg3[%c23] : memref<27xf32, #tpu.memory_space<smem>>
    %c2_195 = arith.constant 2 : index
    %c18_196 = arith.constant 18 : index
    %304 = vector.load %arg17[%c2_195, %c18_196] : memref<6x290xf32, #tpu.memory_space<vmem>>, vector<4x256xf32>
    %305 = vector.broadcast %303 : f32 to vector<4x256xf32>
    %306 = arith.mulf %305, %304 : vector<4x256xf32>
    %307 = arith.addf %302, %306 : vector<4x256xf32>
    %c26 = arith.constant 26 : index
    %308 = memref.load %arg3[%c26] : memref<27xf32, #tpu.memory_space<smem>>
    %c2_197 = arith.constant 2 : index
    %c34_198 = arith.constant 34 : index
    %309 = vector.load %arg17[%c2_197, %c34_198] : memref<6x290xf32, #tpu.memory_space<vmem>>, vector<4x256xf32>
    %310 = vector.broadcast %308 : f32 to vector<4x256xf32>
    %311 = arith.mulf %310, %309 : vector<4x256xf32>
    %312 = arith.addf %307, %311 : vector<4x256xf32>
    %c1_199 = arith.constant 1 : index
    %c0_200 = arith.constant 0 : index
    %313 = vector.load %arg4[%c1_199, %c0_200] : memref<2x256xf32, #tpu.memory_space<vmem>>, vector<1x256xf32>
    %314 = vector.broadcast %313 : vector<1x256xf32> to vector<4x256xf32>
    %315 = arith.mulf %312, %314 : vector<4x256xf32>
    %316 = arith.addf %266, %315 : vector<4x256xf32>
    %cst_201 = arith.constant 0.000000e+00 : f32
    %317 = vector.broadcast %cst_201 : f32 to vector<4x256xf32>
    %318 = arith.subf %317, %316 : vector<4x256xf32>
    %319 = math.exp %318 : vector<4x256xf32>
    %cst_202 = arith.constant 1.000000e+00 : f32
    %320 = vector.broadcast %cst_202 : f32 to vector<4x256xf32>
    %321 = arith.addf %320, %319 : vector<4x256xf32>
    %cst_203 = arith.constant 1.000000e+00 : f32
    %322 = vector.broadcast %cst_203 : f32 to vector<4x256xf32>
    %323 = arith.divf %322, %321 : vector<4x256xf32>
    %c0_204 = arith.constant 0 : index
    %c0_205 = arith.constant 0 : index
    %324 = vector.load %arg13[%c0_204, %c0_205] : memref<32x32xf32, #tpu.memory_space<vmem>>, vector<32x32xf32>
    %c0_206 = arith.constant 0 : index
    %c0_207 = arith.constant 0 : index
    %325 = vector.load %arg14[%c0_206, %c0_207] : memref<32x1xf32, #tpu.memory_space<vmem>>, vector<32x1xf32>
    %cst_208 = arith.constant 3.000000e+00 : f32
    %326 = vector.broadcast %cst_208 : f32 to vector<32x4xf32>
    %327 = arith.addf %326, %88 : vector<32x4xf32>
    %328 = arith.addf %327, %143 : vector<32x4xf32>
    %329 = vector.extract_strided_slice %328 {offsets = [0, 0], sizes = [32, 1], strides = [1, 1]} : vector<32x4xf32> to vector<32x1xf32>
    %330 = vector.extract_strided_slice %323 {offsets = [0, 0], sizes = [1, 256], strides = [1, 1]} : vector<4x256xf32> to vector<1x256xf32>
    %331 = vector.broadcast %329 : vector<32x1xf32> to vector<32x256xf32>
    %332 = vector.broadcast %330 : vector<1x256xf32> to vector<32x256xf32>
    %333 = arith.addf %331, %332 : vector<32x256xf32>
    %c0_209 = arith.constant 0 : index
    %c0_210 = arith.constant 0 : index
    %c0_211 = arith.constant 0 : index
    %334 = vector.load %arg16[%c0_209, %c0_210, %c0_211] : memref<4x32x256xf32, #tpu.memory_space<vmem>>, vector<1x32x256xf32>
    %335 = vector.shape_cast %334 : vector<1x32x256xf32> to vector<32x256xf32>
    %336 = arith.mulf %335, %333 : vector<32x256xf32>
    %cst_212 = arith.constant dense<0.000000e+00> : vector<32x256xf32>
    %337 = tpu.matmul %324, %336, %cst_212 {dimension_numbers = #tpu.dot_dimension_numbers<[1], [0], [0], [1], [0, 0, 1, 1], [], []>} : vector<32x32xf32>, vector<32x256xf32>, vector<32x256xf32> -> vector<32x256xf32>
    %338 = vector.broadcast %325 : vector<32x1xf32> to vector<32x256xf32>
    %339 = arith.addf %337, %338 : vector<32x256xf32>
    %c0_213 = arith.constant 0 : index
    %c0_214 = arith.constant 0 : index
    %c0_215 = arith.constant 0 : index
    %c0_216 = arith.constant 0 : index
    %340 = vector.load %arg15[%c0_213, %c0_214, %c0_215, %c0_216] : memref<1x4x32x256xf32, #tpu.memory_space<vmem>>, vector<1x1x32x256xf32>
    %341 = vector.shape_cast %340 : vector<1x1x32x256xf32> to vector<32x256xf32>
    %342 = vector.shape_cast %339 : vector<32x256xf32> to vector<1x1x32x256xf32>
    tpu.vector_store %arg15[%c0_213, %c0_214, %c0_215, %c0_216], %342 {strides = array<i32>} : memref<1x4x32x256xf32, #tpu.memory_space<vmem>>, vector<1x1x32x256xf32>,
    %343 = vector.extract_strided_slice %328 {offsets = [0, 1], sizes = [32, 1], strides = [1, 1]} : vector<32x4xf32> to vector<32x1xf32>
    %344 = vector.extract_strided_slice %323 {offsets = [1, 0], sizes = [1, 256], strides = [1, 1]} : vector<4x256xf32> to vector<1x256xf32>
    %345 = vector.broadcast %343 : vector<32x1xf32> to vector<32x256xf32>
    %346 = vector.broadcast %344 : vector<1x256xf32> to vector<32x256xf32>
    %347 = arith.addf %345, %346 : vector<32x256xf32>
    %c1_217 = arith.constant 1 : index
    %c0_218 = arith.constant 0 : index
    %c0_219 = arith.constant 0 : index
    %348 = vector.load %arg16[%c1_217, %c0_218, %c0_219] : memref<4x32x256xf32, #tpu.memory_space<vmem>>, vector<1x32x256xf32>
    %349 = vector.shape_cast %348 : vector<1x32x256xf32> to vector<32x256xf32>
    %350 = arith.mulf %349, %347 : vector<32x256xf32>
    %cst_220 = arith.constant dense<0.000000e+00> : vector<32x256xf32>
    %351 = tpu.matmul %324, %350, %cst_220 {dimension_numbers = #tpu.dot_dimension_numbers<[1], [0], [0], [1], [0, 0, 1, 1], [], []>} : vector<32x32xf32>, vector<32x256xf32>, vector<32x256xf32> -> vector<32x256xf32>
    %352 = vector.broadcast %325 : vector<32x1xf32> to vector<32x256xf32>
    %353 = arith.addf %351, %352 : vector<32x256xf32>
    %c0_221 = arith.constant 0 : index
    %c1_222 = arith.constant 1 : index
    %c0_223 = arith.constant 0 : index
    %c0_224 = arith.constant 0 : index
    %354 = vector.load %arg15[%c0_221, %c1_222, %c0_223, %c0_224] : memref<1x4x32x256xf32, #tpu.memory_space<vmem>>, vector<1x1x32x256xf32>
    %355 = vector.shape_cast %354 : vector<1x1x32x256xf32> to vector<32x256xf32>
    %356 = vector.shape_cast %353 : vector<32x256xf32> to vector<1x1x32x256xf32>
    tpu.vector_store %arg15[%c0_221, %c1_222, %c0_223, %c0_224], %356 {strides = array<i32>} : memref<1x4x32x256xf32, #tpu.memory_space<vmem>>, vector<1x1x32x256xf32>,
    %357 = vector.extract_strided_slice %328 {offsets = [0, 2], sizes = [32, 1], strides = [1, 1]} : vector<32x4xf32> to vector<32x1xf32>
    %358 = vector.extract_strided_slice %323 {offsets = [2, 0], sizes = [1, 256], strides = [1, 1]} : vector<4x256xf32> to vector<1x256xf32>
    %359 = vector.broadcast %357 : vector<32x1xf32> to vector<32x256xf32>
    %360 = vector.broadcast %358 : vector<1x256xf32> to vector<32x256xf32>
    %361 = arith.addf %359, %360 : vector<32x256xf32>
    %c2_225 = arith.constant 2 : index
    %c0_226 = arith.constant 0 : index
    %c0_227 = arith.constant 0 : index
    %362 = vector.load %arg16[%c2_225, %c0_226, %c0_227] : memref<4x32x256xf32, #tpu.memory_space<vmem>>, vector<1x32x256xf32>
    %363 = vector.shape_cast %362 : vector<1x32x256xf32> to vector<32x256xf32>
    %364 = arith.mulf %363, %361 : vector<32x256xf32>
    %cst_228 = arith.constant dense<0.000000e+00> : vector<32x256xf32>
    %365 = tpu.matmul %324, %364, %cst_228 {dimension_numbers = #tpu.dot_dimension_numbers<[1], [0], [0], [1], [0, 0, 1, 1], [], []>} : vector<32x32xf32>, vector<32x256xf32>, vector<32x256xf32> -> vector<32x256xf32>
    %366 = vector.broadcast %325 : vector<32x1xf32> to vector<32x256xf32>
    %367 = arith.addf %365, %366 : vector<32x256xf32>
    %c0_229 = arith.constant 0 : index
    %c2_230 = arith.constant 2 : index
    %c0_231 = arith.constant 0 : index
    %c0_232 = arith.constant 0 : index
    %368 = vector.load %arg15[%c0_229, %c2_230, %c0_231, %c0_232] : memref<1x4x32x256xf32, #tpu.memory_space<vmem>>, vector<1x1x32x256xf32>
    %369 = vector.shape_cast %368 : vector<1x1x32x256xf32> to vector<32x256xf32>
    %370 = vector.shape_cast %367 : vector<32x256xf32> to vector<1x1x32x256xf32>
    tpu.vector_store %arg15[%c0_229, %c2_230, %c0_231, %c0_232], %370 {strides = array<i32>} : memref<1x4x32x256xf32, #tpu.memory_space<vmem>>, vector<1x1x32x256xf32>,
    %371 = vector.extract_strided_slice %328 {offsets = [0, 3], sizes = [32, 1], strides = [1, 1]} : vector<32x4xf32> to vector<32x1xf32>
    %372 = vector.extract_strided_slice %323 {offsets = [3, 0], sizes = [1, 256], strides = [1, 1]} : vector<4x256xf32> to vector<1x256xf32>
    %373 = vector.broadcast %371 : vector<32x1xf32> to vector<32x256xf32>
    %374 = vector.broadcast %372 : vector<1x256xf32> to vector<32x256xf32>
    %375 = arith.addf %373, %374 : vector<32x256xf32>
    %c3_233 = arith.constant 3 : index
    %c0_234 = arith.constant 0 : index
    %c0_235 = arith.constant 0 : index
    %376 = vector.load %arg16[%c3_233, %c0_234, %c0_235] : memref<4x32x256xf32, #tpu.memory_space<vmem>>, vector<1x32x256xf32>
    %377 = vector.shape_cast %376 : vector<1x32x256xf32> to vector<32x256xf32>
    %378 = arith.mulf %377, %375 : vector<32x256xf32>
    %cst_236 = arith.constant dense<0.000000e+00> : vector<32x256xf32>
    %379 = tpu.matmul %324, %378, %cst_236 {dimension_numbers = #tpu.dot_dimension_numbers<[1], [0], [0], [1], [0, 0, 1, 1], [], []>} : vector<32x32xf32>, vector<32x256xf32>, vector<32x256xf32> -> vector<32x256xf32>
    %380 = vector.broadcast %325 : vector<32x1xf32> to vector<32x256xf32>
    %381 = arith.addf %379, %380 : vector<32x256xf32>
    %c0_237 = arith.constant 0 : index
    %c3_238 = arith.constant 3 : index
    %c0_239 = arith.constant 0 : index
    %c0_240 = arith.constant 0 : index
    %382 = vector.load %arg15[%c0_237, %c3_238, %c0_239, %c0_240] : memref<1x4x32x256xf32, #tpu.memory_space<vmem>>, vector<1x1x32x256xf32>
    %383 = vector.shape_cast %382 : vector<1x1x32x256xf32> to vector<32x256xf32>
    %384 = vector.shape_cast %381 : vector<32x256xf32> to vector<1x1x32x256xf32>
    tpu.vector_store %arg15[%c0_237, %c3_238, %c0_239, %c0_240], %384 {strides = array<i32>} : memref<1x4x32x256xf32, #tpu.memory_space<vmem>>, vector<1x1x32x256xf32>,
    return
  }
  func.func @transform_0(%arg0: i32) -> (i32, i32, i32, i32) {
    %c0_i32 = arith.constant 0 : i32
    %c0_i32_0 = arith.constant 0 : i32
    %c0_i32_1 = arith.constant 0 : i32
    %c0_i32_2 = arith.constant 0 : i32
    return %arg0, %c0_i32, %c0_i32_0, %c0_i32_1 : i32, i32, i32, i32
  }
  func.func @transform_1(%arg0: i32) -> (i32, i32) {
    %c0_i32 = arith.constant 0 : i32
    %c0_i32_0 = arith.constant 0 : i32
    %c0_i32_1 = arith.constant 0 : i32
    return %c0_i32, %c0_i32_0 : i32, i32
  }
  func.func @transform_2(%arg0: i32) -> i32 {
    %c0_i32 = arith.constant 0 : i32
    %c0_i32_0 = arith.constant 0 : i32
    return %c0_i32 : i32
  }
  func.func @transform_3(%arg0: i32) -> (i32, i32) {
    %c0_i32 = arith.constant 0 : i32
    %c0_i32_0 = arith.constant 0 : i32
    %c0_i32_1 = arith.constant 0 : i32
    return %c0_i32, %c0_i32_0 : i32, i32
  }
  func.func @transform_4(%arg0: i32) -> (i32, i32) {
    %c0_i32 = arith.constant 0 : i32
    %c0_i32_0 = arith.constant 0 : i32
    %c0_i32_1 = arith.constant 0 : i32
    return %c0_i32, %c0_i32_0 : i32, i32
  }
  func.func @transform_5(%arg0: i32) -> (i32, i32) {
    %c0_i32 = arith.constant 0 : i32
    %c0_i32_0 = arith.constant 0 : i32
    %c0_i32_1 = arith.constant 0 : i32
    return %c0_i32, %c0_i32_0 : i32, i32
  }
  func.func @transform_6(%arg0: i32) -> (i32, i32, i32) {
    %c0_i32 = arith.constant 0 : i32
    %c0_i32_0 = arith.constant 0 : i32
    %c0_i32_1 = arith.constant 0 : i32
    %c0_i32_2 = arith.constant 0 : i32
    return %c0_i32, %c0_i32_0, %c0_i32_1 : i32, i32, i32
  }
  func.func @transform_7(%arg0: i32) -> (i32, i32) {
    %c0_i32 = arith.constant 0 : i32
    %c0_i32_0 = arith.constant 0 : i32
    %c0_i32_1 = arith.constant 0 : i32
    return %c0_i32, %c0_i32_0 : i32, i32
  }
  func.func @transform_8(%arg0: i32) -> (i32, i32) {
    %c0_i32 = arith.constant 0 : i32
    %c0_i32_0 = arith.constant 0 : i32
    %c0_i32_1 = arith.constant 0 : i32
    return %c0_i32, %c0_i32_0 : i32, i32
  }
  func.func @transform_9(%arg0: i32) -> (i32, i32) {
    %c0_i32 = arith.constant 0 : i32
    %c0_i32_0 = arith.constant 0 : i32
    %c0_i32_1 = arith.constant 0 : i32
    return %c0_i32, %c0_i32_0 : i32, i32
  }
  func.func @transform_10(%arg0: i32) -> (i32, i32) {
    %c0_i32 = arith.constant 0 : i32
    %c0_i32_0 = arith.constant 0 : i32
    %c0_i32_1 = arith.constant 0 : i32
    return %c0_i32, %c0_i32_0 : i32, i32
  }
  func.func @transform_11(%arg0: i32) -> (i32, i32) {
    %c0_i32 = arith.constant 0 : i32
    %c0_i32_0 = arith.constant 0 : i32
    %c0_i32_1 = arith.constant 0 : i32
    return %c0_i32, %c0_i32_0 : i32, i32
  }
  func.func @transform_12(%arg0: i32) -> (i32, i32) {
    %c0_i32 = arith.constant 0 : i32
    %c0_i32_0 = arith.constant 0 : i32
    %c0_i32_1 = arith.constant 0 : i32
    return %c0_i32, %c0_i32_0 : i32, i32
  }
  func.func @transform_13(%arg0: i32) -> (i32, i32) {
    %c0_i32 = arith.constant 0 : i32
    %c0_i32_0 = arith.constant 0 : i32
    %c0_i32_1 = arith.constant 0 : i32
    return %c0_i32, %c0_i32_0 : i32, i32
  }
  func.func @transform_14(%arg0: i32) -> (i32, i32, i32, i32) {
    %c0_i32 = arith.constant 0 : i32
    %c0_i32_0 = arith.constant 0 : i32
    %c0_i32_1 = arith.constant 0 : i32
    %c0_i32_2 = arith.constant 0 : i32
    return %arg0, %c0_i32, %c0_i32_0, %c0_i32_1 : i32, i32, i32, i32
  }
}

</mosaic_0001>

<bundles_post_ra>
// kernel: action_forward.1
= control target key start
LH: loop header
LB: loop body
LE: loop exit
PB: predicated region body
PF: predicated region fallthrough
CT: control target
= control target key end

     0   :  { %19 = vsyncpa [#allocation5], 0  ;;  %s4463_s29 = smov 0   ;;  %s5697_s0 = inlined_call_operand.vmem [shape: f32[2,4,32,256], index: 0, kind: input, shape index: {}]   ;;  %s5698_s1 = inlined_call_operand.vmem [shape: f32[32,3], index: 1, kind: input, shape index: {}]   ;;  %s5699_s2 = inlined_call_operand.vmem [shape: f32[27], index: 2, kind: input, shape index: {}]   ;;  %s5700_s3 = inlined_call_operand.vmem [shape: f32[2,256], index: 3, kind: input, shape index: {}]   ;;  %s5701_s4 = inlined_call_operand.vmem [shape: f32[256,9], index: 4, kind: input, shape index: {}]   ;;  %s5702_s5 = inlined_call_operand.vmem [shape: f32[2,32], index: 5, kind: input, shape index: {}]   ;;  %s5703_s6 = inlined_call_operand.vmem [shape: f32[3,2,2], index: 6, kind: input, shape index: {}]   ;;  %s5704_s7 = inlined_call_operand.vmem [shape: f32[32,2], index: 7, kind: input, shape index: {}]   ;;  %s5705_s8 = inlined_call_operand.vmem [shape: f32[2,32], index: 8, kind: input, shape index: {}]   ;;  %s5706_s9 = inlined_call_operand.vmem [shape: f32[2,9], index: 9, kind: input, shape index: {}]   ;;  %s5707_s10 = inlined_call_operand.vmem [shape: f32[2,2], index: 10, kind: input, shape index: {}]   ;;  %s5708_s11 = inlined_call_operand.vmem [shape: f32[32,2], index: 11, kind: input, shape index: {}]   ;;  %s5709_s12 = inlined_call_operand.vmem [shape: f32[32,32], index: 12, kind: input, shape index: {}]   ;;  %s5710_s13 = inlined_call_operand.vmem [shape: f32[32,1], index: 13, kind: input, shape index: {}]   ;;  %s5711_s14 = inlined_call_operand.vmem [shape: f32[2,4,32,256], index: 14, kind: output, shape index: {}]  }
   0x1 LB: > { %s4469_s30 = sadd.s32 4294967295, %s4368_s29   ;;  %p3746_p0 = scmp.ge.s32.totalorder %s4368_s29, 1  ;;  %s4368_s29 = sphi %s4463_s29, %s25_s29  }
   0x2   : > { %p355_p1 = scmp.lt.s32.totalorder %s4368_s29, 3  ;;  %s371_s17 = sshll.u32 %s5699_s2, 4  ;;  %s372_s17 = int_to_ptr.vmem [resolvable:$true] %s371_s17 }
   0x3   : > { %p4254_p3 = scmp.eq.s32.totalorder %s4469_s30, 0  ;;  %s4343_s19 = scalar_lea.vmem %s372_s17, 16 }
   0x4   : > { %p4476_p2 = pnand %p3746_p0, %p355_p1  ;;  %p4344_p6 = scmp.ne.s32.totalorder %s372_s17, %s4343_s19 }
   0x5   : > { %p4351_p10 = scmp.lt.s32.totalorder %s372_s17, %s372_s17  ;;  %p4352_p11 = scmp.lt.s32.totalorder %s4343_s19, %s4343_s19 }
   0x6   : > { %p4250_p4 = pneg %p4476_p2 }
   0x7   : > { %p4353_p12 = por %p4352_p11, %p4351_p10 }
   0x8   : > { %p4251_p5 = pnand %p4254_p3, %p4250_p4 }
   0xa   : > { %p4345_p7 = pneg %p4251_p5 }
   0xc   : > { %p4346_p8 = pnand %p4345_p7, %p4344_p6 }
   0xe   : > { %p4347_p9 = pneg %p4346_p8 }
  0x10   : > { %p4354_p13 = pnand %p4353_p12, %p4347_p9 }
  0x12   : > { %4357 = shalt.err (!%p4354_p13)
}
  0x13   : > { %s4370_s20 = smov [#allocation4]   ;;  %425 = sbr.rel (%p4476_p2) target bundleno = 2748 (0xabc), region = 76 }
  0x14   : > { %4253 = dma.vmem_to_smem (!%p4251_p5), %s372_s17, 16, %s4370_s20, [#allocation5]  }
  0x1a   : > { %4363 = dma.done.wait (%p4254_p3), [#allocation5], 16  }
  0x1b   : > { %4365 = vsyncadd (%p4254_p3), [#allocation5], 4294967280 }
  0x1c   : > { %431 = sfence }
  0x1d   : > { %v4494_v0 = vld [vmem:[%s5698_s1 + $0x8] sm:$0xff]  ;;  %v4499_v1 = vld [vmem:[%s5698_s1] sm:$0xff]  ;;  %v5714_v2 = vmov 1   ;;  %v833_v8 = vld [vmem:[%s5701_s4 + $0x90] sm:$0xff]  ;;  %v5712_v17 = vmov 2   ;;  %v5716_v41 = vmov 0  }
  0x1e   : > { %4284 = vset.pattern.permute.xlu1 %v5714_v2  ;;  %4282 = vset.pattern.permute.xlu0 %v5714_v2  ;;  %v831_v3 = vld [vmem:[%s5701_s4 + $0x80] sm:$0xff]  ;;  %v832_v4 = vld [vmem:[%s5701_s4 + $0x88] sm:$0xff]  ;;  %v834_v10 = vld [vmem:[%s5701_s4 + $0x98] sm:$0xff]  ;;  %p472_p0 = scmp.lt.s32.totalorder %s4469_s30, 1  ;;  %s4374_s27 = smov 1   ;;  %vm4378_vm0 = vmmov 0  }
  0x1f   : > { %501 = vperm.xlu1 %4284, %v4494_v0   ;;  %496 = vperm.xlu0 %4282, %v4499_v1   ;;  %v4116_v5 = vpack.c.bf16 %v832_v4, %v831_v3  ;;  %v815_v6 = vld [vmem:[%s5701_s4] sm:$0xff]  ;;  %v816_v7 = vld [vmem:[%s5701_s4 + $0x8] sm:$0xff]  ;;  %v817_v11 = vld [vmem:[%s5701_s4 + $0x10] sm:$0xff]  ;;  %v4120_v13 = vpack.c.bf16 %v834_v10, %v833_v8  ;;  %s4375_s28 = smov 2   ;;  %s4377_s15 = smov 3   ;;  %vm1040_vm1 = vcmask 7168  }
  0x20   : > { %v4118_v9 = vpack.c.bf16 %v816_v7, %v815_v6  ;;  %v818_v12 = vld [vmem:[%s5701_s4 + $0x18] sm:$0xff]  ;;  %v835_v14 = vld [vmem:[%s5701_s4 + $0xa0] sm:$0xff]  ;;  %v836_v15 = vld [vmem:[%s5701_s4 + $0xa8] sm:$0xff]  ;;  %s5797_s30 = smov (!%p472_p0, %s4469_s30), 1  ;;  %vm1045_vm2 = vcmask 15360   ;;  %vm1050_vm3 = vcmask 23552  }
  0x21   : > { %4117 = vmatprep.subr.bf16.mxu0 %v4116_v5  ;;  %v4122_v16 = vpack.c.bf16 %v818_v12, %v817_v11  ;;  %v4124_v18 = vpack.c.bf16 %v836_v15, %v835_v14  ;;  %v819_v19 = vld [vmem:[%s5701_s4 + $0x20] sm:$0xff]  ;;  %v820_v20 = vld [vmem:[%s5701_s4 + $0x28] sm:$0xff]  ;;  %v837_v21 = vld [vmem:[%s5701_s4 + $0xb0] sm:$0xff]  ;;  %s3907_s23 = sshll.u32 %s5797_s30, 8  ;;  %vm1060_vm4 = vcmask 261120   ;;  %vm1139_vm5 = vcmask 39936  }
  0x22   : > { %4119 = vmatpush3.bf16.msra.mxu0 %v4118_v9  ;;  %v838_v22 = vld [vmem:[%s5701_s4 + $0xb8] sm:$0xff]  ;;  %v484_v23 = vld [vmem:[%s5698_s1 + $0x10] sm:$0xff]  ;;  %v4126_v24 = vpack.c.bf16 %v820_v20, %v819_v19  ;;  %v839_v28 = vld [vmem:[%s5701_s4 + $0xc0] sm:$0xff]  ;;  %s4627_s26 = scalar_lea.vmem %s5697_s0, %s3907_s23  ;;  %s4380_s18 = smov 126   ;;  %vm1150_vm6 = vcmask 1041408   ;;  %vm1658_vm7 = vcmask 66560  }
  0x23   : > { %4285 = vset.pattern.permute.xlu1 %v5712_v17  ;;  %4283 = vset.pattern.permute.xlu0 %v5712_v17  ;;  %v4128_v25 = vpack.c.bf16 %v838_v22, %v837_v21  ;;  %v821_v26 = vld [vmem:[%s5701_s4 + $0x30] sm:$0xff]  ;;  %v822_v27 = vld [vmem:[%s5701_s4 + $0x38] sm:$0xff]  ;;  %v840_v29 = vld [vmem:[%s5701_s4 + $0xc8] sm:$0xff]  ;;  %s4381_s19 = smov 127   ;;  %vm1981_vm8 = vcmask 135169   ;;  %vm1983_vm9 = vcmask 274569  }
  0x24   : > { %536 = vperm.xlu1 %4285, %v4494_v0   ;;  %532 = vperm.xlu0 %4283, %v4499_v1   ;;  %v485_v30 = vld [vmem:[%s5698_s1 + $0x18] sm:$0xff]  ;;  %v4130_v31 = vpack.c.bf16 %v822_v27, %v821_v26  ;;  %v4132_v32 = vpack.c.bf16 %v840_v29, %v839_v28  ;;  %v823_v33 = vld [vmem:[%s5701_s4 + $0x40] sm:$0xff]  ;;  %v824_v34 = vld [vmem:[%s5701_s4 + $0x48] sm:$0xff]  ;;  %s4384_s20 = smov 17   ;;  %vm2087_vm13 = vcmask 138240   ;;  %s3856_s21 = sld [smem:[#allocation4 + $0x5]] }
  0x25   : > { %4121 = vmatprep.subr.bf16.mxu0 %v4120_v13  ;;  %v841_v35 = vld [vmem:[%s5701_s4 + $0xd0] sm:$0xff]  ;;  %v842_v36 = vld [vmem:[%s5701_s4 + $0xd8] sm:$0xff]  ;;  %v4134_v37 = vpack.c.bf16 %v824_v34, %v823_v33  ;;  %v843_v42 = vld [vmem:[%s5701_s4 + $0xe0] sm:$0xff]  ;;  %s3847_s22 = sld [smem:[#allocation4 + $0x4]]  ;;  %s3848_s24 = sld [smem:[#allocation4 + $0x7]]  ;;  %vm2434_vm15 = vcmask 916480  }
  0x26   : > { %4123 = vmatpush3.bf16.msra.mxu0 %v4122_v16  ;;  %v4136_v38 = vpack.c.bf16 %v842_v36, %v841_v35  ;;  %v825_v39 = vld [vmem:[%s5701_s4 + $0x50] sm:$0xff]  ;;  %v826_v40 = vld [vmem:[%s5701_s4 + $0x58] sm:$0xff]  ;;  %v844_v43 = vld [vmem:[%s5701_s4 + $0xe8] sm:$0xff]  ;;  %s3857_s25 = sld [smem:[#allocation4 + $0x8]]  ;;  %s4386_s16 = smov 96  }
  0x27   : > { %4125 = vmatprep.subr.bf16.mxu0 %v4124_v18  ;;  %v4138_v44 = vpack.c.bf16 %v826_v40, %v825_v39  ;;  %v4140_v45 = vpack.c.bf16 %v844_v43, %v843_v42  ;;  %v827_v46 = vld [vmem:[%s5701_s4 + $0x60] sm:$0xff]  ;;  %v828_v47 = vld [vmem:[%s5701_s4 + $0x68] sm:$0xff]  ;;  %v845_v48 = vld [vmem:[%s5701_s4 + $0xf0] sm:$0xff]  ;;  %s3851_s17 = sld [smem:[#allocation4 + $0x10]] }
  0x28   : > { %4286 = vset.pattern.permute.xlu1 %v5714_v2  ;;  %540 = vperm.xlu0 %4283, %v484_v23   ;;  %v846_v49 = vld [vmem:[%s5701_s4 + $0xf8] sm:$0xff]  ;;  %v4142_v50 = vpack.c.bf16 %v828_v47, %v827_v46  ;;  %v829_v52 = vld [vmem:[%s5701_s4 + $0x70] sm:$0xff]  ;;  %v487_v57 = vld [vmem:[%s4627_s26 + $0x8] sm:$0xff] }
  0x29   : > { %506 = vperm.xlu1 %4286, %v484_v23   ;;  %v4144_v51 = vpack.c.bf16 %v846_v49, %v845_v48  ;;  %v830_v53 = vld [vmem:[%s5701_s4 + $0x78] sm:$0xff]  ;;  %v486_v58 = vld [vmem:[%s4627_s26] sm:$0xff]  ;;  %v4636_v59 = vld [vmem:[%s4627_s26 + $0x48] sm:$0xff] }
  0x2a   : > { %4127 = vmatpush3.bf16.msra.mxu0 %v4126_v24  ;;  %v4146_v54 = vpack.c.bf16 %v830_v53, %v829_v52  ;;  %v4644_v63 = vld [vmem:[%s4627_s26 + $0x40] sm:$0xff]  ;;  %v4658_v7 = vld [vmem:[%s4627_s26 + $0x68] sm:$0xff]  ;;  %v488_v11 = vld [vmem:[%s4627_s26 + $0x10] sm:$0xff] }
  0x2b   : > { %4129 = vmatprep.subr.bf16.mxu0 %v4128_v25  ;;  %v4667_v12 = vld [vmem:[%s4627_s26 + $0x50] sm:$0xff]  ;;  %v491_v13 = vld [vmem:[%s4627_s26 + $0x28] sm:$0xff]  ;;  %v490_v20 = vld [vmem:[%s4627_s26 + $0x20] sm:$0xff] }
  0x2c   : > { %544 = vperm.xlu0 %4283, %v485_v30   ;;  %v4683_v21 = vld [vmem:[%s4627_s26 + $0x60] sm:$0xff]  ;;  %v4689_v24 = vld [vmem:[%s4627_s26 + $0x78] sm:$0xff]  ;;  %v492_v33 = vld [vmem:[%s4627_s26 + $0x30] sm:$0xff] }
  0x2d   : > { %511 = vperm.xlu1 %4286, %v485_v30   ;;  %v493_v25 = vld [vmem:[%s4627_s26 + $0x38] sm:$0xff]  ;;  %v4708_v34 = vld [vmem:[%s4627_s26 + $0x70] sm:$0xff]  ;;  %v4731_v46 = vld [vmem:[%s4627_s26 + $0x88] sm:$0xff] }
  0x2e   : > { %4131 = vmatpush3.bf16.msra.mxu0 %v4130_v31  ;;  %v4743_v52 = vld [vmem:[%s4627_s26 + $0x80] sm:$0xff] }
  0x2f   : > { %4133 = vmatprep.subr.bf16.mxu0 %v4132_v32 }
  0x30   : > { %4288 = vset.pattern.permute.xlu0 %v5716_v41 }
  0x31   : > { %4287 = vset.pattern.permute.xlu1 %v5716_v41  ;;  %592 = vperm.xlu0 %4288, %v4494_v0   ;;  %v489_v0 = vld [vmem:[%s4627_s26 + $0x18] sm:$0xff] }
  0x32   : > { %588 = vperm.xlu1 %4287, %v4499_v1   ;;  %4135 = vmatpush3.bf16.msra.mxu0 %v4134_v37  ;;  %v4648_v1 = vld [vmem:[%s4627_s26 + $0x58] sm:$0xff] }
  0x33   : > { %4137 = vmatprep.subr.bf16.mxu0 %v4136_v38 }
  0x35   : > { %4289 = vset.pattern.permute.xlu0 %v5714_v2 }
  0x36   : > { %596 = vperm.xlu1 %4287, %v484_v23   ;;  %4139 = vmatpush3.bf16.msra.mxu0 %v4138_v44 }
  0x37   : > { %4141 = vmatprep.subr.bf16.mxu0 %v4140_v45 }
  0x3a   : > { %600 = vperm.xlu1 %4287, %v485_v30   ;;  %4143 = vmatpush3.bf16.msra.mxu0 %v4142_v50 }
  0x3b   : > { %4145 = vmatprep.subr.bf16.mxu0 %v4144_v51 }
  0x3e   : > { %4147 = vmatpush3.bf16.msra.mxu0 %v4146_v54 }
  0x9e   : > { %v4629_v55 = vpop.permute.xlu1 %501  ;;  %v4631_v56 = vpop.permute.xlu0 %496 }
  0x9f   : > { %v515_v62 = vmul.f32 %v4631_v56, %v487_v57  ;;  %v514_v4 = vmul.f32 %v4631_v56, %v486_v58  ;;  %v517_v10 = vmul.f32 %v4629_v55, %v489_v0  ;;  %v516_v22 = vmul.f32 %v4629_v55, %v488_v11 }
  0xa0   : > { %v636_v43 = vmul.f32 %v4636_v59, %v4631_v56  ;;  %v635_v48 = vmul.f32 %v4644_v63, %v4631_v56  ;;  %v638_v49 = vmul.f32 %v4648_v1, %v4629_v55 }
  0xa3   : > { %v4638_v60 = vpop.permute.xlu1 %536  ;;  %v4640_v61 = vpop.permute.xlu0 %532 }
  0xa4   : > { %v548_v3 = vmul.f32 %v4636_v59, %v4640_v61  ;;  %v547_v5 = vmul.f32 %v4644_v63, %v4640_v61  ;;  %v550_v6 = vmul.f32 %v4648_v1, %v4638_v60  ;;  %v549_v15 = vmul.f32 %v4667_v12, %v4638_v60 }
  0xa5   : > { %v685_v51 = vmul.f32 %v4731_v46, %v4640_v61 }
  0xa6   : > { %v4660_v8 = vadd.f32 %v548_v3, %v515_v62  ;;  %v4662_v9 = vadd.f32 %v547_v5, %v514_v4  ;;  %v4677_v18 = vadd.f32 %v550_v6, %v517_v10  ;;  %v4695_v27 = vadd.f32 %v549_v15, %v516_v22  ;;  %v4766_v22 = vld [vmem:[%s4627_s26 + $0xa8] sm:$0xff] }
  0xa7   : > { %v4670_v14 = vpop.permute.xlu0 %540  ;;  %v637_v5 = vmul.f32 %v4667_v12, %v4629_v55 }
  0xa8   : > { %v4674_v16 = vpop.permute.xlu1 %506  ;;  %911 = vmatprep.mubr.f32.mxu0 %v4660_v8  ;;  %v552_v19 = vmul.f32 %v4658_v7, %v4670_v14  ;;  %v551_v30 = vmul.f32 %v4683_v21, %v4670_v14 }
  0xa9   : > { %912 = vmatmul.mubr.f32.vlgmr.msra.gmra.mrb[0].mxu0 %v4662_v9  ;;  %v519_v23 = vmul.f32 %v4674_v16, %v491_v13  ;;  %v518_v29 = vmul.f32 %v4674_v16, %v490_v20  ;;  %v640_v15 = vmul.f32 %v4658_v7, %v4674_v16 }
  0xaa   : > { %916 = vmatprep.mubr.f32.mxu0 %v4677_v18 }
  0xab   : > { %v4693_v26 = vpop.permute.xlu0 %544  ;;  %v4697_v28 = vadd.f32 %v552_v19, %v519_v23  ;;  %v4713_v36 = vadd.f32 %v551_v30, %v518_v29  ;;  %v4773_v30 = vld [vmem:[%s4627_s26 + $0x90] sm:$0xff] }
  0xac   : > { %v4702_v31 = vpop.permute.xlu1 %511  ;;  %v554_v32 = vmul.f32 %v4689_v24, %v4693_v26  ;;  %v553_v39 = vmul.f32 %v4708_v34, %v4693_v26 }
  0xad   : > { %917 = vmatmul.mubr.f32.gmra.mrb[2].mxu0 %v4695_v27  ;;  %v521_v35 = vmul.f32 %v4702_v31, %v493_v25  ;;  %v520_v38 = vmul.f32 %v4702_v31, %v492_v33 }
  0xae   : > { %921 = vmatprep.mubr.f32.mxu0 %v4697_v28 }
  0xaf   : > { %v4715_v37 = vadd.f32 %v554_v32, %v521_v35  ;;  %v4738_v50 = vadd.f32 %v553_v39, %v520_v38  ;;  %v639_v38 = vmul.f32 %v4683_v21, %v4674_v16  ;;  %v4786_v39 = vld [vmem:[%s4627_s26 + $0xa0] sm:$0xff] }
  0xb0   : > { %v4720_v40 = vpop.permute.xlu0 %592 }
  0xb1   : > { %v4722_v42 = vpop.permute.xlu1 %588  ;;  %922 = vmatmul.mubr.f32.gmra.mrb[4].mxu0 %v4713_v36  ;;  %v606_v44 = vmul.f32 %v4720_v40, %v489_v0  ;;  %v605_v53 = vmul.f32 %v4720_v40, %v488_v11  ;;  %v4749_v0 = vld [vmem:[%s4627_s26 + $0x98] sm:$0xff] }
  0xb2   : > { %926 = vmatprep.mubr.f32.mxu0 %v4715_v37  ;;  %v604_v45 = vmul.f32 %v4722_v42, %v487_v57  ;;  %v603_v47 = vmul.f32 %v4722_v42, %v486_v58  ;;  %v684_v58 = vmul.f32 %v4743_v52, %v4640_v61  ;;  %v687_v4 = vmul.f32 %v4749_v0, %v4638_v60 }
  0xb3   : > { %v654_v62 = vadd.f32 %v638_v49, %v606_v44  ;;  %v653_v19 = vadd.f32 %v637_v5, %v605_v53  ;;  %v642_v44 = vmul.f32 %v4689_v24, %v4702_v31  ;;  %v611_v5 = vmul.f32 %v4644_v63, %v4722_v42 }
  0xb4   : > { %v652_v54 = vadd.f32 %v636_v43, %v604_v45  ;;  %v651_v57 = vadd.f32 %v635_v48, %v603_v47  ;;  %v4794_v48 = vld [vmem:[%s4627_s26 + $0xb8] sm:$0xff] }
  0xb5   : > { %v4751_v3 = vpop.permute.xlu1 %596  ;;  %927 = vmatmul.mubr.f32.gmra.mrb[6].mxu0 %v4738_v50  ;;  %v4770_v29 = vadd.f32 %v687_v4, %v654_v62  ;;  %v644_v62 = vmul.f32 %v4731_v46, %v4631_v56 }
  0xb6   : > { %v4758_v6 = vadd.f32 %v685_v51, %v652_v54  ;;  %v4760_v10 = vadd.f32 %v684_v58, %v651_v57  ;;  %v608_v11 = vmul.f32 %v4751_v3, %v491_v13  ;;  %v607_v23 = vmul.f32 %v4751_v3, %v490_v20  ;;  %v4810_v58 = vld [vmem:[%s4627_s26 + $0xb0] sm:$0xff] }
  0xb7   : > { %v686_v13 = vmul.f32 %v4773_v30, %v4638_v60  ;;  %v689_v20 = vmul.f32 %v4766_v22, %v4670_v14  ;;  %v612_v54 = vmul.f32 %v4636_v59, %v4722_v42  ;;  %v641_v57 = vmul.f32 %v4708_v34, %v4702_v31 }
  0xb8   : > { %931 = vmatprep.mubr.f32.mxu0 %v4758_v6  ;;  %v656_v32 = vadd.f32 %v640_v15, %v608_v11  ;;  %v655_v47 = vadd.f32 %v639_v38, %v607_v23  ;;  %v690_v23 = vmul.f32 %v4810_v58, %v4693_v26  ;;  %v646_v38 = vmul.f32 %v4749_v0, %v4629_v55 }
  0xb9   : > { %v4775_v35 = vpop.permute.xlu1 %600  ;;  %932 = vmatmul.mubr.f32.gmra.mrb[8].mxu0 %v4760_v10  ;;  %v4791_v45 = vadd.f32 %v686_v13, %v653_v19  ;;  %v660_v15 = vadd.f32 %v644_v62, %v612_v54  ;;  %v614_v19 = vmul.f32 %v4648_v1, %v4720_v40  ;;  %v643_v13 = vmul.f32 %v4743_v52, %v4631_v56 }
  0xba   : > { %936 = vmatprep.mubr.f32.mxu0 %v4770_v29  ;;  %v610_v43 = vmul.f32 %v4775_v35, %v493_v25  ;;  %v609_v49 = vmul.f32 %v4775_v35, %v492_v33  ;;  %v4797_v51 = vadd.f32 %v689_v20, %v656_v32  ;;  %v688_v25 = vmul.f32 %v4786_v39, %v4670_v14  ;;  %v3788_v32 = vld [vmem:[%s4627_s26 + $0xc8] sm:$0xff] }
  0xbb   : > { %v691_v33 = vmul.f32 %v4794_v48, %v4693_v26  ;;  %v693_v63 = vmul.f32 %v3788_v32, %v4640_v61  ;;  %v659_v1 = vadd.f32 %v643_v13, %v611_v5 }
  0xbc   : > { %v658_v53 = vadd.f32 %v642_v44, %v610_v43  ;;  %v4814_v59 = vadd.f32 %v688_v25, %v655_v47  ;;  %v657_v4 = vadd.f32 %v641_v57, %v609_v49  ;;  %v613_v43 = vmul.f32 %v4667_v12, %v4720_v40  ;;  %v3787_v47 = vld [vmem:[%s4627_s26 + $0xc0] sm:$0xff]  ;;  %v3790_v25 = vld [vmem:[%s4627_s26 + $0xd8] sm:$0xff] }
  0xbd   : > { %937 = vmatmul.mubr.f32.gmra.mrb[10].mxu0 %v4791_v45  ;;  %v4836_v44 = vadd.f32 %v693_v63, %v660_v15  ;;  %v662_v49 = vadd.f32 %v646_v38, %v614_v19  ;;  %v692_v54 = vmul.f32 %v3787_v47, %v4640_v61  ;;  %v645_v57 = vmul.f32 %v4773_v30, %v4629_v55  ;;  %v3789_v15 = vld [vmem:[%s4627_s26 + $0xd0] sm:$0xff] }
  0xbe   : > { %941 = vmatprep.mubr.f32.mxu0 %v4797_v51  ;;  %v4818_v11 = vadd.f32 %v691_v33, %v658_v53  ;;  %v4832_v20 = vadd.f32 %v690_v23, %v657_v4  ;;  %v616_v53 = vmul.f32 %v4658_v7, %v4751_v3  ;;  %v695_v12 = vmul.f32 %v3790_v25, %v4638_v60  ;;  %v3792_v7 = vld [vmem:[%s4627_s26 + $0xe8] sm:$0xff] }
  0xbf   : > { %5745 = vst [vmem:[#allocation7_spill] sm:$0xff] %v4836_v44  ;;  %v648_v33 = vmul.f32 %v4766_v22, %v4674_v16  ;;  %v4850_v62 = vadd.f32 %v692_v54, %v659_v1  ;;  %v661_v4 = vadd.f32 %v645_v57, %v613_v43  ;;  %v615_v61 = vmul.f32 %v4683_v21, %v4751_v3  ;;  %v3791_v21 = vld [vmem:[%s4627_s26 + $0xe0] sm:$0xff] }
  0xc0   : > { %v4855_v5 = vadd.f32 %v695_v12, %v662_v49  ;;  %v618_v23 = vmul.f32 %v4689_v24, %v4775_v35  ;;  %v694_v13 = vmul.f32 %v3789_v15, %v4638_v60  ;;  %v647_v63 = vmul.f32 %v4786_v39, %v4674_v16  ;;  %v3794_v24 = vld [vmem:[%s4627_s26 + $0xf8] sm:$0xff] }
  0xc1   : > { %942 = vmatmul.mubr.f32.gmra.mrb[12].mxu0 %v4814_v59  ;;  %5746 = vst [vmem:[#allocation8_spill] sm:$0xff] %v4850_v62  ;;  %v664_v19 = vadd.f32 %v648_v33, %v616_v53  ;;  %v697_v38 = vmul.f32 %v3792_v7, %v4670_v14  ;;  %v650_v1 = vmul.f32 %v4794_v48, %v4702_v31 }
  0xc2   : > { %946 = vmatprep.mubr.f32.mxu0 %v4818_v11  ;;  %5747 = vst [vmem:[#allocation9_spill] sm:$0xff] %v4855_v5  ;;  %v4869_v43 = vadd.f32 %v694_v13, %v661_v4  ;;  %v663_v49 = vadd.f32 %v647_v63, %v615_v61  ;;  %v617_v53 = vmul.f32 %v4708_v34, %v4775_v35  ;;  %v3793_v4 = vld [vmem:[%s4627_s26 + $0xf0] sm:$0xff]  ;;  %s3850_s26 = sld [smem:[#allocation4 + $0xd]] }
  0xc3   : > { %v4874_v60 = vadd.f32 %v697_v38, %v664_v19  ;;  %v666_v54 = vadd.f32 %v650_v1, %v618_v23  ;;  %v696_v57 = vmul.f32 %v3791_v21, %v4670_v14  ;;  %v649_v12 = vmul.f32 %v4810_v58, %v4702_v31 }
  0xc4   : > { %5748 = vst [vmem:[#allocation10_spill] sm:$0xff] %v4869_v43  ;;  %v699_v33 = vmul.f32 %v3794_v24, %v4693_v26  ;;  %v742_v34 = vmul.f32 %v4731_v46, %v4722_v42  ;;  %v698_v14 = vmul.f32 %v3793_v4, %v4693_v26  ;;  %v759_v19 = vmul.f32 %v3788_v32, %v4631_v56 }
  0xc5   : > { %947 = vmatmul.mubr.f32.gmra.mrb[14].mxu0 %v4832_v20  ;;  %5749 = vst [vmem:[#allocation11_spill] sm:$0xff] %v4874_v60  ;;  %v4883_v61 = vadd.f32 %v696_v57, %v663_v49  ;;  %v665_v13 = vadd.f32 %v649_v12, %v617_v53  ;;  %v741_v38 = vmul.f32 %v4743_v52, %v4722_v42 }
  0xc6   : > { %951 = vmatprep.mubr.f32.mxu0 %v4836_v44  ;;  %v4885_v63 = vadd.f32 %v699_v33, %v666_v54  ;;  %v4897_v1 = vadd.f32 %v759_v19, %v742_v34  ;;  %v744_v49 = vmul.f32 %v4749_v0, %v4720_v40  ;;  %v758_v46 = vmul.f32 %v3787_v47, %v4631_v56 }
  0xc7   : > { %5750 = vst [vmem:[#allocation12_spill] sm:$0xff] %v4883_v61  ;;  %v4893_v23 = vadd.f32 %v698_v14, %v665_v13  ;;  %v761_v26 = vmul.f32 %v3790_v25, %v4629_v55  ;;  %v743_v32 = vmul.f32 %v4773_v30, %v4720_v40  ;;  %v746_v42 = vmul.f32 %v4766_v22, %v4751_v3 }
  0xc8   : > { %5751 = vst [vmem:[#allocation13_spill] sm:$0xff] %v4885_v63  ;;  %5753 = vst [vmem:[#allocation15_spill] sm:$0xff] %v4897_v1  ;;  %v4905_v53 = vadd.f32 %v758_v46, %v741_v38  ;;  %v760_v52 = vmul.f32 %v3789_v15, %v4629_v55  ;;  %v763_v56 = vmul.f32 %v3792_v7, %v4674_v16 }
  0xc9   : > { %952 = vmatmul.mubr.f32.gmra.mrb[16].mxu0 %v4850_v62  ;;  %5752 = vst [vmem:[#allocation14_spill] sm:$0xff] %v4893_v23  ;;  %v4909_v54 = vadd.f32 %v761_v26, %v744_v49  ;;  %v745_v47 = vmul.f32 %v4786_v39, %v4751_v3  ;;  %v748_v40 = vmul.f32 %v4794_v48, %v4775_v35 }
  0xca   : > { %956 = vmatprep.mubr.f32.mxu0 %v4855_v5  ;;  %5754 = vst [vmem:[#allocation16_spill] sm:$0xff] %v4905_v53  ;;  %v4917_v0 = vadd.f32 %v760_v52, %v743_v32  ;;  %v4921_v25 = vadd.f32 %v763_v56, %v746_v42  ;;  %v762_v22 = vmul.f32 %v3791_v21, %v4674_v16 }
  0xcb   : > { %5755 = vst [vmem:[#allocation17_spill] sm:$0xff] %v4909_v54  ;;  %v765_v55 = vmul.f32 %v3794_v24, %v4702_v31  ;;  %v747_v7 = vmul.f32 %v4810_v58, %v4775_v35  ;;  %v764_v3 = vmul.f32 %v3793_v4, %v4702_v31 }
  0xcc   : > { %5756 = vst [vmem:[#allocation18_spill] sm:$0xff] %v4917_v0  ;;  %5757 = vst [vmem:[#allocation19_spill] sm:$0xff] %v4921_v25  ;;  %v4929_v30 = vadd.f32 %v762_v22, %v745_v47 }
  0xcd   : > { %957 = vmatmul.mubr.f32.gmra.mrb[18].mxu0 %v4869_v43  ;;  %v4933_v15 = vadd.f32 %v765_v55, %v748_v40  ;;  %v4938_v39 = vadd.f32 %v764_v3, %v747_v7 }
  0xce   : > { %961 = vmatprep.mubr.f32.mxu0 %v4874_v60  ;;  %5758 = vst [vmem:[#allocation20_spill] sm:$0xff] %v4929_v30 }
  0xcf   : > { %5759 = vst [vmem:[#allocation21_spill] sm:$0xff] %v4933_v15  ;;  %5760 = vst [vmem:[#allocation22_spill] sm:$0xff] %v4938_v39 }
  0xd1   : > { %962 = vmatmul.mubr.f32.gmra.mrb[20].mxu0 %v4883_v61 }
  0xd2   : > { %966 = vmatprep.mubr.f32.mxu0 %v4885_v63 }
  0xd5   : > { %967 = vmatmul.mubr.f32.gmra.mrb[22].mxu0 %v4893_v23 }
  0xd6   : > { %971 = vmatprep.mubr.f32.mxu0 %v4897_v1 }
  0xd9   : > { %972 = vmatmul.mubr.f32.gmra.mrb[24].mxu0 %v4905_v53 }
  0xda   : > { %976 = vmatprep.mubr.f32.mxu0 %v4909_v54 }
  0xdd   : > { %977 = vmatmul.mubr.f32.gmra.mrb[26].mxu0 %v4917_v0 }
  0xde   : > { %981 = vmatprep.mubr.f32.mxu0 %v4921_v25 }
  0xe1   : > { %982 = vmatmul.mubr.f32.gmra.mrb[28].mxu0 %v4929_v30 }
  0xe2   : > { %986 = vmatprep.mubr.f32.mxu0 %v4933_v15 }
  0xe5   : > { %987 = vmatmul.mubr.f32.gmra.mrb[30].mxu0 %v4938_v39 }
 0x17c   : > { %v3941_v16 = vpop.f32.mrb[0].mxu0 }
 0x17d   : > { %v3942_v48 = vpop.f32.mrb[1].mxu0 }
 0x17e   : > { %v4941_v21 = vadd.f32 %v3942_v48, %v3941_v16 }
 0x180   : > { %v3944_v24 = vpop.f32.mrb[2].mxu0 }
 0x181   : > { %v3945_v57 = vpop.f32.mrb[3].mxu0 }
 0x182   : > { %v4943_v12 = vadd.f32 %v3945_v57, %v3944_v24 }
 0x184   : > { %v3947_v35 = vpop.f32.mrb[4].mxu0 }
 0x185   : > { %v3948_v58 = vpop.f32.mrb[5].mxu0 }
 0x186   : > { %v4945_v33 = vadd.f32 %v3948_v58, %v3947_v35 }
 0x188   : > { %v3950_v13 = vpop.f32.mrb[6].mxu0 }
 0x189   : > { %v3951_v31 = vpop.f32.mrb[7].mxu0 }
 0x18a   : > { %v4947_v4 = vadd.f32 %v3951_v31, %v3950_v13 }
 0x18c   : > { %v3953_v34 = vpop.f32.mrb[8].mxu0 }
 0x18d   : > { %v3954_v14 = vpop.f32.mrb[9].mxu0 }
 0x18e   : > { %v4949_v19 = vadd.f32 %v3954_v14, %v3953_v34 }
 0x190   : > { %v3956_v38 = vpop.f32.mrb[10].mxu0  ;;  %996 = vrot.lane.b32.xlu0 %v4949_v19, %s4374_s27 }
 0x191   : > { %v3957_v49 = vpop.f32.mrb[11].mxu0 }
 0x192   : > { %v4953_v46 = vadd.f32 %v3957_v49, %v3956_v38 }
 0x194   : > { %v3959_v32 = vpop.f32.mrb[12].mxu0  ;;  %998 = vrot.lane.b32.xlu1 %v4953_v46, %s4374_s27 }
 0x195   : > { %v3960_v42 = vpop.f32.mrb[13].mxu0 }
 0x196   : > { %v4959_v52 = vadd.f32 %v3960_v42, %v3959_v32  ;;  %v5720_v42 = vmov 0.0|0.0  }
 0x197   : > { %4148 = vmatprep.subr.bf16.mxu1 %v5720_v42 }
 0x198   : > { %v3962_v56 = vpop.f32.mrb[14].mxu0  ;;  %1000 = vrot.lane.b32.xlu0 %v4959_v52, %s4374_s27 }
 0x199   : > { %v3963_v47 = vpop.f32.mrb[15].mxu0 }
 0x19a   : > { %v4963_v40 = vadd.f32 %v3963_v47, %v3962_v56 }
 0x19c   : > { %v3965_v55 = vpop.f32.mrb[16].mxu0  ;;  %1002 = vrot.lane.b32.xlu1 %v4963_v40, %s4374_s27 }
 0x19d   : > { %v3966_v7 = vpop.f32.mrb[17].mxu0 }
 0x19e   : > { %v4969_v3 = vadd.f32 %v3966_v7, %v3965_v55 }
 0x1a0   : > { %v3968_v16 = vpop.f32.mrb[18].mxu0  ;;  %1012 = vrot.lane.b32.xlu0 %v4969_v3, %s4375_s28 }
 0x1a1   : > { %v3969_v48 = vpop.f32.mrb[19].mxu0 }
 0x1a2   : > { %v4973_v24 = vadd.f32 %v3969_v48, %v3968_v16 }
 0x1a4   : > { %v3971_v35 = vpop.f32.mrb[20].mxu0  ;;  %1014 = vrot.lane.b32.xlu1 %v4973_v24, %s4375_s28 }
 0x1a5   : > { %v3972_v58 = vpop.f32.mrb[21].mxu0 }
 0x1a6   : > { %v4979_v13 = vadd.f32 %v3972_v58, %v3971_v35  ;;  %v5718_v58 = vmov 0.0  }
 0x1a7   : > { %4038 = vmatprep.mubr.msk.f32.mxu1 %vm4378_vm0, %v5718_v58  ;;  %3206 = vmatprep.mubr.f32.mxu0 %v5718_v58 }
 0x1a8   : > { %v3974_v31 = vpop.f32.mrb[22].mxu0  ;;  %1016 = vrot.lane.b32.xlu0 %v4979_v13, %s4375_s28 }
 0x1a9   : > { %v3975_v34 = vpop.f32.mrb[23].mxu0 }
 0x1aa   : > { %v4983_v14 = vadd.f32 %v3975_v34, %v3974_v31 }
 0x1ac   : > { %v3977_v49 = vpop.f32.mrb[24].mxu0  ;;  %1018 = vrot.lane.b32.xlu1 %v4983_v14, %s4375_s28 }
 0x1ad   : > { %v3978_v32 = vpop.f32.mrb[25].mxu0 }
 0x1ae   : > { %v4990_v56 = vadd.f32 %v3978_v32, %v3977_v49 }
 0x1b0   : > { %v3980_v47 = vpop.f32.mrb[26].mxu0  ;;  %1028 = vrot.lane.b32.xlu0 %v4990_v56, %s4377_s15 }
 0x1b1   : > { %v3981_v55 = vpop.f32.mrb[27].mxu0 }
 0x1b2   : > { %v4993_v7 = vadd.f32 %v3981_v55, %v3980_v47 }
 0x1b4   : > { %v3983_v48 = vpop.f32.mrb[28].mxu0  ;;  %1030 = vrot.lane.b32.xlu1 %v4993_v7, %s4377_s15 }
 0x1b5   : > { %v3984_v35 = vpop.f32.mrb[29].mxu0 }
 0x1b6   : > { %v5001_v31 = vadd.f32 %v3984_v35, %v3983_v48 }
 0x1b8   : > { %v3986_v34 = vpop.f32.mrb[30].mxu0  ;;  %1032 = vrot.lane.b32.xlu0 %v5001_v31, %s4377_s15 }
 0x1b9   : > { %v3987_v49 = vpop.f32.mrb[31].mxu0 }
 0x1ba   : > { %v5004_v32 = vadd.f32 %v3987_v49, %v3986_v34 }
 0x1bc   : > { %1034 = vrot.lane.b32.xlu1 %v5004_v32, %s4377_s15  ;;  %s3859_s15 = sld [smem:[#allocation4 + $0xe]] }
 0x202   : > { %v997_v55 = vpop.permute.xlu0 %996 }
 0x203   : > { %v1041_v34 = vsel %vm1040_vm1, %v4941_v21, %v997_v55 }
 0x206   : > { %v999_v17 = vpop.permute.xlu1 %998 }
 0x207   : > { %v1042_v47 = vsel %vm1040_vm1, %v4943_v12, %v999_v17 }
 0x20a   : > { %v1001_v2 = vpop.permute.xlu0 %1000 }
 0x20b   : > { %v1043_v0 = vsel %vm1040_vm1, %v4945_v33, %v1001_v2  ;;  %v1059_v2 = vld [vmem:[%s5702_s5] sm:$0x3] }
 0x20e   : > { %v1003_v41 = vpop.permute.xlu1 %1002 }
 0x20f   : > { %v1044_v17 = vsel %vm1040_vm1, %v4947_v4, %v1003_v41 }
 0x212   : > { %v1013_v16 = vpop.permute.xlu0 %1012 }
 0x213   : > { %v1046_v49 = vsel %vm1045_vm2, %v1041_v34, %v1013_v16  ;;  %v1141_v34 = vld [vmem:[%s5703_s6] sm:$0x3] }
 0x216   : > { %v1015_v38 = vpop.permute.xlu1 %1014 }
 0x217   : > { %v1047_v26 = vsel %vm1045_vm2, %v1042_v47, %v1015_v38  ;;  %v3812_v47 = vld [vmem:[%s5703_s6 + $0x2] sm:$0x3] }
 0x21a   : > { %v1017_v57 = vpop.permute.xlu0 %1016 }
 0x21b   : > { %v1048_v55 = vsel %vm1045_vm2, %v1043_v0, %v1017_v57  ;;  %v5762_v0 = vmov 0.0  }
 0x21c   : > { %1982 = vst.msk [vmem:[#allocation3] sm:$0x1e] %vm1981_vm8, %v5762_v0 }
 0x21d   : > { %1984 = vst.msk [vmem:[#allocation3 + $0x10] sm:$0x1e] %vm1983_vm9, %v5762_v0 }
 0x21e   : > { %v1019_v48 = vpop.permute.xlu1 %1018 }
 0x21f   : > { %v1049_v38 = vsel %vm1045_vm2, %v1044_v17, %v1019_v48  ;;  %v1379_v17 = vld [vmem:[%s5704_s7] sm:$0xff] }
 0x222   : > { %v1029_v35 = vpop.permute.xlu0 %1028 }
 0x223   : > { %v1051_v22 = vsel %vm1050_vm3, %v1046_v49, %v1029_v35  ;;  %v5761_v35 = vmov 0.0|0.0  }
 0x224   : > { %v1055_v39 = vmul.f32 0.00390625, %v1051_v22 }
 0x226   : > { %v1031_v58 = vpop.permute.xlu1 %1030 }
 0x227   : > { %v1052_v42 = vsel %vm1050_vm3, %v1047_v26, %v1031_v58 }
 0x228   : > { %v1056_v30 = vmul.f32 0.00390625, %v1052_v42 }
 0x22a   : > { %v1033_v15 = vpop.permute.xlu0 %1032  ;;  %v4149_v25 = vpack.c.bf16 %v1056_v30, %v1055_v39 }
 0x22b   : > { %v1053_v16 = vsel %vm1050_vm3, %v1048_v55, %v1033_v15  ;;  %v3817_v55 = vld [vmem:[%s5703_s6 + $0x4] sm:$0x3] }
 0x22c   : > { %4150 = vmatpush3.bf16.msra.mxu1 %v4149_v25  ;;  %v1057_v42 = vmul.f32 0.00390625, %v1053_v16 }
 0x22d   : > { %4151 = vmatprep.subr.bf16.mxu1 %v5761_v35 }
 0x22e   : > { %v1035_v26 = vpop.permute.xlu1 %1034 }
 0x22f   : > { %v1054_v22 = vsel %vm1050_vm3, %v1049_v38, %v1035_v26 }
 0x230   : > { %v1058_v30 = vmul.f32 0.00390625, %v1054_v22  ;;  %v1380_v22 = vld [vmem:[%s5704_s7 + $0x8] sm:$0xff] }
 0x232   : > { %v4152_v39 = vpack.c.bf16 %v1058_v30, %v1057_v42  ;;  %v1381_v42 = vld [vmem:[%s5704_s7 + $0x10] sm:$0xff]  ;;  %v4155_v30 = vpack.c.bf16 %v4943_v12, %v4941_v21  ;;  %v1509_v21 = vld [vmem:[%s5705_s8] sm:$0x3]  ;;  %v5763_v12 = vpack.c.bf16 %v4953_v46, %v4949_v19  ;;  %v5766_v19 = vpack.c.bf16 %v4983_v14, %v4979_v13 }
 0x233   : > { %v5767_v46 = vpack.c.bf16 %v4993_v7, %v4990_v56  ;;  %v1508_v7 = vld [vmem:[%s5706_s9] sm:$0x3] }
 0x234   : > { %4153 = vmatpush3.bf16.msra.mxu1 %v4152_v39  ;;  %v1382_v39 = vld [vmem:[%s5704_s7 + $0x18] sm:$0xff] }
 0x235   : > { %4041 = vmatprep.subr.mxu1 %v5762_v0 }
 0x237   : > { %4039 = vmatmul.mubr.msk.f32.vlgmr.msra.gmra.mrb[0].mxu1 %vm1060_vm4, %v1059_v2  ;;  %v4158_v2 = vpack.c.bf16 %v4947_v4, %v4945_v33  ;;  %v5764_v33 = vpack.c.bf16 %v4963_v40, %v4959_v52  ;;  %v5765_v4 = vpack.c.bf16 %v4973_v24, %v4969_v3  ;;  %v5768_v52 = vpack.c.bf16 %v5004_v32, %v5001_v31 }
 0x238   : > { %4043 = vmatprep.mubr.msk.f32.mxu1 %vm4378_vm0, %v5762_v0 }
 0x30a   : > { %v1130_v41 = vpop.f32.mrb[0].mxu1 }
 0x30b   : > { %1135 = vrot.lane.b32.xlu0 %v1130_v41, %s4374_s27  ;;  %v4040_v25 = vpop.f32.mrb[1].mxu1 }
 0x37d   : > { %v1136_v15 = vpop.permute.xlu0 %1135 }
 0x37e   : > { %v1138_v57 = vsel %vm1040_vm1, 0.0, %v1136_v15 }
 0x37f   : > { %v1140_v58 = vsel %vm1139_vm5, %v1138_v57, 0.0 }
 0x380   : > { %1300 = vrot.lane.b32.xlu0 %v1140_v58, %s4380_s18  ;;  %1145 = vrot.lane.b32.xlu1 %v1140_v58, %s4381_s19 }
 0x3f2   : > { %v1146_v48 = vpop.permute.xlu1 %1145  ;;  %v1301_v49 = vpop.permute.xlu0 %1300 }
 0x3f3   : > { %4042 = vmatpush3.msk.msra.mxu1 %vm1150_vm6, %v1146_v48 }
 0x3f4   : > { %4044 = vmatmul.mubr.msk.f32.vlgmr.msra.gmra.mrb[2].mxu1 %vm1045_vm2, %v3812_v47  ;;  %4046 = vmatprep.subr.mxu1 %v5762_v0 }
 0x3f5   : > { %4047 = vmatpush3.msk.msra.mxu1 %vm1150_vm6, %v1140_v58  ;;  %4048 = vmatprep.mubr.msk.f32.mxu1 %vm4378_vm0, %v5762_v0 }
 0x3f6   : > { %4051 = vmatprep.subr.mxu1 %v5762_v0 }
 0x3fc   : > { %4049 = vmatmul.mubr.msk.f32.vlgmr.msra.gmra.mrb[2].mxu1 %vm1045_vm2, %v1141_v34  ;;  %v1507_v34 = vld [vmem:[%s5707_s10] sm:$0x3] }
 0x3fd   : > { %4052 = vmatpush3.msk.msra.mxu1 %vm1150_vm6, %v1301_v49  ;;  %4053 = vmatprep.mubr.msk.f32.mxu1 %vm4378_vm0, %v5762_v0 }
 0x404   : > { %4054 = vmatmul.mubr.msk.f32.vlgmr.msra.gmra.mrb[2].mxu1 %vm1045_vm2, %v3817_v55 }
 0x405   : > { %4058 = vmatprep.mubr.msk.f32.mxu1 %vm1045_vm2, %v1379_v17 }
 0x4d7   : > { %v1373_v16 = vpop.f32.mrb[2].mxu1 }
 0x4d8   : > { %v1378_v38 = vmax.f32 %v1373_v16, 0.0  ;;  %v4055_v26 = vpop.f32.mrb[3].mxu1 }
 0x4da   : > { %4056 = vmatprep.subr.msk.mxu1 %vm1150_vm6, %v1378_v38 }
 0x4db   : > { %4057 = vmatpush3.msk.msra.mxu1 %vm1150_vm6, %v1378_v38 }
 0x4dc   : > { %4059 = vmatmul.mubr.msk.f32.vlgmr.msra.gmra.mrb[4].mxu1 %vm1045_vm2, %v1380_v22  ;;  %4154 = vmatprep.subr.bf16.mxu1 %v5761_v35 }
 0x4dd   : > { %4156 = vmatpush3.bf16.msra.mxu1 %v4155_v30  ;;  %4061 = vmatprep.mubr.msk.f32.mxu1 %vm1045_vm2, %v1381_v42 }
 0x4de   : > { %4157 = vmatprep.subr.bf16.mxu1 %v5761_v35 }
 0x4e0   : > { %4062 = vmatmul.mubr.msk.f32.gmra.mrb[6].mxu1 %vm1045_vm2, %v1382_v39 }
 0x4e1   : > { %4159 = vmatpush3.bf16.msra.mxu1 %v4158_v2  ;;  %4072 = vmatprep.mubr.msk.f32.mxu1 %vm4378_vm0, %v5762_v0 }
 0x4e2   : > { %4160 = vmatprep.subr.bf16.mxu1 %v5761_v35 }
 0x4e4   : > { %4073 = vmatmul.mubr.msk.f32.vlgmr.msra.gmra.mrb[8].mxu1 %vm1060_vm4, %v1509_v21 }
 0x4e5   : > { %4162 = vmatpush3.bf16.msra.mxu1 %v5763_v12  ;;  %4083 = vmatprep.mubr.msk.f32.mxu1 %vm4378_vm0, %v5762_v0  ;;  %v1844_v12 = vld [vmem:[%s5708_s11] sm:$0xff] }
 0x4e6   : > { %4163 = vmatprep.subr.bf16.mxu1 %v5761_v35 }
 0x4e9   : > { %4165 = vmatpush3.bf16.msra.mxu1 %v5764_v33 }
 0x4ea   : > { %4166 = vmatprep.subr.bf16.mxu1 %v5761_v35 }
 0x4ec   : > { %4084 = vmatmul.mubr.msk.f32.vlgmr.msra.gmra.mrb[10].mxu1 %vm1060_vm4, %v1509_v21 }
 0x4ed   : > { %4168 = vmatpush3.bf16.msra.mxu1 %v5765_v4  ;;  %4094 = vmatprep.mubr.msk.f32.mxu1 %vm4378_vm0, %v5762_v0 }
 0x4ee   : > { %4169 = vmatprep.subr.bf16.mxu1 %v5761_v35 }
 0x4f1   : > { %4171 = vmatpush3.bf16.msra.mxu1 %v5766_v19 }
 0x4f2   : > { %4172 = vmatprep.subr.bf16.mxu1 %v5761_v35 }
 0x4f4   : > { %4095 = vmatmul.mubr.msk.f32.vlgmr.msra.gmra.mrb[12].mxu1 %vm1060_vm4, %v1509_v21 }
 0x4f5   : > { %4174 = vmatpush3.bf16.msra.mxu1 %v5767_v46  ;;  %4105 = vmatprep.mubr.msk.f32.mxu1 %vm4378_vm0, %v5762_v0  ;;  %vm2455_vm0 = vcmask 785408  }
 0x4f6   : > { %4175 = vmatprep.subr.bf16.mxu1 %v5761_v35 }
 0x4f9   : > { %4177 = vmatpush3.bf16.msra.mxu1 %v5768_v52 }
 0x4fc   : > { %4106 = vmatmul.mubr.msk.f32.vlgmr.msra.gmra.mrb[14].mxu1 %vm1060_vm4, %v1509_v21 }
 0x4fd   : > { %4110 = vmatprep.mubr.msk.f32.mxu1 %vm1045_vm2, %v1844_v12  ;;  %v4200_v12 = vpack.c.bf16 %v4893_v23, %v4883_v61 }
 0x5af   : > { %v5121_v40 = vpop.f32.mrb[4].mxu1 }
 0x5b0   : > { %v5123_v3 = vpop.f32.mrb[5].mxu1 }
 0x5b3   : > { %v5125_v24 = vpop.f32.mrb[6].mxu1 }
 0x5b4   : > { %v5127_v13 = vpop.f32.mrb[7].mxu1 }
 0x5b7   : > { %v1579_v14 = vpop.f32.mrb[8].mxu1 }
 0x5b8   : > { %v4074_v56 = vpop.f32.mrb[9].mxu1  ;;  %v1583_v17 = vmul.f32 0.00390625, %v1579_v14 }
 0x5ba   : > { %v1584_v16 = vadd.f32 %v1583_v17, %v1507_v34  ;;  %v1847_v17 = vld [vmem:[%s5708_s11 + $0x18] sm:$0xff] }
 0x5bf   : > { %v1651_v35 = vpop.f32.mrb[10].mxu1 }
 0x5c0   : > { %v1657_v31 = vmul.f32 %v1651_v35, %v1508_v7  ;;  %v4085_v32 = vpop.f32.mrb[11].mxu1  ;;  %v1655_v38 = vmul.f32 0.00390625, %v1651_v35 }
 0x5c2   : > { %v1659_v41 = vsel %vm1658_vm7, %v1657_v31, 0.0  ;;  %v1656_v26 = vadd.f32 %v1655_v38, %v1507_v34  ;;  %v4186_v38 = vpack.c.bf16 %v4770_v29, %v4758_v6 }
 0x5c3   : > { %1660 = vadd.xlane.f32.xlu1 %v1659_v41 }
 0x5c7   : > { %v1730_v25 = vpop.f32.mrb[12].mxu1 }
 0x5c8   : > { %v4096_v15 = vpop.f32.mrb[13].mxu1  ;;  %v1734_v57 = vmul.f32 0.00390625, %v1730_v25  ;;  %v1736_v22 = vmul.f32 %v1730_v25, %v1508_v7 }
 0x5ca   : > { %v1735_v49 = vadd.f32 %v1734_v57, %v1507_v34  ;;  %v1737_v42 = vsel %vm1658_vm7, %v1736_v22, 0.0  ;;  %v4382_v22 = vmov 0.03125  }
 0x5cf   : > { %v1808_v58 = vpop.f32.mrb[14].mxu1 }
 0x5d0   : > { %v1812_v47 = vmul.f32 %v1808_v58, %v1508_v7  ;;  %v4107_v48 = vpop.f32.mrb[15].mxu1 }
 0x5d1   : > { %v4178_v48 = vpack.c.bf16 %v4677_v18, %v4660_v8 }
 0x5d2   : > { %v1813_v55 = vsel %vm1658_vm7, %v1812_v47, 0.0  ;;  %v1845_v47 = vld [vmem:[%s5708_s11 + $0x8] sm:$0xff] }
 0x5d3   : > { %1814 = vadd.xlane.f32.xlu0 %v1813_v55  ;;  %v4182_v55 = vpack.c.bf16 %v4715_v37, %v4697_v28 }
 0x5d4   : > { %1829 = vrot.lane.b32.xlu1 %v1735_v49, %s4374_s27  ;;  %v4180_v49 = vpack.c.bf16 %v4695_v27, %v4662_v9 }
 0x5e9   : > { %1819 = vrot.lane.b32.xlu0 %v1584_v16, %s4374_s27  ;;  %v4184_v16 = vpack.c.bf16 %v4738_v50, %v4713_v36 }
 0x5ed   : > { %1824 = vrot.lane.b32.xlu0 %v1656_v26, %s4374_s27  ;;  %v4188_v26 = vpack.c.bf16 %v4791_v45, %v4760_v10 }
 0x5f8   : > { %1738 = vadd.xlane.f32.xlu1 %v1737_v42  ;;  %v4190_v42 = vpack.c.bf16 %v4818_v11, %v4797_v51 }
 0x650   : > { %v1661_v30 = vpop.xlane.xlu1 %1660 }
 0x651   : > { %v1662_v39 = vadd.f32 %v1661_v30, %v1507_v34  ;;  %v4192_v30 = vpack.c.bf16 %v4832_v20, %v4814_v59 }
 0x653   : > { %v1663_v33 = vmul.f32 0.00390625, %v1662_v39  ;;  %v4194_v39 = vpack.c.bf16 %v4855_v5, %v4836_v44 }
 0x654   : > { %v1830_v52 = vpop.permute.xlu1 %1829 }
 0x660   : > { %v1815_v2 = vpop.xlane.xlu0 %1814 }
 0x661   : > { %v1816_v21 = vadd.f32 %v1815_v2, %v1507_v34  ;;  %v4196_v2 = vpack.c.bf16 %v4869_v43, %v4850_v62 }
 0x663   : > { %v1817_v19 = vmul.f32 0.00390625, %v1816_v21  ;;  %v4198_v21 = vpack.c.bf16 %v4885_v63, %v4874_v60 }
 0x664   : > { %v1820_v4 = vpop.permute.xlu0 %1819 }
 0x665   : > { %v1822_v46 = vsub.f32 %v1663_v33, %v1820_v4  ;;  %v1832_v14 = vsub.f32 %v1817_v19, %v1830_v52  ;;  %v4202_v33 = vpack.c.bf16 %v4909_v54, %v4897_v1  ;;  %v5769_v4 = vld [vmem:[#allocation18_spill] sm:$0xff]  ;;  %v5771_v52 = vld [vmem:[#allocation21_spill] sm:$0xff] }
 0x666   : > { %v4204_v19 = vpack.c.bf16 %v5769_v4, %v4905_v53 }
 0x667   : > { %1834 = vrot.lane.b32.xlu0 %v1822_v46, %s4381_s19  ;;  %v5770_v46 = vld [vmem:[#allocation19_spill] sm:$0xff] }
 0x668   : > { %v1825_v35 = vpop.permute.xlu0 %1824 }
 0x66b   : > { %1838 = vrot.lane.b32.xlu0 %v1832_v14, %s4374_s27  ;;  %v4206_v14 = vpack.c.bf16 %v5771_v52, %v5770_v46  ;;  %s4385_s27 = smov 112  }
 0x685   : > { %v1739_v56 = vpop.xlane.xlu1 %1738 }
 0x686   : > { %v1740_v7 = vadd.f32 %v1739_v56, %v1507_v34  ;;  %v1846_v34 = vld [vmem:[%s5708_s11 + $0x10] sm:$0xff]  ;;  %v5772_v56 = vld [vmem:[#allocation20_spill] sm:$0xff] }
 0x688   : > { %v1741_v31 = vmul.f32 0.00390625, %v1740_v7  ;;  %v5773_v7 = vld [vmem:[#allocation22_spill] sm:$0xff] }
 0x68a   : > { %v1827_v41 = vsub.f32 %v1741_v31, %v1825_v35  ;;  %v4208_v35 = vpack.c.bf16 %v5773_v7, %v5772_v56  ;;  %v1484_v31 = vsub.f32 0.0, %v5121_v40 }
 0x6d9   : > { %v1835_v32 = vpop.permute.xlu0 %1834 }
 0x6da   : > { %v1841_v25 = vsel %vm1040_vm1, %v1835_v32, %v1827_v41  ;;  %v1483_v32 = vsub.f32 0.0, %v5123_v3  ;;  %v1486_v41 = vsub.f32 0.0, %v5125_v24  ;;  %vm2799_vm1 = vcmask 1039360  }
 0x6dd   : > { %v1839_v15 = vpop.permute.xlu0 %1838 }
 0x6de   : > { %v1842_v57 = vsel %vm1045_vm2, %v1841_v25, %v1839_v15  ;;  %v1485_v25 = vsub.f32 0.0, %v5127_v13  ;;  %v1489_v15 = vmul.f32 1.442695, %v1484_v31 }
 0x6df   : > { %v1843_v58 = vsel %vm1050_vm3, %v1842_v57, 0.0  ;;  %v1487_v57 = vmul.f32 1.442695, %v1483_v32 }
 0x6e0   : > { %4108 = vmatprep.subr.msk.mxu1 %vm1150_vm6, %v1843_v58  ;;  %4303 = vpow2.f32 %v1489_v15 }
 0x6e1   : > { %4109 = vmatpush3.msk.msra.mxu1 %vm1150_vm6, %v1843_v58  ;;  %v1493_v58 = vmul.f32 1.442695, %v1486_v41  ;;  %4305 = vpow2.f32 %v1487_v57 }
 0x6e2   : > { %4111 = vmatmul.mubr.msk.f32.vlgmr.msra.gmra.mrb[16].mxu1 %vm1045_vm2, %v1845_v47  ;;  %4179 = vmatprep.subr.bf16.mxu1 %v4178_v48  ;;  %v1491_v47 = vmul.f32 1.442695, %v1485_v25 }
 0x6e3   : > { %4181 = vmatpush1.bf16.msra.mxu1 %v4180_v49  ;;  %4113 = vmatprep.mubr.msk.f32.mxu1 %vm1045_vm2, %v1846_v34  ;;  %4307 = vpow2.f32 %v1493_v58  ;;  %v1972_v34 = vlaneseq  ;;  %v4383_v49 = vmov 1966171168  }
 0x6e4   : > { %4183 = vmatprep.subr.bf16.mxu1 %v4182_v55  ;;  %4309 = vpow2.f32 %v1491_v47  ;;  %v2071_v55 = vunpack.c.l.s4 %v4383_v49 }
 0x6e5   : > { %v5212_v13 = vshrl.u32 %v1972_v34, 7  ;;  %vm1974_vm10 = vcmp.lt.s32.totalorder %v1972_v34, 290  ;;  %vm2090_vm11 = vcmp.ge.s32.totalorder %v1972_v34, 17  ;;  %vm2091_vm12 = vcmp.lt.s32.totalorder %v1972_v34, 273 }
 0x6e6   : > { %4114 = vmatmul.mubr.msk.f32.gmra.mrb[18].mxu1 %vm1045_vm2, %v1847_v17  ;;  %1976 = vst.msk [vmem:[#allocation3] ss:$8 sm:$0x7] %vm1974_vm10, %v5762_v0  ;;  %1979 = vst.msk [vmem:[#allocation3 + $0x5] ss:$8 sm:$0x7] %vm1974_vm10, %v5762_v0 }
 0x6e7   : > { %4185 = vmatpush1.bf16.msra.mxu1 %v4184_v16  ;;  %2060 = vmatprep.mubr.f32.mxu1 %v5762_v0  ;;  %vm5242_vm14 = vmand %vm2090_vm11, %vm2091_vm12 }
 0x6e8   : > { %4187 = vmatprep.subr.bf16.mxu1 %v4186_v38 }
 0x6ea   : > { %3834 = vmatmul.mubr.msk.f32.vlgmr.msra.gmra.mrb[20].mxu1 %vm1060_vm4, %v4382_v22 }
 0x6eb   : > { %4189 = vmatpush1.bf16.msra.mxu1 %v4188_v26  ;;  %2168 = vmatprep.mubr.f32.mxu1 %v5762_v0  ;;  %v2072_v26 = vunpack.c.0.s8 %v2071_v55 }
 0x6ec   : > { %4191 = vmatprep.subr.bf16.mxu1 %v4190_v42 }
 0x6ef   : > { %4193 = vmatpush1.bf16.msra.mxu1 %v4192_v30 }
 0x6f0   : > { %4195 = vmatprep.subr.bf16.mxu1 %v4194_v39  ;;  %v4304_v39 = vpop.eup %4303 }
 0x6f1   : > { %v1496_v32 = vadd.f32 1.0, %v4304_v39 }
 0x6f2   : > { %3835 = vmatmul.mubr.msk.f32.vlgmr.msra.gmra.mrb[22].mxu1 %vm1060_vm4, %v4382_v22 }
 0x6f3   : > { %4197 = vmatpush1.bf16.msra.mxu1 %v4196_v2  ;;  %2273 = vmatprep.mubr.f32.mxu1 %v5762_v0 }
 0x6f4   : > { %4199 = vmatprep.subr.bf16.mxu1 %v4198_v21  ;;  %v4306_v21 = vpop.eup %4305 }
 0x6f5   : > { %v1495_v25 = vadd.f32 1.0, %v4306_v21 }
 0x6f7   : > { %4201 = vmatpush1.bf16.msra.mxu1 %v4200_v12 }
 0x6f8   : > { %4203 = vmatprep.subr.bf16.mxu1 %v4202_v33 }
 0x6fa   : > { %3836 = vmatmul.mubr.msk.f32.vlgmr.msra.gmra.mrb[24].mxu1 %vm1060_vm4, %v4382_v22 }
 0x6fb   : > { %4205 = vmatpush1.bf16.msra.mxu1 %v4204_v19  ;;  %2377 = vmatprep.mubr.f32.mxu1 %v5762_v0  ;;  %v5215_v19 = vsub.s32 %v2072_v26, %v5212_v13 }
 0x6fc   : > { %4207 = vmatprep.subr.bf16.mxu1 %v4206_v14  ;;  %v4308_v14 = vpop.eup %4307 }
 0x6fd   : > { %v4310_v31 = vpop.eup %4309  ;;  %v1498_v15 = vadd.f32 1.0, %v4308_v14 }
 0x6fe   : > { %v1497_v58 = vadd.f32 1.0, %v4310_v31 }
 0x6ff   : > { %4209 = vmatpush1.bf16.msra.mxu1 %v4208_v35 }
 0x702   : > { %3837 = vmatmul.mubr.msk.f32.vlgmr.msra.gmra.mrb[26].mxu1 %vm1060_vm4, %v4382_v22 }
 0x703   : > { %3351 = vmatprep.mubr.f32.mxu1 %v5762_v0 }
 0x7b5   : > { %v4112_v48 = vpop.f32.mrb[16].mxu1 }
 0x7b6   : > { %v1949_v17 = vsub.f32 0.0, %v4112_v48  ;;  %v1929_v40 = vpop.f32.mrb[17].mxu1 }
 0x7b7   : > { %v1948_v16 = vsub.f32 0.0, %v1929_v40 }
 0x7b8   : > { %v1954_v3 = vmul.f32 1.442695, %v1949_v17 }
 0x7b9   : > { %v1952_v38 = vmul.f32 1.442695, %v1948_v16  ;;  %v4115_v24 = vpop.f32.mrb[18].mxu1 }
 0x7ba   : > { %4311 = vpow2.f32 %v1954_v3  ;;  %v1951_v22 = vsub.f32 0.0, %v4115_v24  ;;  %v1939_v42 = vpop.f32.mrb[19].mxu1 }
 0x7bb   : > { %4313 = vpow2.f32 %v1952_v38  ;;  %v1950_v30 = vsub.f32 0.0, %v1939_v42 }
 0x7bc   : > { %v1958_v2 = vmul.f32 1.442695, %v1951_v22 }
 0x7bd   : > { %v1956_v12 = vmul.f32 1.442695, %v1950_v30  ;;  %v2062_v33 = vpop.f32.mrb[20].mxu1 }
 0x7be   : > { %4315 = vpow2.f32 %v1958_v2  ;;  %v2064_v35 = vpop.f32.mrb[21].mxu1 }
 0x7bf   : > { %4317 = vpow2.f32 %v1956_v12  ;;  %v2069_v41 = vcombine.low %v2062_v33, %v2064_v35 }
 0x7c0   : > { %4319 = vrcp.f32 %v1496_v32 }
 0x7c1   : > { %v2076_v57 = vrot.slane %v2069_v41, %v5215_v19  ;;  %4321 = vrcp.f32 %v1495_v25 }
 0x7c2   : > { %4323 = vrcp.f32 %v1498_v15 }
 0x7c3   : > { %v2083_v47 = vrot.slane %v2076_v57, %v5215_v19  ;;  %4325 = vrcp.f32 %v1497_v58 }
 0x7c4   : > { %v4312_v48 = vpop.eup %4311 }
 0x7c5   : > { %v4314_v49 = vpop.eup %4313  ;;  %v1961_v55 = vadd.f32 1.0, %v4312_v48  ;;  %v2170_v17 = vpop.f32.mrb[22].mxu1  ;;  %2084 = vrot.lane.b32.xlu0 %v2083_v47, %s4384_s20 }
 0x7c6   : > { %v1960_v40 = vadd.f32 1.0, %v4314_v49  ;;  %v2172_v16 = vpop.f32.mrb[23].mxu1 }
 0x7c7   : > { %4327 = vrcp.f32 %v1961_v55  ;;  %v2177_v3 = vcombine.low %v2170_v17, %v2172_v16 }
 0x7c8   : > { %v4316_v38 = vpop.eup %4315  ;;  %4329 = vrcp.f32 %v1960_v40 }
 0x7c9   : > { %v4318_v24 = vpop.eup %4317  ;;  %v1963_v26 = vadd.f32 1.0, %v4316_v38  ;;  %v2184_v22 = vrot.slane %v2177_v3, %v5215_v19 }
 0x7ca   : > { %v1962_v42 = vadd.f32 1.0, %v4318_v24  ;;  %v4320_v39 = vpop.eup %4319 }
 0x7cb   : > { %4331 = vrcp.f32 %v1963_v26  ;;  %v2191_v30 = vrot.slane %v2184_v22, %v5215_v19  ;;  %v4322_v21 = vpop.eup %4321  ;;  %v3051_v31 = vadd.f32 3.0, %v4320_v39 }
 0x7cc   : > { %4333 = vrcp.f32 %v1962_v42  ;;  %v4324_v33 = vpop.eup %4323  ;;  %v3050_v41 = vadd.f32 3.0, %v4322_v21 }
 0x7cd   : > { %v2275_v2 = vpop.f32.mrb[24].mxu1  ;;  %2192 = vrot.lane.b32.xlu0 %v2191_v30, %s4384_s20  ;;  %v4326_v35 = vpop.eup %4325  ;;  %v3053_v48 = vadd.f32 3.0, %v4324_v33  ;;  %v2674_v30 = vstv %s3850_s26  ;;  %s3838_s26 = sld [smem:[#allocation4 + $0x3]] }
 0x7ce   : > { %v2277_v12 = vpop.f32.mrb[25].mxu1  ;;  %v3052_v55 = vadd.f32 3.0, %v4326_v35 }
 0x7cf   : > { %v2282_v14 = vcombine.low %v2275_v2, %v2277_v12 }
 0x7d1   : > { %v4328_v32 = vpop.eup %4327  ;;  %v2289_v25 = vrot.slane %v2282_v14, %v5215_v19 }
 0x7d2   : > { %v4330_v15 = vpop.eup %4329  ;;  %v5224_v57 = vadd.f32 %v4328_v32, %v3051_v31  ;;  %v2815_v32 = vstv %s3856_s21  ;;  %s3853_s21 = sld [smem:[#allocation4 + $0x16]] }
 0x7d3   : > { %v2296_v58 = vrot.slane %v2289_v25, %v5215_v19  ;;  %v5228_v47 = vadd.f32 %v4330_v15, %v3050_v41  ;;  %v2613_v41 = vstv %s3847_s22  ;;  %s3862_s22 = sld [smem:[#allocation4 + $0x17]] }
 0x7d5   : > { %v4332_v49 = vpop.eup %4331  ;;  %v2379_v17 = vpop.f32.mrb[26].mxu1  ;;  %2297 = vrot.lane.b32.xlu0 %v2296_v58, %s4384_s20 }
 0x7d6   : > { %v4334_v40 = vpop.eup %4333  ;;  %v2381_v16 = vpop.f32.mrb[27].mxu1  ;;  %v5233_v3 = vadd.f32 %v4332_v49, %v3053_v48 }
 0x7d7   : > { %v2386_v38 = vcombine.low %v2379_v17, %v2381_v16  ;;  %v5235_v24 = vadd.f32 %v4334_v40, %v3052_v55  ;;  %v2635_v55 = vstv %s3848_s24  ;;  %v2837_v16 = vstv %s3857_s25  ;;  %s3854_s24 = sld [smem:[#allocation4 + $0x19]]  ;;  %s3863_s25 = sld [smem:[#allocation4 + $0x1a]] }
 0x7d9   : > { %v2393_v26 = vrot.slane %v2386_v38, %v5215_v19 }
 0x7db   : > { %v2400_v22 = vrot.slane %v2393_v26, %v5215_v19 }
 0x7dd   : > { %2401 = vrot.lane.b32.xlu0 %v2400_v22, %s4384_s20  ;;  %s3860_s20 = sld [smem:[#allocation4 + $0x11]] }
 0x837   : > { %v2085_v42 = vpop.permute.xlu0 %2084 }
 0x838   : > { %v2086_v39 = vrot.slane %v2085_v42, 7 }
 0x83a   : > { %v2088_v2 = vsel %vm2087_vm13, %v2086_v39, %v2085_v42 }
 0x83b   : > { %2094 = vst.msk [vmem:[#allocation3 + $0x1] ss:$8 sm:$0x7] %vm5242_vm14, %v2088_v2 }
 0x83f   : > { %v2193_v21 = vpop.permute.xlu0 %2192 }
 0x840   : > { %v2194_v19 = vrot.slane %v2193_v21, 7 }
 0x842   : > { %v2195_v12 = vsel %vm2087_vm13, %v2194_v19, %v2193_v21  ;;  %v2876_v19 = vstv %s3859_s15  ;;  %s3855_s15 = sld [smem:[#allocation4 + $0x2]] }
 0x843   : > { %2198 = vst.msk [vmem:[#allocation3 + $0x2] ss:$8 sm:$0x7] %vm5242_vm14, %v2195_v12 }
 0x847   : > { %v2298_v34 = vpop.permute.xlu0 %2297 }
 0x848   : > { %v2299_v33 = vrot.slane %v2298_v34, 7 }
 0x84a   : > { %v2300_v14 = vsel %vm2087_vm13, %v2299_v33, %v2298_v34 }
 0x84b   : > { %2303 = vst.msk [vmem:[#allocation3 + $0x3] ss:$8 sm:$0x7] %vm5242_vm14, %v2300_v14 }
 0x84f   : > { %v2402_v35 = vpop.permute.xlu0 %2401 }
 0x850   : > { %v2403_v31 = vrot.slane %v2402_v35, 7 }
 0x852   : > { %v2404_v25 = vsel %vm2087_vm13, %v2403_v31, %v2402_v35  ;;  %v5256_v15 = vld [vmem:[#allocation3 + $0x8] sm:$0xf]  ;;  %v5262_v49 = vld [vmem:[#allocation3 + $0x10] sm:$0xf]  ;;  %v5272_v22 = vld [vmem:[#allocation3] sm:$0xf] }
 0x853   : > { %2407 = vst.msk [vmem:[#allocation3 + $0x4] ss:$8 sm:$0x7] %vm5242_vm14, %v2404_v25  ;;  %v2817_v58 = vmul.f32 %v2815_v32, %v5256_v15  ;;  %v2615_v48 = vmul.f32 %v2613_v41, %v5256_v15  ;;  %v2638_v17 = vmul.f32 %v2635_v55, %v5262_v49  ;;  %v2616_v40 = vmul.f32 %v2613_v41, %v5262_v49 }
 0x854   : > { %v2840_v38 = vmul.f32 %v2837_v16, %v5262_v49  ;;  %v2818_v26 = vmul.f32 %v2815_v32, %v5262_v49  ;;  %v2838_v39 = vmul.f32 %v2837_v16, %v5272_v22  ;;  %v2614_v2 = vmul.f32 %v2613_v41, %v5272_v22 }
 0x855   : > { %2824 = vrot.lane.b32.xlu1 %v2817_v58, %s4385_s27  ;;  %2622 = vrot.lane.b32.xlu0 %v2615_v48, %s4385_s27  ;;  %v2816_v12 = vmul.f32 %v2815_v32, %v5272_v22  ;;  %v2637_v35 = vmul.f32 %v2635_v55, %v5256_v15  ;;  %v2699_v25 = vstv %s3851_s17  ;;  %v2839_v32 = vmul.f32 %v2837_v16, %v5256_v15  ;;  %s3858_s17 = sld [smem:[#allocation4 + $0xb]] }
 0x859   : > { %2646 = vrot.lane.b32.xlu1 %v2638_v17, %s4386_s16  ;;  %2624 = vrot.lane.b32.xlu0 %v2616_v40, %s4385_s27  ;;  %v2901_v40 = vstv %s3860_s20  ;;  %s3839_s20 = sld [smem:[#allocation4 + $0x6]] }
 0x85a   : > { %v5274_v42 = vld [vmem:[#allocation3 + $0x10] sm:$0x1e]  ;;  %v5285_v14 = vld [vmem:[#allocation3] sm:$0x1e]  ;;  %v5295_v17 = vld [vmem:[#allocation3 + $0x8] sm:$0x1e] }
 0x85b   : > { %v2677_v21 = vmul.f32 %v2674_v30, %v5274_v42  ;;  %v2879_v33 = vmul.f32 %v2876_v19, %v5274_v42  ;;  %v2877_v41 = vmul.f32 %v2876_v19, %v5285_v14  ;;  %v2702_v48 = vmul.f32 %v2699_v25, %v5274_v42 }
 0x85d   : > { %2848 = vrot.lane.b32.xlu1 %v2840_v38, %s4386_s16  ;;  %2826 = vrot.lane.b32.xlu0 %v2818_v26, %s4385_s27  ;;  %v2683_v34 = vrot.slane %v2677_v21, 1  ;;  %v2885_v31 = vrot.slane %v2879_v33, 1  ;;  %v2883_v58 = vrot.slane %v2877_v41, 1  ;;  %v2636_v38 = vmul.f32 %v2635_v55, %v5272_v22  ;;  %v5306_v33 = vld [vmem:[#allocation3 + $0x10] sm:$0x3c] }
 0x85e   : > { %v2708_v26 = vrot.slane %v2702_v48, 1 }
 0x861   : > { %2844 = vrot.lane.b32.xlu1 %v2838_v39, %s4386_s16  ;;  %2620 = vrot.lane.b32.xlu0 %v2614_v2, %s4385_s27  ;;  %v2676_v39 = vmul.f32 %v2674_v30, %v5295_v17  ;;  %v2904_v2 = vmul.f32 %v2901_v40, %v5274_v42 }
 0x863   : > { %v2682_v16 = vrot.slane %v2676_v39, 1  ;;  %v2910_v21 = vrot.slane %v2904_v2, 1  ;;  %v5316_v39 = vld [vmem:[#allocation3] sm:$0x3c] }
 0x865   : > { %2822 = vrot.lane.b32.xlu0 %v2816_v12, %s4385_s27  ;;  %2688 = vrot.lane.b32.xlu1 %v2683_v34, %s4385_s27  ;;  %v2878_v12 = vmul.f32 %v2876_v19, %v5295_v17  ;;  %v2902_v34 = vmul.f32 %v2901_v40, %v5285_v14 }
 0x867   : > { %v2884_v55 = vrot.slane %v2878_v12, 1  ;;  %v2766_v12 = vstv %s3854_s24  ;;  %s3844_s24 = sld [smem:[#allocation4 + $0x15]] }
 0x869   : > { %2644 = vrot.lane.b32.xlu0 %v2637_v35, %s4386_s16  ;;  %2890 = vrot.lane.b32.xlu1 %v2885_v31, %s4385_s27  ;;  %v2741_v35 = vstv %s3853_s21  ;;  %v2908_v31 = vrot.slane %v2902_v34, 1  ;;  %s3841_s21 = sld [smem:[#allocation4 + $0xc]] }
 0x86a   : > { %v2744_v41 = vmul.f32 %v2741_v35, %v5306_v33 }
 0x86c   : > { %v2750_v19 = vrot.slane %v2744_v41, 2  ;;  %v2700_v41 = vmul.f32 %v2699_v25, %v5285_v14 }
 0x86d   : > { %2846 = vrot.lane.b32.xlu0 %v2839_v32, %s4386_s16  ;;  %2886 = vrot.lane.b32.xlu1 %v2883_v58, %s4385_s27  ;;  %v2675_v32 = vmul.f32 %v2674_v30, %v5285_v14  ;;  %v2943_v58 = vstv %s3862_s22  ;;  %s3842_s22 = sld [smem:[#allocation4 + $0xf]] }
 0x86f   : > { %v2681_v48 = vrot.slane %v2675_v32, 1  ;;  %v2968_v32 = vstv %s3863_s25  ;;  %s3845_s25 = sld [smem:[#allocation4 + $0x18]] }
 0x871   : > { %2642 = vrot.lane.b32.xlu0 %v2636_v38, %s4386_s16  ;;  %2713 = vrot.lane.b32.xlu1 %v2708_v26, %s4386_s16  ;;  %v2946_v38 = vmul.f32 %v2943_v58, %v5306_v33  ;;  %v2701_v26 = vmul.f32 %v2699_v25, %v5295_v17  ;;  %v2969_v25 = vmul.f32 %v2968_v32, %v5316_v39 }
 0x873   : > { %v2952_v30 = vrot.slane %v2946_v38, 2  ;;  %v2707_v2 = vrot.slane %v2701_v26, 1  ;;  %v2971_v38 = vmul.f32 %v2968_v32, %v5306_v33 }
 0x875   : > { %2686 = vrot.lane.b32.xlu0 %v2682_v16, %s4385_s27  ;;  %2915 = vrot.lane.b32.xlu1 %v2910_v21, %s4386_s16  ;;  %v2944_v16 = vmul.f32 %v2943_v58, %v5316_v39  ;;  %v2903_v21 = vmul.f32 %v2901_v40, %v5295_v17  ;;  %v2706_v40 = vrot.slane %v2700_v41, 1  ;;  %v2742_v41 = vmul.f32 %v2741_v35, %v5316_v39 }
 0x877   : > { %v2950_v34 = vrot.slane %v2944_v16, 2 }
 0x879   : > { %2888 = vrot.lane.b32.xlu0 %v2884_v55, %s4385_s27  ;;  %2911 = vrot.lane.b32.xlu1 %v2908_v31, %s4386_s16  ;;  %v2909_v55 = vrot.slane %v2903_v21, 1  ;;  %v2769_v31 = vmul.f32 %v2766_v12, %v5306_v33  ;;  %v5339_v21 = vsub.s32 1, %v5212_v13 }
 0x87d   : > { %2755 = vrot.lane.b32.xlu1 %v2750_v19, %s4385_s27  ;;  %2684 = vrot.lane.b32.xlu0 %v2681_v48, %s4385_s27  ;;  %v5326_v19 = vld [vmem:[#allocation3 + $0x8] sm:$0x3c]  ;;  %v2775_v48 = vrot.slane %v2769_v31, 2 }
 0x87e   : > { %v2743_v26 = vmul.f32 %v2741_v35, %v5326_v19  ;;  %v2945_v16 = vmul.f32 %v2943_v58, %v5326_v19  ;;  %v2970_v35 = vmul.f32 %v2968_v32, %v5326_v19 }
 0x880   : > { %v2951_v31 = vrot.slane %v2945_v16, 2  ;;  %v2976_v16 = vrot.slane %v2970_v35, 2 }
 0x881   : > { %2957 = vrot.lane.b32.xlu1 %v2952_v30, %s4385_s27  ;;  %2711 = vrot.lane.b32.xlu0 %v2707_v2, %s4386_s16  ;;  %v2977_v30 = vrot.slane %v2971_v38, 2  ;;  %v2749_v2 = vrot.slane %v2743_v26, 2  ;;  %v2421_v38 = vstv %s3838_s26  ;;  %s3849_s26 = sld [smem:[#allocation4 + $0xa]] }
 0x882   : > { %v2424_v26 = vmul.f32 %v2421_v38, %v5262_v49 }
 0x885   : > { %2953 = vrot.lane.b32.xlu1 %v2950_v34, %s4385_s27  ;;  %2913 = vrot.lane.b32.xlu0 %v2909_v55, %s4386_s16  ;;  %v3864_v34 = vld [vmem:[%s5700_s3 + $0x1] ss:$2 sm:$0x3]  ;;  %v2975_v55 = vrot.slane %v2969_v25, 2 }
 0x886   : > { %v3002_v58 = vrot.slane %v3864_v34, %v5339_v21 }
 0x889   : > { %2780 = vrot.lane.b32.xlu1 %v2775_v48, %s4386_s16  ;;  %2709 = vrot.lane.b32.xlu0 %v2706_v40, %s4386_s16  ;;  %v2748_v48 = vrot.slane %v2742_v41, 2  ;;  %v2768_v40 = vmul.f32 %v2766_v12, %v5326_v19  ;;  %v5360_v41 = vsub.s32 0, %v5212_v13 }
 0x88d   : > { %2982 = vrot.lane.b32.xlu1 %v2977_v30, %s4386_s16  ;;  %2753 = vrot.lane.b32.xlu0 %v2749_v2, %s4385_s27  ;;  %v2774_v30 = vrot.slane %v2768_v40, 2  ;;  %v2442_v2 = vstv %s3839_s20  ;;  %v2503_v40 = vstv %s3842_s22 }
 0x88e   : > { %v2444_v25 = vmul.f32 %v2442_v2, %v5256_v15  ;;  %v2443_v32 = vmul.f32 %v2442_v2, %v5272_v22 }
 0x891   : > { %2978 = vrot.lane.b32.xlu1 %v2975_v55, %s4386_s16  ;;  %2955 = vrot.lane.b32.xlu0 %v2951_v31, %s4385_s27  ;;  %v2767_v55 = vmul.f32 %v2766_v12, %v5316_v39  ;;  %v2480_v31 = vstv %s3841_s21  ;;  %v2998_v12 = vrot.slane %v3864_v34, %v5360_v41  ;;  %v2422_v34 = vmul.f32 %v2421_v38, %v5272_v22 }
 0x895   : > { %3005 = vrot.lane.b32.xlu1 %v3002_v58, %s4375_s28  ;;  %2751 = vrot.lane.b32.xlu0 %v2748_v48, %s4385_s27  ;;  %v2773_v58 = vrot.slane %v2767_v55, 2  ;;  %v2483_v48 = vmul.f32 %v2480_v31, %v5274_v42  ;;  %v2543_v55 = vstv %s3844_s24  ;;  %s3840_s24 = sld [smem:[#allocation4 + $0x9]] }
 0x899   : > { %2432 = vrot.lane.b32.xlu1 %v2424_v26, %s4385_s27  ;;  %2778 = vrot.lane.b32.xlu0 %v2774_v30, %s4386_s16  ;;  %v2489_v26 = vrot.slane %v2483_v48, 1  ;;  %v2505_v30 = vmul.f32 %v2503_v40, %v5295_v17  ;;  %v2566_v48 = vstv %s3845_s25 }
 0x89a   : > { %v2568_v52 = vmul.f32 %v2566_v48, %v5326_v19 }
 0x89b   : > { %v2511_v35 = vrot.slane %v2505_v30, 1  ;;  %v2482_v30 = vmul.f32 %v2480_v31, %v5295_v17 }
 0x89d   : > { %2451 = vrot.lane.b32.xlu1 %v2444_v25, %s4386_s16  ;;  %2980 = vrot.lane.b32.xlu0 %v2976_v16, %s4386_s16  ;;  %v2423_v25 = vmul.f32 %v2421_v38, %v5256_v15  ;;  %v2504_v16 = vmul.f32 %v2503_v40, %v5285_v14  ;;  %v2488_v38 = vrot.slane %v2482_v30, 1  ;;  %v2569_v30 = vmul.f32 %v2566_v48, %v5306_v33 }
 0x8a1   : > { %2449 = vrot.lane.b32.xlu1 %v2443_v32, %s4386_s16  ;;  %2776 = vrot.lane.b32.xlu0 %v2773_v58, %s4386_s16  ;;  %v2510_v32 = vrot.slane %v2504_v16, 1  ;;  %v2546_v58 = vmul.f32 %v2543_v55, %v5306_v33  ;;  %v2481_v16 = vmul.f32 %v2480_v31, %v5285_v14  ;;  %v2544_v31 = vmul.f32 %v2543_v55, %v5316_v39 }
 0x8a5   : > { %2494 = vrot.lane.b32.xlu1 %v2489_v26, %s4385_s27  ;;  %3003 = vrot.lane.b32.xlu0 %v2998_v12, %s4375_s28  ;;  %v2445_v12 = vmul.f32 %v2442_v2, %v5262_v49  ;;  %v2552_v26 = vrot.slane %v2546_v58, 2  ;;  %s3846_s28 = sld [smem:[#allocation4 + $0x1]] }
 0x8a9   : > { %2515 = vrot.lane.b32.xlu1 %v2511_v35, %s4386_s16  ;;  %2430 = vrot.lane.b32.xlu0 %v2423_v25, %s4385_s27  ;;  %v2574_v35 = vrot.slane %v2568_v52, 2  ;;  %v2567_v25 = vmul.f32 %v2566_v48, %v5316_v39 }
 0x8ab   : > { %v2573_v2 = vrot.slane %v2567_v25, 2  ;;  %v2605_v25 = vstv %s3846_s28 }
 0x8ac   : > { %v2607_v54 = vmul.f32 %v2605_v25, %v5256_v15 }
 0x8ad   : > { %2428 = vrot.lane.b32.xlu0 %v2422_v34, %s4385_s27  ;;  %2513 = vrot.lane.b32.xlu1 %v2510_v32, %s4386_s16  ;;  %v2487_v34 = vrot.slane %v2481_v16, 1  ;;  %v2506_v32 = vmul.f32 %v2503_v40, %v5274_v42  ;;  %v2657_v16 = vstv %s3849_s26 }
 0x8af   : > { %v2512_v58 = vrot.slane %v2506_v32, 1 }
 0x8b1   : > { %2453 = vrot.lane.b32.xlu0 %v2445_v12, %s4386_s16  ;;  %2557 = vrot.lane.b32.xlu1 %v2552_v26, %s4385_s27  ;;  %v2545_v12 = vmul.f32 %v2543_v55, %v5326_v19  ;;  %v2550_v26 = vrot.slane %v2544_v31, 2  ;;  %v2608_v55 = vmul.f32 %v2605_v25, %v5262_v49 }
 0x8b3   : > { %v2551_v52 = vrot.slane %v2545_v12, 2  ;;  %v2859_v12 = vstv %s3858_s17  ;;  %s3843_s17 = sld [smem:[#allocation4 + $0x12]] }
 0x8b4   : > { %v2862_v7 = vmul.f32 %v2859_v12, %v5274_v42 }
 0x8b5   : > { %2492 = vrot.lane.b32.xlu0 %v2488_v38, %s4385_s27  ;;  %2578 = vrot.lane.b32.xlu1 %v2574_v35, %s4386_s16  ;;  %v2575_v35 = vrot.slane %v2569_v30, 2 }
 0x8b6   : > { %v2868_v0 = vrot.slane %v2862_v7, 1 }
 0x8b9   : > { %2576 = vrot.lane.b32.xlu1 %v2573_v2, %s4386_s16  ;;  %2490 = vrot.lane.b32.xlu0 %v2487_v34, %s4385_s27  ;;  %v2660_v2 = vmul.f32 %v2657_v16, %v5274_v42 }
 0x8bd   : > { %2517 = vrot.lane.b32.xlu0 %v2512_v58, %s4386_s16  ;;  %v2807_v58 = vstv %s3855_s15 }
 0x8be   : > { %v2810_v31 = vmul.f32 %v2807_v58, %v5262_v49  ;;  %v2809_v46 = vmul.f32 %v2807_v58, %v5256_v15 }
 0x8c1   : > { %2555 = vrot.lane.b32.xlu0 %v2551_v52, %s4385_s27 }
 0x8c5   : > { %2553 = vrot.lane.b32.xlu0 %v2550_v26, %s4385_s27  ;;  %v2666_v26 = vrot.slane %v2660_v2, 1  ;;  %s3852_s27 = sld [smem:[#allocation4 + $0x13]]  ;;  %v2808_v2 = vmul.f32 %v2807_v58, %v5272_v22 }
 0x8c7   : > { %v2825_v40 = vpop.permute.xlu1 %2824  ;;  %v2623_v38 = vpop.permute.xlu0 %2622 }
 0x8c9   : > { %2580 = vrot.lane.b32.xlu0 %v2575_v35, %s4386_s16  ;;  %s3861_s16 = sld [smem:[#allocation4 + $0x14]] }
 0x8cb   : > { %v2647_v34 = vpop.permute.xlu1 %2646  ;;  %v2625_v32 = vpop.permute.xlu0 %2624 }
 0x8cc   : > { %v2633_v48 = vadd.f32 %v2625_v32, %v2608_v55  ;;  %v2627_v53 = vsel %vm2434_vm15, %v2623_v38, %v2625_v32  ;;  %v2861_v32 = vmul.f32 %v2859_v12, %v5295_v17 }
 0x8ce   : > { %v2655_v52 = vadd.f32 %v2647_v34, %v2633_v48 }
 0x8cf   : > { %v2849_v30 = vpop.permute.xlu1 %2848  ;;  %v2827_v35 = vpop.permute.xlu0 %2826 }
 0x8d0   : > { %v2829_v56 = vsel %vm2434_vm15, %v2825_v40, %v2827_v35  ;;  %v2835_v63 = vadd.f32 %v2827_v35, %v2810_v31  ;;  %v2672_v23 = vadd.f32 %v2666_v26, %v2655_v52  ;;  %v2860_v26 = vmul.f32 %v2859_v12, %v5285_v14 }
 0x8d1   : > { %v2834_v60 = vadd.f32 %v2829_v56, %v2809_v46  ;;  %v2632_v46 = vadd.f32 %v2627_v53, %v2607_v54  ;;  %v2926_v54 = vstv %s3861_s16  ;;  %v2867_v12 = vrot.slane %v2861_v32, 1 }
 0x8d2   : > { %v2857_v61 = vadd.f32 %v2849_v30, %v2835_v63  ;;  %v2659_v63 = vmul.f32 %v2657_v16, %v5295_v17  ;;  %v2866_v17 = vrot.slane %v2860_v26, 1 }
 0x8d3   : > { %v2845_v1 = vpop.permute.xlu1 %2844  ;;  %v2621_v55 = vpop.permute.xlu0 %2620 }
 0x8d4   : > { %v2874_v48 = vadd.f32 %v2868_v0, %v2857_v61  ;;  %v5409_v0 = vstv %s3852_s27  ;;  %v2665_v52 = vrot.slane %v2659_v63, 1  ;;  %v2658_v63 = vmul.f32 %v2657_v16, %v5285_v14 }
 0x8d5   : > { %v2727_v53 = vmul.f32 %v5409_v0, %v5306_v33 }
 0x8d7   : > { %v2689_v49 = vpop.permute.xlu1 %2688  ;;  %v2823_v42 = vpop.permute.xlu0 %2822 }
 0x8d8   : > { %v2828_v4 = vsel %vm2434_vm15, %v2823_v42, %v2825_v40  ;;  %v2606_v40 = vmul.f32 %v2605_v25, %v5272_v22  ;;  %v2697_v22 = vadd.f32 %v2689_v49, %v2672_v23 }
 0x8d9   : > { %v2833_v31 = vadd.f32 %v2828_v4, %v2808_v2  ;;  %v2626_v2 = vsel %vm2434_vm15, %v2621_v55, %v2623_v38  ;;  %v2733_v38 = vrot.slane %v2727_v53, 2 }
 0x8da   : > { %v2631_v25 = vadd.f32 %v2626_v2, %v2606_v40 }
 0x8db   : > { %v2891_v56 = vpop.permute.xlu1 %2890  ;;  %v2645_v7 = vpop.permute.xlu0 %2644 }
 0x8dc   : > { %v2649_v61 = vsel %vm2455_vm0, %v2645_v7, %v2647_v34 }
 0x8dd   : > { %v2654_v58 = vadd.f32 %v2649_v61, %v2632_v46 }
 0x8df   : > { %v2887_v15 = vpop.permute.xlu1 %2886  ;;  %v2847_v4 = vpop.permute.xlu0 %2846  ;;  %v2671_v35 = vadd.f32 %v2665_v52, %v2654_v58 }
 0x8e0   : > { %v2850_v34 = vsel %vm2455_vm0, %v2845_v1, %v2847_v4  ;;  %v2851_v42 = vsel %vm2455_vm0, %v2847_v4, %v2849_v30  ;;  %v2929_v1 = vmul.f32 %v2926_v54, %v5306_v33  ;;  %v2664_v30 = vrot.slane %v2658_v63, 1 }
 0x8e1   : > { %v2855_v46 = vadd.f32 %v2850_v34, %v2833_v31  ;;  %v2856_v61 = vadd.f32 %v2851_v42, %v2834_v60  ;;  %v2899_v4 = vadd.f32 %v2891_v56, %v2874_v48 }
 0x8e2   : > { %v2935_v23 = vrot.slane %v2929_v1, 2 }
 0x8e3   : > { %v2714_v5 = vpop.permute.xlu1 %2713  ;;  %v2643_v58 = vpop.permute.xlu0 %2642  ;;  %v2872_v52 = vadd.f32 %v2866_v17, %v2855_v46  ;;  %v2873_v44 = vadd.f32 %v2867_v12, %v2856_v61  ;;  %v2927_v61 = vmul.f32 %v2926_v54, %v5316_v39 }
 0x8e4   : > { %v2722_v43 = vadd.f32 %v2714_v5, %v2697_v22  ;;  %v2648_v62 = vsel %vm2455_vm0, %v2643_v58, %v2645_v7  ;;  %v2726_v7 = vmul.f32 %v5409_v0, %v5326_v19  ;;  %v2928_v22 = vmul.f32 %v2926_v54, %v5326_v19 }
 0x8e5   : > { %v2653_v55 = vadd.f32 %v2648_v62, %v2631_v25 }
 0x8e6   : > { %v2739_v14 = vadd.f32 %v2733_v38, %v2722_v43  ;;  %v2732_v12 = vrot.slane %v2726_v7, 2 }
 0x8e7   : > { %v2916_v16 = vpop.permute.xlu1 %2915  ;;  %v2687_v60 = vpop.permute.xlu0 %2686  ;;  %v2670_v31 = vadd.f32 %v2664_v30, %v2653_v55 }
 0x8e8   : > { %v2924_v26 = vadd.f32 %v2916_v16, %v2899_v4  ;;  %v2691_v46 = vsel %vm2434_vm15, %v2687_v60, %v2689_v49  ;;  %v2934_v4 = vrot.slane %v2928_v22, 2 }
 0x8e9   : > { %v2696_v33 = vadd.f32 %v2691_v46, %v2671_v35 }
 0x8ea   : > { %v2941_v32 = vadd.f32 %v2935_v23, %v2924_v26  ;;  %v2725_v26 = vmul.f32 %v5409_v0, %v5316_v39 }
 0x8eb   : > { %v2912_v40 = vpop.permute.xlu1 %2911  ;;  %v2889_v2 = vpop.permute.xlu0 %2888 }
 0x8ec   : > { %v2892_v43 = vsel %vm2434_vm15, %v2887_v15, %v2889_v2  ;;  %v2893_v48 = vsel %vm2434_vm15, %v2889_v2, %v2891_v56  ;;  %v2933_v56 = vrot.slane %v2927_v61, 2 }
 0x8ed   : > { %v2897_v25 = vadd.f32 %v2892_v43, %v2872_v52  ;;  %v2898_v49 = vadd.f32 %v2893_v48, %v2873_v44 }
 0x8ef   : > { %v2756_v34 = vpop.permute.xlu1 %2755  ;;  %v2685_v42 = vpop.permute.xlu0 %2684 }
 0x8f0   : > { %v2690_v35 = vsel %vm2434_vm15, %v2685_v42, %v2687_v60  ;;  %v2764_v23 = vadd.f32 %v2756_v34, %v2739_v14 }
 0x8f1   : > { %v2695_v19 = vadd.f32 %v2690_v35, %v2670_v31 }
 0x8f3   : > { %v2958_v62 = vpop.permute.xlu1 %2957  ;;  %v2712_v53 = vpop.permute.xlu0 %2711 }
 0x8f4   : > { %v2716_v63 = vsel %vm2455_vm0, %v2712_v53, %v2714_v5 }
 0x8f5   : > { %v2721_v17 = vadd.f32 %v2716_v63, %v2696_v33 }
 0x8f7   : > { %v2954_v58 = vpop.permute.xlu1 %2953  ;;  %v2914_v38 = vpop.permute.xlu0 %2913  ;;  %v2738_v1 = vadd.f32 %v2732_v12, %v2721_v17 }
 0x8f8   : > { %v2917_v55 = vsel %vm2455_vm0, %v2912_v40, %v2914_v38  ;;  %v2918_v15 = vsel %vm2455_vm0, %v2914_v38, %v2916_v16  ;;  %v2731_v40 = vrot.slane %v2725_v26, 2  ;;  %v2966_v38 = vadd.f32 %v2958_v62, %v2941_v32 }
 0x8f9   : > { %v2922_v30 = vadd.f32 %v2917_v55, %v2897_v25  ;;  %v2923_v5 = vadd.f32 %v2918_v15, %v2898_v49 }
 0x8fb   : > { %v2781_v54 = vpop.permute.xlu1 %2780  ;;  %v2710_v44 = vpop.permute.xlu0 %2709  ;;  %v2939_v52 = vadd.f32 %v2933_v56, %v2922_v30  ;;  %v2940_v2 = vadd.f32 %v2934_v4, %v2923_v5 }
 0x8fc   : > { %v2789_v46 = vadd.f32 %v2781_v54, %v2764_v23  ;;  %v2715_v60 = vsel %vm2455_vm0, %v2710_v44, %v2712_v53 }
 0x8fd   : > { %v2720_v42 = vadd.f32 %v2715_v60, %v2695_v19 }
 0x8fe   : > { %2797 = vrot.lane.b32.xlu1 %v2789_v46, %s4381_s19 }
 0x8ff   : > { %v2754_v16 = vpop.permute.xlu0 %2753  ;;  %v2737_v7 = vadd.f32 %v2731_v40, %v2720_v42  ;;  %v2983_v39 = vpop.permute.xlu1 %2982 }
 0x900   : > { %v2758_v48 = vsel %vm2434_vm15, %v2754_v16, %v2756_v34  ;;  %v2991_v56 = vadd.f32 %v2983_v39, %v2966_v38 }
 0x901   : > { %v2763_v0 = vadd.f32 %v2758_v48, %v2738_v1 }
 0x903   : > { %v2956_v33 = vpop.permute.xlu0 %2955  ;;  %v2979_v53 = vpop.permute.xlu1 %2978 }
 0x904   : > { %v2960_v12 = vsel %vm2434_vm15, %v2956_v33, %v2958_v62  ;;  %v2959_v55 = vsel %vm2434_vm15, %v2954_v58, %v2956_v33  ;;  %v5776_v62 = vmov 0   ;;  %v5777_v58 = vmov 1   ;;  %v3049_v33 = vld [vmem:[%s5710_s13 + $0x18] sm:$0xff] }
 0x905   : > { %v2965_v1 = vadd.f32 %v2960_v12, %v2940_v2  ;;  %v2964_v23 = vadd.f32 %v2959_v55, %v2939_v52  ;;  %v5778_v52 = vmov 2   ;;  %v4387_v2 = vmov 3  }
 0x907   : > { %v2752_v43 = vpop.permute.xlu0 %2751  ;;  %v3006_v15 = vpop.permute.xlu1 %3005 }
 0x908   : > { %v2757_v17 = vsel %vm2434_vm15, %v2752_v43, %v2754_v16  ;;  %v3013_v19 = vmul.f32 %v3006_v15, %v2991_v56 }
 0x909   : > { %v2762_v22 = vadd.f32 %v2757_v17, %v2737_v7 }
 0x90b   : > { %v2779_v14 = vpop.permute.xlu0 %2778  ;;  %v2433_v60 = vpop.permute.xlu1 %2432 }
 0x90c   : > { %v2783_v31 = vsel %vm2455_vm0, %v2779_v14, %v2781_v54 }
 0x90d   : > { %v2788_v63 = vadd.f32 %v2783_v31, %v2763_v0 }
 0x90f   : > { %2795 = vrot.lane.b32.xlu0 %v2788_v63, %s4381_s19  ;;  %v2981_v61 = vpop.permute.xlu0 %2980  ;;  %v2452_v40 = vpop.permute.xlu1 %2451  ;;  %v2410_v63 = vld [vmem:[#allocation3] sm:$0xf] }
 0x910   : > { %v2985_v49 = vsel %vm2455_vm0, %v2981_v61, %v2983_v39  ;;  %v2984_v4 = vsel %vm2455_vm0, %v2979_v53, %v2981_v61  ;;  %v2411_v39 = vld [vmem:[#allocation3 + $0x8] sm:$0xf]  ;;  %v2465_v53 = vstv %s3840_s24 }
 0x911   : > { %v2990_v30 = vadd.f32 %v2985_v49, %v2965_v1  ;;  %v2989_v44 = vadd.f32 %v2984_v4, %v2964_v23  ;;  %v2464_v61 = vld [vmem:[#allocation3 + $0x8] sm:$0x1e]  ;;  %v2463_v1 = vld [vmem:[#allocation3] sm:$0x1e] }
 0x912   : > { %v2467_v38 = vmul.f32 %v2465_v53, %v2464_v61 }
 0x913   : > { %v2777_v25 = vpop.permute.xlu0 %2776 }
 0x914   : > { %v2782_v34 = vsel %vm2455_vm0, %v2777_v25, %v2779_v14  ;;  %v2471_v56 = vrot.slane %v2467_v38, 1 }
 0x915   : > { %v2787_v35 = vadd.f32 %v2782_v34, %v2762_v22 }
 0x917   : > { %2793 = vrot.lane.b32.xlu0 %v2787_v35, %s4381_s19  ;;  %v3004_v5 = vpop.permute.xlu0 %3003 }
 0x918   : > { %v3007_v26 = vsel %vm1045_vm2, %v3004_v5, %v3006_v15  ;;  %v3011_v32 = vmul.f32 %v3004_v5, %v2989_v44  ;;  %v2528_v44 = vstv %s3843_s17  ;;  %vm3023_vm2 = vcmask 1031168   ;;  %s5622_s17 = scalar_lea.vmem %s5711_s14, %s3907_s23 }
 0x919   : > { %v3012_v54 = vmul.f32 %v3007_v26, %v2990_v30  ;;  %v2466_v30 = vmul.f32 %v2465_v53, %v2463_v1 }
 0x91b   : > { %3021 = vrot.lane.b32.xlu0 %v3013_v19, %s4380_s18  ;;  %3019 = vrot.lane.b32.xlu1 %v3012_v54, %s4380_s18  ;;  %v2431_v46 = vpop.permute.xlu0 %2430  ;;  %v2527_v54 = vld [vmem:[#allocation3 + $0x8] sm:$0x3c] }
 0x91c   : > { %v2436_v31 = vsel %vm2434_vm15, %v2431_v46, %v2433_v60  ;;  %v2530_v60 = vmul.f32 %v2528_v44, %v2527_v54 }
 0x91f   : > { %3240 = vperm.xlu0 %4289, %v5228_v47   ;;  %3017 = vrot.lane.b32.xlu1 %v3011_v32, %s4380_s18  ;;  %v2429_v42 = vpop.permute.xlu0 %2428  ;;  %s2409_s18 = sld [smem:[#allocation4]] }
 0x920   : > { %v2435_v22 = vsel %vm2434_vm15, %v2429_v42, %v2431_v46 }
 0x923   : > { %4290 = vset.pattern.permute.xlu0 %v5776_v62  ;;  %3065 = vperm.xlu1 %4287, %v5224_v57   ;;  %v2454_v16 = vpop.permute.xlu0 %2453 }
 0x924   : > { %3060 = vperm.xlu0 %4290, %v5228_v47   ;;  %v2457_v25 = vsel %vm2455_vm0, %v2452_v40, %v2454_v16  ;;  %v2526_v16 = vld [vmem:[#allocation3] sm:$0x3c] }
 0x925   : > { %v2412_v0 = vstv %s2409_s18 }
 0x926   : > { %v2414_v17 = vmul.f32 %v2412_v0, %v2411_v39  ;;  %v2413_v34 = vmul.f32 %v2412_v0, %v2410_v63 }
 0x927   : > { %4291 = vset.pattern.permute.xlu1 %v5777_v58  ;;  %v2493_v7 = vpop.permute.xlu0 %2492 }
 0x928   : > { %3075 = vperm.xlu0 %4290, %v5233_v3   ;;  %3244 = vperm.xlu1 %4291, %v5224_v57   ;;  %v2440_v49 = vadd.f32 %v2436_v31, %v2414_v17  ;;  %v2439_v55 = vadd.f32 %v2435_v22, %v2413_v34  ;;  %v2588_v22 = vld [vmem:[%s5700_s3] ss:$2 sm:$0x3] }
 0x92a   : > { %v2461_v15 = vadd.f32 %v2457_v25, %v2440_v49  ;;  %v2597_v49 = vrot.slane %v2588_v22, %v5339_v21 }
 0x92b   : > { %v2491_v48 = vpop.permute.xlu0 %2490 }
 0x92c   : > { %4294 = vset.pattern.permute.xlu0 %v5778_v52  ;;  %4292 = vset.pattern.permute.xlu1 %v5776_v62  ;;  %v2475_v23 = vadd.f32 %v2471_v56, %v2461_v15  ;;  %v2593_v56 = vrot.slane %v2588_v22, %v5360_v41 }
 0x92d   : > { %3386 = vperm.xlu0 %4294, %v5228_v47   ;;  %3070 = vperm.xlu1 %4292, %v5235_v24  }
 0x92f   : > { %v2518_v12 = vpop.permute.xlu0 %2517 }
 0x931   : > { %4297 = vset.pattern.permute.xlu0 %v4387_v2  ;;  %4293 = vset.pattern.permute.xlu1 %v5777_v58  ;;  %v2496_v58 = vsel %vm2434_vm15, %v2491_v48, %v2493_v7 }
 0x932   : > { %3536 = vperm.xlu0 %4297, %v5224_v57   ;;  %3248 = vperm.xlu1 %4293, %v5235_v24  }
 0x933   : > { %v2556_v5 = vpop.permute.xlu0 %2555 }
 0x936   : > { %3540 = vperm.xlu0 %4297, %v5235_v24   ;;  %3252 = vperm.xlu1 %4293, %v5233_v3  }
 0x937   : > { %v2554_v42 = vpop.permute.xlu0 %2553 }
 0x938   : > { %v2559_v48 = vsel %vm2434_vm15, %v2554_v42, %v2556_v5 }
 0x93a   : > { %4295 = vset.pattern.permute.xlu1 %v5778_v52  ;;  %4300 = vset.pattern.permute.xlu0 %v5776_v62 }
 0x93b   : > { %3390 = vperm.xlu1 %4295, %v5224_v57   ;;  %v2450_v57 = vpop.permute.xlu1 %2449  ;;  %v2581_v0 = vpop.permute.xlu0 %2580 }
 0x93c   : > { %v2456_v4 = vsel %vm2455_vm0, %v2450_v57, %v2452_v40  ;;  %v2534_v57 = vrot.slane %v2530_v60, 2 }
 0x93d   : > { %v2460_v26 = vadd.f32 %v2456_v4, %v2439_v55 }
 0x93f   : > { %4296 = vset.pattern.permute.xlu1 %v4387_v2  ;;  %v2495_v43 = vpop.permute.xlu1 %2494 }
 0x940   : > { %3532 = vperm.xlu1 %4296, %v5228_v47   ;;  %v3046_v47 = vld [vmem:[%s5710_s13] sm:$0xff]  ;;  %v2497_v19 = vsel %vm2434_vm15, %v2493_v7, %v2495_v43 }
 0x941   : > { %3112 = vperm.xlu0 %4300, %v3046_v47  }
 0x943   : > { %v2516_v14 = vpop.permute.xlu1 %2515 }
 0x944   : > { %4298 = vset.pattern.permute.xlu1 %v5778_v52  ;;  %v2520_v52 = vsel %vm2455_vm0, %v2516_v14, %v2518_v12 }
 0x945   : > { %3394 = vperm.xlu1 %4298, %v5235_v24   ;;  %v3047_v24 = vld [vmem:[%s5710_s13 + $0x8] sm:$0xff]  ;;  %3127 = vperm.xlu0 %4300, %v3049_v33  }
 0x947   : > { %v2514_v35 = vpop.permute.xlu1 %2513 }
 0x948   : > { %v2519_v33 = vsel %vm2455_vm0, %v2514_v35, %v2516_v14 }
 0x949   : > { %3398 = vperm.xlu1 %4298, %v5233_v3   ;;  %4302 = vset.pattern.permute.xlu0 %v4387_v2 }
 0x94b   : > { %v2558_v32 = vpop.permute.xlu1 %2557 }
 0x94c   : > { %v2560_v31 = vsel %vm2434_vm15, %v2556_v5, %v2558_v32 }
 0x94d   : > { %4299 = vset.pattern.permute.xlu1 %v4387_v2  ;;  %v2501_v2 = vadd.f32 %v2497_v19, %v2475_v23 }
 0x94e   : > { %3544 = vperm.xlu1 %4299, %v5233_v3   ;;  %v3048_v3 = vld [vmem:[%s5710_s13 + $0x10] sm:$0xff] }
 0x94f   : > { %v2579_v40 = vpop.permute.xlu1 %2578 }
 0x950   : > { %v2583_v63 = vsel %vm2455_vm0, %v2579_v40, %v2581_v0 }
 0x952   : > { %4301 = vset.pattern.permute.xlu1 %v5776_v62  ;;  %v2470_v62 = vrot.slane %v2466_v30, 1 }
 0x953   : > { %3117 = vperm.xlu1 %4301, %v3047_v24   ;;  %v2524_v24 = vadd.f32 %v2520_v52, %v2501_v2  ;;  %v2577_v61 = vpop.permute.xlu1 %2576 }
 0x954   : > { %v2474_v46 = vadd.f32 %v2470_v62, %v2460_v26  ;;  %v2582_v1 = vsel %vm2455_vm0, %v2577_v61, %v2579_v40 }
 0x955   : > { %v2538_v39 = vadd.f32 %v2534_v57, %v2524_v24 }
 0x956   : > { %v2500_v47 = vadd.f32 %v2496_v58, %v2474_v46 }
 0x957   : > { %3122 = vperm.xlu1 %4301, %v3048_v3   ;;  %v2529_v3 = vmul.f32 %v2528_v44, %v2526_v16  ;;  %v2564_v53 = vadd.f32 %v2560_v31, %v2538_v39 }
 0x958   : > { %v2523_v43 = vadd.f32 %v2519_v33, %v2500_v47 }
 0x959   : > { %v2533_v7 = vrot.slane %v2529_v3, 2  ;;  %v2587_v14 = vadd.f32 %v2583_v63, %v2564_v53 }
 0x95b   : > { %v2537_v17 = vadd.f32 %v2533_v7, %v2523_v43  ;;  %v2601_v15 = vmul.f32 %v2597_v49, %v2587_v14  ;;  %v3549_v14 = vsub.s32 3, %v5212_v13 }
 0x95d   : > { %v2563_v25 = vadd.f32 %v2559_v48, %v2537_v17 }
 0x95f   : > { %v2586_v55 = vadd.f32 %v2582_v1, %v2563_v25  ;;  %v3403_v25 = vsub.s32 2, %v5212_v13 }
 0x961   : > { %v2600_v19 = vmul.f32 %v2593_v56, %v2586_v55 }
 0x970   : > { %v2798_v34 = vpop.permute.xlu1 %2797 }
 0x981   : > { %v2796_v12 = vpop.permute.xlu0 %2795 }
 0x982   : > { %v2801_v35 = vsel %vm2799_vm1, %v2796_v12, %v2798_v34 }
 0x983   : > { %v2805_v30 = vadd.f32 %v2801_v35, %v2601_v15 }
 0x989   : > { %v2794_v38 = vpop.permute.xlu0 %2793 }
 0x98a   : > { %v2800_v26 = vsel %vm2799_vm1, %v2794_v38, %v2796_v12 }
 0x98b   : > { %v2804_v44 = vadd.f32 %v2800_v26, %v2600_v19 }
 0x98d   : > { %v3020_v5 = vpop.permute.xlu1 %3019  ;;  %v3022_v4 = vpop.permute.xlu0 %3021 }
 0x98e   : > { %v3025_v23 = vsel %vm3023_vm2, %v3020_v5, %v3022_v4 }
 0x98f   : > { %v3029_v54 = vadd.f32 %v3025_v23, %v2805_v30 }
 0x991   : > { %v3031_v32 = vsub.f32 0.0, %v3029_v54  ;;  %v3018_v62 = vpop.permute.xlu1 %3017 }
 0x992   : > { %v3024_v58 = vsel %vm3023_vm2, %v3018_v62, %v3020_v5 }
 0x993   : > { %v3034_v52 = vmul.f32 1.442695, %v3031_v32  ;;  %v3028_v2 = vadd.f32 %v3024_v58, %v2804_v44 }
 0x995   : > { %4335 = vpow2.f32 %v3034_v52  ;;  %v3030_v46 = vsub.f32 0.0, %v3028_v2 }
 0x997   : > { %v3032_v60 = vmul.f32 1.442695, %v3030_v46 }
 0x999   : > { %4337 = vpow2.f32 %v3032_v60 }
 0x99e   : > { %v3241_v47 = vpop.permute.xlu0 %3240 }
 0x99f   : > { %v4336_v42 = vpop.eup %4335 }
 0x9a0   : > { %v3037_v16 = vadd.f32 1.0, %v4336_v42 }
 0x9a2   : > { %4339 = vrcp.f32 %v3037_v16  ;;  %v3066_v24 = vpop.permute.xlu1 %3065 }
 0x9a3   : > { %v4338_v40 = vpop.eup %4337  ;;  %v3061_v3 = vpop.permute.xlu0 %3060 }
 0x9a4   : > { %v3036_v57 = vadd.f32 1.0, %v4338_v40 }
 0x9a6   : > { %4341 = vrcp.f32 %v3036_v57 }
 0x9a7   : > { %v3245_v33 = vpop.permute.xlu1 %3244  ;;  %v3076_v39 = vpop.permute.xlu0 %3075 }
 0x9ac   : > { %v4340_v43 = vpop.eup %4339  ;;  %v3071_v0 = vpop.permute.xlu1 %3070 }
 0x9ad   : > { %v3262_v31 = vrot.slane %v4340_v43, %v5339_v21  ;;  %v3085_v7 = vrot.slane %v4340_v43, %v5360_v41  ;;  %v3387_v35 = vpop.permute.xlu0 %3386  ;;  %v5522_v62 = vrot.slane %v4340_v43, %v3403_v25 }
 0x9af   : > { %v3264_v48 = vadd.f32 %v3262_v31, %v3241_v47  ;;  %v3089_v63 = vadd.f32 %v3085_v7, %v3066_v24  ;;  %v3087_v53 = vadd.f32 %v3085_v7, %v3061_v3  ;;  %v3266_v17 = vadd.f32 %v3262_v31, %v3245_v33 }
 0x9b0   : > { %v4342_v61 = vpop.eup %4341  ;;  %v3093_v1 = vadd.f32 %v3085_v7, %v3076_v39  ;;  %v3091_v55 = vadd.f32 %v3085_v7, %v3071_v0 }
 0x9b1   : > { %v3258_v12 = vrot.slane %v4342_v61, %v5339_v21  ;;  %v3081_v22 = vrot.slane %v4342_v61, %v5360_v41  ;;  %v3249_v49 = vpop.permute.xlu1 %3248  ;;  %v3280_v34 = vmul.f32 %v3264_v48, %v4758_v6  ;;  %v3105_v38 = vmul.f32 %v3089_v63, %v4677_v18 }
 0x9b2   : > { %v3103_v21 = vmul.f32 %v3087_v53, %v4660_v8  ;;  %v3282_v41 = vmul.f32 %v3266_v17, %v4770_v29  ;;  %v5519_v54 = vrot.slane %v4342_v61, %v3403_v25  ;;  %v3109_v32 = vmul.f32 %v3093_v1, %v4715_v37  ;;  %v5782_v53 = vld [vmem:[#allocation9_spill] sm:$0xff]  ;;  %v5784_v1 = vld [vmem:[#allocation18_spill] sm:$0xff] }
 0x9b3   : > { %v3263_v15 = vadd.f32 %v3258_v12, %v3241_v47  ;;  %v3088_v56 = vadd.f32 %v3081_v22, %v3066_v24  ;;  %v3086_v30 = vadd.f32 %v3081_v22, %v3061_v3  ;;  %v3265_v5 = vadd.f32 %v3258_v12, %v3245_v33 }
 0x9b4   : > { %v3092_v4 = vadd.f32 %v3081_v22, %v3076_v39  ;;  %v3090_v26 = vadd.f32 %v3081_v22, %v3071_v0  ;;  %v5524_v8 = vrot.slane %v4340_v43, %v3549_v14  ;;  %v3107_v58 = vmul.f32 %v3091_v55, %v4697_v28  ;;  %v5779_v0 = vld [vmem:[#allocation8_spill] sm:$0xff] }
 0x9b5   : > { %v3279_v13 = vmul.f32 %v3263_v15, %v4760_v10  ;;  %v3104_v23 = vmul.f32 %v3088_v56, %v4695_v27  ;;  %v3102_v6 = vmul.f32 %v3086_v30, %v4662_v9  ;;  %v3281_v18 = vmul.f32 %v3265_v5, %v4791_v45  ;;  %v3253_v19 = vpop.permute.xlu1 %3252  ;;  %v3537_v10 = vpop.permute.xlu0 %3536  ;;  %v5785_v55 = vld [vmem:[#allocation16_spill] sm:$0xff]  ;;  %v5786_v56 = vld [vmem:[#allocation15_spill] sm:$0xff] }
 0x9b6   : > { %v3267_v52 = vadd.f32 %v3258_v12, %v3249_v49  ;;  %v4210_v27 = vpack.c.bf16 %v3105_v38, %v3103_v21  ;;  %v3108_v9 = vmul.f32 %v3092_v4, %v4738_v50  ;;  %v3106_v45 = vmul.f32 %v3090_v26, %v4713_v36  ;;  %v3043_v26 = vld [vmem:[%s5709_s12 + $0x8] sm:$0xff] }
 0x9b7   : > { %v4212_v44 = vpack.c.bf16 %v3104_v23, %v3102_v6  ;;  %v4220_v29 = vpack.c.bf16 %v3281_v18, %v3279_v13  ;;  %v3268_v2 = vadd.f32 %v3262_v31, %v3249_v49  ;;  %v4218_v46 = vpack.c.bf16 %v3282_v41, %v3280_v34  ;;  %v5783_v49 = vld [vmem:[#allocation17_spill] sm:$0xff] }
 0x9b8   : > { %v3409_v60 = vadd.f32 %v5519_v54, %v3387_v35  ;;  %v5530_v42 = vrot.slane %v4342_v61, %v3549_v14  ;;  %4211 = vmatprep.subr.bf16.mxu0 %v4210_v27  ;;  %v3269_v37 = vadd.f32 %v3258_v12, %v3253_v19  ;;  %v3410_v47 = vadd.f32 %v5522_v62, %v3387_v35 }
 0x9b9   : > { %v3558_v28 = vadd.f32 %v5524_v8, %v3537_v10  ;;  %4219 = vmatprep.subr.bf16.mxu1 %v4218_v46  ;;  %v3270_v24 = vadd.f32 %v3262_v31, %v3253_v19  ;;  %4213 = vmatpush1.bf16.msra.mxu0 %v4212_v44  ;;  %v3283_v50 = vmul.f32 %v3267_v52, %v4814_v59  ;;  %v5780_v59 = vld [vmem:[#allocation10_spill] sm:$0xff]  ;;  %v5787_v5 = vmov 0.0   ;;  %v3541_v13 = vpop.permute.xlu0 %3540  ;;  %v5789_v52 = vld [vmem:[#allocation11_spill] sm:$0xff] }
 0x9ba   : > { %v3391_v16 = vpop.permute.xlu1 %3390  ;;  %v3285_v36 = vmul.f32 %v3269_v37, %v4832_v20  ;;  %4221 = vmatpush1.bf16.msra.mxu1 %v4220_v29  ;;  %v4214_v40 = vpack.c.bf16 %v3109_v32, %v3107_v58  ;;  %v4216_v3 = vpack.c.bf16 %v3108_v9, %v3106_v45  ;;  %v3284_v33 = vmul.f32 %v3268_v2, %v4797_v51  ;;  %v5781_v20 = vld [vmem:[#allocation7_spill] sm:$0xff]  ;;  %v5548_v51 = vld [vmem:[%s5709_s12] sm:$0xff]  ;;  %v3044_v19 = vld [vmem:[%s5709_s12 + $0x10] sm:$0xff] }
 0x9bb   : > { %v3411_v57 = vadd.f32 %v5519_v54, %v3391_v16  ;;  %v3286_v43 = vmul.f32 %v3270_v24, %v4818_v11  ;;  %v3412_v39 = vadd.f32 %v5522_v62, %v3391_v16  ;;  %v3425_v7 = vmul.f32 %v3409_v60, %v5779_v0  ;;  %v5788_v58 = vld [vmem:[#allocation12_spill] sm:$0xff]  ;;  %v5790_v9 = vld [vmem:[#allocation14_spill] sm:$0xff]  ;;  %v5791_v2 = vld [vmem:[#allocation13_spill] sm:$0xff] }
 0x9bc   : > { %v3557_v31 = vadd.f32 %v5530_v42, %v3537_v10  ;;  %v4224_v48 = vpack.c.bf16 %v3285_v36, %v3283_v50  ;;  %4215 = vmatprep.subr.bf16.mxu0 %v4214_v40  ;;  %v3426_v61 = vmul.f32 %v3410_v47, %v5781_v20  ;;  %v3574_v34 = vmul.f32 %v3558_v28, %v5783_v49  ;;  %v5792_v24 = vld [vmem:[#allocation20_spill] sm:$0xff]  ;;  %v5793_v36 = vld [vmem:[#allocation19_spill] sm:$0xff] }
 0x9bd   : > { %v3427_v63 = vmul.f32 %v3411_v57, %v5780_v59  ;;  %v3428_v17 = vmul.f32 %v3412_v39, %v5782_v53  ;;  %v4222_v12 = vpack.c.bf16 %v3286_v43, %v3284_v33  ;;  %4217 = vmatpush1.bf16.msra.mxu0 %v4216_v3  ;;  %v3559_v29 = vadd.f32 %v5530_v42, %v3541_v13  ;;  %v5794_v57 = vld [vmem:[#allocation22_spill] sm:$0xff]  ;;  %v5795_v33 = vld [vmem:[#allocation21_spill] sm:$0xff] }
 0x9be   : > { %v3573_v35 = vmul.f32 %v3557_v31, %v5784_v1 }
 0x9bf   : > { %v3533_v22 = vpop.permute.xlu1 %3532  ;;  %v4228_v11 = vpack.c.bf16 %v3427_v63, %v3425_v7  ;;  %4223 = vmatprep.subr.bf16.mxu1 %v4222_v12  ;;  %v4226_v38 = vpack.c.bf16 %v3428_v17, %v3426_v61  ;;  %v3575_v50 = vmul.f32 %v3559_v29, %v5792_v24 }
 0x9c0   : > { %v3555_v25 = vadd.f32 %v5530_v42, %v3533_v22  ;;  %v3556_v14 = vadd.f32 %v5524_v8, %v3533_v22  ;;  %4225 = vmatpush1.bf16.msra.mxu1 %v4224_v48  ;;  %3865 = vmatmul.mubr.msk.f32.vlgmr.msra.gmra.mrb[32].mxu0 %vm1060_vm4, %v5548_v51  ;;  %v5615_v39 = vpop.permute.xlu0 %3112 }
 0x9c1   : > { %4227 = vmatprep.subr.bf16.mxu0 %v4226_v38  ;;  %3212 = vmatprep.mubr.f32.mxu0 %v5787_v5 }
 0x9c2   : > { %v3571_v15 = vmul.f32 %v3555_v25, %v5785_v55  ;;  %v3572_v30 = vmul.f32 %v3556_v14, %v5786_v56  ;;  %4229 = vmatpush1.bf16.msra.mxu0 %v4228_v11 }
 0x9c3   : > { %3869 = vmatmul.mubr.msk.f32.vlgmr.msra.gmra.mrb[28].mxu1 %vm1060_vm4, %v5548_v51 }
 0x9c4   : > { %v4236_v21 = vpack.c.bf16 %v3573_v35, %v3571_v15  ;;  %v3395_v41 = vpop.permute.xlu1 %3394  ;;  %v4234_v4 = vpack.c.bf16 %v3574_v34, %v3572_v30  ;;  %3357 = vmatprep.mubr.f32.mxu1 %v5787_v5  ;;  %3866 = vmatmul.mubr.msk.f32.gmra.mrb[34].mxu0 %vm1060_vm4, %v3043_v26  ;;  %v5646_v56 = vpop.permute.xlu0 %3127 }
 0x9c5   : > { %v3413_v23 = vadd.f32 %v5519_v54, %v3395_v41  ;;  %v3414_v6 = vadd.f32 %v5522_v62, %v3395_v41  ;;  %3218 = vmatprep.mubr.f32.mxu0 %v5787_v5 }
 0x9c6   : > { %4235 = vmatprep.subr.bf16.mxu1 %v4234_v4 }
 0x9c7   : > { %4237 = vmatpush1.bf16.msra.mxu1 %v4236_v21  ;;  %v3429_v10 = vmul.f32 %v3413_v23, %v5788_v58  ;;  %v3430_v27 = vmul.f32 %v3414_v6, %v5789_v52 }
 0x9c8   : > { %v3399_v18 = vpop.permute.xlu1 %3398  ;;  %3870 = vmatmul.mubr.msk.f32.gmra.mrb[30].mxu1 %vm1060_vm4, %v3043_v26  ;;  %3867 = vmatmul.mubr.msk.f32.gmra.mrb[36].mxu0 %vm1060_vm4, %v3044_v19 }
 0x9c9   : > { %v3415_v44 = vadd.f32 %v5519_v54, %v3399_v18  ;;  %v3416_v32 = vadd.f32 %v5522_v62, %v3399_v18  ;;  %3363 = vmatprep.mubr.f32.mxu1 %v5787_v5  ;;  %v3560_v54 = vadd.f32 %v5524_v8, %v3541_v13  ;;  %3224 = vmatprep.mubr.f32.mxu0 %v5787_v5  ;;  %v3045_v62 = vld [vmem:[%s5709_s12 + $0x18] sm:$0xff] }
 0x9cb   : > { %v3431_v45 = vmul.f32 %v3415_v44, %v5790_v9  ;;  %v3432_v46 = vmul.f32 %v3416_v32, %v5791_v2  ;;  %v3576_v40 = vmul.f32 %v3560_v54, %v5793_v36 }
 0x9cc   : > { %3871 = vmatmul.mubr.msk.f32.gmra.mrb[32].mxu1 %vm1060_vm4, %v3044_v19  ;;  %3868 = vmatmul.mubr.msk.f32.gmra.mrb[38].mxu0 %vm1060_vm4, %v3045_v62 }
 0x9cd   : > { %v4232_v60 = vpack.c.bf16 %v3431_v45, %v3429_v10  ;;  %v3545_v37 = vpop.permute.xlu1 %3544  ;;  %v4230_v16 = vpack.c.bf16 %v3432_v46, %v3430_v27  ;;  %3369 = vmatprep.mubr.f32.mxu1 %v5787_v5  ;;  %3497 = vmatprep.mubr.f32.mxu0 %v5787_v5 }
 0x9ce   : > { %v3561_v47 = vadd.f32 %v5530_v42, %v3545_v37  ;;  %v3562_v28 = vadd.f32 %v5524_v8, %v3545_v37 }
 0x9cf   : > { %4231 = vmatprep.subr.bf16.mxu0 %v4230_v16 }
 0x9d0   : > { %v3577_v3 = vmul.f32 %v3561_v47, %v5794_v57  ;;  %v3578_v43 = vmul.f32 %v3562_v28, %v5795_v33  ;;  %4233 = vmatpush1.bf16.msra.mxu0 %v4232_v60  ;;  %3872 = vmatmul.mubr.msk.f32.gmra.mrb[34].mxu1 %vm1060_vm4, %v3045_v62 }
 0x9d1   : > { %3643 = vmatprep.mubr.f32.mxu1 %v5787_v5 }
 0x9d2   : > { %v4240_v42 = vpack.c.bf16 %v3577_v3, %v3575_v50  ;;  %v4238_v8 = vpack.c.bf16 %v3578_v43, %v3576_v40  ;;  %v5625_v48 = vpop.permute.xlu1 %3117 }
 0x9d3   : > { %3881 = vmatmul.mubr.msk.f32.vlgmr.msra.gmra.mrb[40].mxu0 %vm1060_vm4, %v5548_v51 }
 0x9d4   : > { %4239 = vmatprep.subr.bf16.mxu1 %v4238_v8  ;;  %3503 = vmatprep.mubr.f32.mxu0 %v5787_v5 }
 0x9d5   : > { %4241 = vmatpush1.bf16.msra.mxu1 %v4240_v42 }
 0x9d6   : > { %v5636_v25 = vpop.permute.xlu1 %3122 }
 0x9d7   : > { %3882 = vmatmul.mubr.msk.f32.gmra.mrb[42].mxu0 %vm1060_vm4, %v3043_v26 }
 0x9d8   : > { %3893 = vmatmul.mubr.msk.f32.vlgmr.msra.gmra.mrb[36].mxu1 %vm1060_vm4, %v5548_v51  ;;  %3509 = vmatprep.mubr.f32.mxu0 %v5787_v5 }
 0x9d9   : > { %3649 = vmatprep.mubr.f32.mxu1 %v5787_v5 }
 0x9db   : > { %3883 = vmatmul.mubr.msk.f32.gmra.mrb[44].mxu0 %vm1060_vm4, %v3044_v19 }
 0x9dc   : > { %3894 = vmatmul.mubr.msk.f32.gmra.mrb[38].mxu1 %vm1060_vm4, %v3043_v26  ;;  %3515 = vmatprep.mubr.f32.mxu0 %v5787_v5 }
 0x9dd   : > { %3655 = vmatprep.mubr.f32.mxu1 %v5787_v5 }
 0x9df   : > { %3884 = vmatmul.mubr.msk.f32.gmra.mrb[46].mxu0 %vm1060_vm4, %v3045_v62 }
 0x9e0   : > { %3895 = vmatmul.mubr.msk.f32.gmra.mrb[40].mxu1 %vm1060_vm4, %v3044_v19 }
 0x9e1   : > { %3661 = vmatprep.mubr.f32.mxu1 %v5787_v5 }
 0x9e4   : > { %3896 = vmatmul.mubr.msk.f32.gmra.mrb[42].mxu1 %vm1060_vm4, %v3045_v62 }
 0xa93   : > { %v3208_v0 = vpop.f32.mrb[32].mxu0 }
 0xa94   : > { %v3209_v7 = vadd.f32 %v3208_v0, %v5615_v39  ;;  %v3210_v31 = vpop.f32.mrb[33].mxu0 }
 0xa95   : > { %v3211_v59 = vadd.f32 %v3210_v31, %v5615_v39 }
 0xa96   : > { %v3353_v63 = vpop.f32.mrb[28].mxu1  ;;  %3231 = vst [vmem:[%s5622_s17] sm:$0xff] %v3209_v7 }
 0xa97   : > { %v3354_v20 = vadd.f32 %v3353_v63, %v5615_v39  ;;  %3232 = vst [vmem:[%s5622_s17 + $0x8] sm:$0xff] %v3211_v59  ;;  %v3355_v61 = vpop.f32.mrb[29].mxu1  ;;  %v3214_v17 = vpop.f32.mrb[34].mxu0 }
 0xa98   : > { %v3356_v53 = vadd.f32 %v3355_v61, %v5615_v39  ;;  %v3216_v12 = vpop.f32.mrb[35].mxu0  ;;  %v3215_v22 = vadd.f32 %v3214_v17, %v5625_v48 }
 0xa99   : > { %3873 = vst [vmem:[%s5622_s17 + $0x40] sm:$0xff] %v3354_v20  ;;  %v3217_v11 = vadd.f32 %v3216_v12, %v5625_v48 }
 0xa9a   : > { %3874 = vst [vmem:[%s5622_s17 + $0x48] sm:$0xff] %v3356_v53  ;;  %3233 = vst [vmem:[%s5622_s17 + $0x10] sm:$0xff] %v3215_v22 }
 0xa9b   : > { %v3359_v51 = vpop.f32.mrb[30].mxu1  ;;  %3234 = vst [vmem:[%s5622_s17 + $0x18] sm:$0xff] %v3217_v11  ;;  %v3220_v38 = vpop.f32.mrb[36].mxu0 }
 0xa9c   : > { %v3361_v14 = vpop.f32.mrb[31].mxu1  ;;  %v3360_v49 = vadd.f32 %v3359_v51, %v5625_v48  ;;  %v3222_v1 = vpop.f32.mrb[37].mxu0  ;;  %v3221_v35 = vadd.f32 %v3220_v38, %v5636_v25 }
 0xa9d   : > { %v3362_v34 = vadd.f32 %v3361_v14, %v5625_v48  ;;  %v3223_v15 = vadd.f32 %v3222_v1, %v5636_v25 }
 0xa9e   : > { %3875 = vst [vmem:[%s5622_s17 + $0x50] sm:$0xff] %v3360_v49  ;;  %3235 = vst [vmem:[%s5622_s17 + $0x20] sm:$0xff] %v3221_v35 }
 0xa9f   : > { %3876 = vst [vmem:[%s5622_s17 + $0x58] sm:$0xff] %v3362_v34  ;;  %v3365_v55 = vpop.f32.mrb[32].mxu1  ;;  %3236 = vst [vmem:[%s5622_s17 + $0x28] sm:$0xff] %v3223_v15  ;;  %v3226_v41 = vpop.f32.mrb[38].mxu0 }
 0xaa0   : > { %v3367_v30 = vpop.f32.mrb[33].mxu1  ;;  %v3366_v5 = vadd.f32 %v3365_v55, %v5636_v25  ;;  %v3227_v4 = vadd.f32 %v3226_v41, %v5646_v56  ;;  %v3228_v26 = vpop.f32.mrb[39].mxu0 }
 0xaa1   : > { %v3368_v21 = vadd.f32 %v3367_v30, %v5636_v25  ;;  %v3229_v23 = vadd.f32 %v3228_v26, %v5646_v56 }
 0xaa2   : > { %3877 = vst [vmem:[%s5622_s17 + $0x60] sm:$0xff] %v3366_v5  ;;  %3237 = vst [vmem:[%s5622_s17 + $0x30] sm:$0xff] %v3227_v4 }
 0xaa3   : > { %3878 = vst [vmem:[%s5622_s17 + $0x68] sm:$0xff] %v3368_v21  ;;  %v3371_v13 = vpop.f32.mrb[34].mxu1  ;;  %3238 = vst [vmem:[%s5622_s17 + $0x38] sm:$0xff] %v3229_v23 }
 0xaa4   : > { %v3372_v6 = vadd.f32 %v3371_v13, %v5646_v56  ;;  %v3373_v18 = vpop.f32.mrb[35].mxu1 }
 0xaa5   : > { %v3374_v19 = vadd.f32 %v3373_v18, %v5646_v56 }
 0xaa6   : > { %v3499_v44 = vpop.f32.mrb[40].mxu0  ;;  %3879 = vst [vmem:[%s5622_s17 + $0x70] sm:$0xff] %v3372_v6 }
 0xaa7   : > { %v3500_v32 = vadd.f32 %v3499_v44, %v5615_v39  ;;  %v3501_v29 = vpop.f32.mrb[41].mxu0  ;;  %3880 = vst [vmem:[%s5622_s17 + $0x78] sm:$0xff] %v3374_v19 }
 0xaa8   : > { %v3502_v58 = vadd.f32 %v3501_v29, %v5615_v39 }
 0xaa9   : > { %3885 = vst [vmem:[%s5622_s17 + $0x80] sm:$0xff] %v3500_v32 }
 0xaaa   : > { %3886 = vst [vmem:[%s5622_s17 + $0x88] sm:$0xff] %v3502_v58  ;;  %v3505_v10 = vpop.f32.mrb[42].mxu0 }
 0xaab   : > { %v3645_v52 = vpop.f32.mrb[36].mxu1  ;;  %v3506_v27 = vadd.f32 %v3505_v10, %v5625_v48  ;;  %v3507_v9 = vpop.f32.mrb[43].mxu0 }
 0xaac   : > { %v3646_v45 = vadd.f32 %v3645_v52, %v5615_v39  ;;  %v3647_v2 = vpop.f32.mrb[37].mxu1  ;;  %v3508_v46 = vadd.f32 %v3507_v9, %v5625_v48 }
 0xaad   : > { %v3648_v54 = vadd.f32 %v3647_v2, %v5615_v39  ;;  %3887 = vst [vmem:[%s5622_s17 + $0x90] sm:$0xff] %v3506_v27 }
 0xaae   : > { %3897 = vst [vmem:[%s5622_s17 + $0xc0] sm:$0xff] %v3646_v45  ;;  %3888 = vst [vmem:[%s5622_s17 + $0x98] sm:$0xff] %v3508_v46  ;;  %v3511_v62 = vpop.f32.mrb[44].mxu0 }
 0xaaf   : > { %3898 = vst [vmem:[%s5622_s17 + $0xc8] sm:$0xff] %v3648_v54  ;;  %v3651_v60 = vpop.f32.mrb[38].mxu1  ;;  %v3512_v37 = vadd.f32 %v3511_v62, %v5636_v25  ;;  %v3513_v16 = vpop.f32.mrb[45].mxu0 }
 0xab0   : > { %v3652_v47 = vadd.f32 %v3651_v60, %v5625_v48  ;;  %v3653_v28 = vpop.f32.mrb[39].mxu1  ;;  %v3514_v24 = vadd.f32 %v3513_v16, %v5636_v25 }
 0xab1   : > { %v3654_v50 = vadd.f32 %v3653_v28, %v5625_v48  ;;  %3889 = vst [vmem:[%s5622_s17 + $0xa0] sm:$0xff] %v3512_v37 }
 0xab2   : > { %3899 = vst [vmem:[%s5622_s17 + $0xd0] sm:$0xff] %v3652_v47  ;;  %3890 = vst [vmem:[%s5622_s17 + $0xa8] sm:$0xff] %v3514_v24  ;;  %v3517_v36 = vpop.f32.mrb[46].mxu0 }
 0xab3   : > { %3900 = vst [vmem:[%s5622_s17 + $0xd8] sm:$0xff] %v3654_v50  ;;  %v3657_v40 = vpop.f32.mrb[40].mxu1  ;;  %v3518_v57 = vadd.f32 %v3517_v36, %v5646_v56  ;;  %v3519_v3 = vpop.f32.mrb[47].mxu0 }
 0xab4   : > { %v3658_v33 = vadd.f32 %v3657_v40, %v5636_v25  ;;  %v3659_v43 = vpop.f32.mrb[41].mxu1  ;;  %v3520_v42 = vadd.f32 %v3519_v3, %v5646_v56 }
 0xab5   : > { %v3660_v8 = vadd.f32 %v3659_v43, %v5636_v25  ;;  %3891 = vst [vmem:[%s5622_s17 + $0xb0] sm:$0xff] %v3518_v57 }
 0xab6   : > { %3901 = vst [vmem:[%s5622_s17 + $0xe0] sm:$0xff] %v3658_v33  ;;  %3892 = vst [vmem:[%s5622_s17 + $0xb8] sm:$0xff] %v3520_v42 }
 0xab7   : > { %3902 = vst [vmem:[%s5622_s17 + $0xe8] sm:$0xff] %v3660_v8  ;;  %v3663_v39 = vpop.f32.mrb[42].mxu1 }
 0xab8   : > { %v3664_v0 = vadd.f32 %v3663_v39, %v5646_v56  ;;  %v3665_v7 = vpop.f32.mrb[43].mxu1 }
 0xab9   : > { %v3666_v31 = vadd.f32 %v3665_v7, %v5646_v56 }
 0xaba   : > { %3903 = vst [vmem:[%s5622_s17 + $0xf0] sm:$0xff] %v3664_v0 }
 0xabb   : > { %3904 = vst [vmem:[%s5622_s17 + $0xf8] sm:$0xff] %v3666_v31 }
 0xabc PF: > { %s25_s29 = sadd.s32 1, %s4368_s29  }
 0xabd   : > { %p22_p1 = scmp.ge.s32.totalorder %s25_s29, 4  }
 0xabf   :  { %24 = sbr.rel (!%p22_p1) target bundleno = 1 (0x1), region = 128 }
 0xac6   :  { %3698 = vsyncpa [#allocation5], 1 }
 0xac7   :  { %3700 = vsyncpa [#allocation5 + $0x1], 1 }

</bundles_post_ra>
